<compile_context>
chip_gen: v6e
topology: v6e:2x2x1
jax: 0.10.0
libtpu: 0.0.40
codegen_flags: <defaults>
</compile_context>

<pallas_src>
import functools

import jax
import jax.numpy as jnp
from jax.experimental import pallas as pl
from jax.experimental.pallas import tpu as pltpu

EPS = 1e-5  # torch.nn.LayerNorm default


# -----------------------------------------------------------------------------
# Generation-aware sizing helpers
# -----------------------------------------------------------------------------
@functools.lru_cache(maxsize=None)
def _vmem_capacity_bytes():
    """Physical VMEM per core (128 MiB v5e/v6e, 64 MiB v7x); safe fallback."""
    try:
        cap = int(pltpu.get_tpu_info().vmem_capacity_bytes)
        if cap >= 32 * 1024 * 1024:
            return cap
    except Exception:  # noqa: BLE001 - hardware query is best-effort
        pass
    return 64 * 1024 * 1024


def _vmem_limit_bytes():
    # ~25% headroom left for Mosaic-internal scratch.
    return (3 * _vmem_capacity_bytes()) // 4


def _pick_block_b(B, N, target_rows=None):
    """Batch elements per grid step.

    * Bt*N (matmul M dim) stays near target_rows (bigger on 128-MiB VMEM parts,
      smaller on v7x) and is preferably a multiple of 8 (sublane-aligned).
    * grid length stays >= 2 when B >= 2 so the "parallel" batch axis can shard
      across v7x's two TensorCores instead of leaving one idle.
    """
    if target_rows is None:
        target_rows = 1024 if _vmem_capacity_bytes() >= (96 << 20) else 256
    min_grid = 2 if B >= 2 else 1
    divs = [d for d in range(1, B + 1)
            if B % d == 0 and (B // d) >= min_grid
            and d * N <= max(target_rows, N)]
    if not divs:
        divs = [1]
    aligned = [d for d in divs if (d * N) % 8 == 0]
    return max(aligned if aligned else divs)


def _const_spec(shape, single_buffer):
    """Whole-array block, same tile every grid step (weights / LN params).

    With single_buffer=True the operand is single-buffered (pl.Buffered(1));
    since its block index never changes, double-buffering would only double its
    VMEM footprint (the v7x 64-MiB fit problem for large C / mlp_ratio).
    """
    nd = len(shape)
    index_map = lambda b: (0,) * nd
    if single_buffer:
        return pl.BlockSpec(shape, index_map, pipeline_mode=pl.Buffered(1))
    return pl.BlockSpec(shape, index_map)


def _layernorm(x, g, b):
    # Fused statistics (E[x], E[x^2]) in f32; matches torch LayerNorm up to the
    # usual cancellation caveat for huge-mean activations.
    mu = jnp.mean(x, axis=-1, keepdims=True)
    ms = jnp.mean(x * x, axis=-1, keepdims=True)
    var = ms - mu * mu
    return (x - mu) * jax.lax.rsqrt(var + EPS) * g + b


# -----------------------------------------------------------------------------
# One ViTBlock (PreNorm-Attention residual + PreNorm-FFN residual), fused.
# Grid iterates over batch blocks; each step processes (Bt, N, C) tokens.
# -----------------------------------------------------------------------------
def vit_block_kernel(x_ref, ln1g_ref, ln1b_ref, wqkv_ref, wout_ref, bout_ref,
                     ln2g_ref, ln2b_ref, w1_ref, b1_ref, w2_ref, b2_ref,
                     o_ref, *, num_heads, use_einshape):
    Bt, N, C = x_ref.shape
    H = num_heads
    dh = C // H

    # (Bt, N, C) -> (Bt*N, C): leading-dim merge (free), f32 for LN / residual.
    x = x_ref[...].astype(jnp.float32).reshape(Bt * N, C)

    # ---- attention branch:  x + to_out(attn(LN(x))) ----
    xn = _layernorm(x, ln1g_ref[...], ln1b_ref[...]).astype(jnp.bfloat16)
    # Fused QKV projection; dh**-0.5 is already folded into the q columns of
    # w_qkv, so no extra VPU scale pass is needed.
    qkv = jnp.dot(xn, wqkv_ref[...],
                  preferred_element_type=jnp.float32)            # (Bt*N, 3C)
    qkv = qkv.astype(jnp.bfloat16)

    if use_einshape:
        # Single layout-aware relayout for ALL of q/k/v: columns are ordered as
        # 3H contiguous dh-wide head groups, so one (Bt*N, 3H, dh)->(3H, Bt*N, dh)
        # relayout replaces 3*H masked lane-slices + concats.
        t = pltpu.einshape("nhd->hnd", qkv.reshape(Bt * N, 3 * H, dh))
        qh = t[0 * H:1 * H].reshape(H * Bt, N, dh)
        kh = t[1 * H:2 * H].reshape(H * Bt, N, dh)
        vh = t[2 * H:3 * H].reshape(H * Bt, N, dh)
    else:
        # Fallback: per-head lane slices + axis-0 concat (older jax versions).
        qkv3 = qkv.reshape(Bt, N, 3 * C)

        def heads(off):
            return jnp.concatenate(
                [qkv3[..., off + h * dh: off + (h + 1) * dh] for h in range(H)],
                axis=0)                                          # (H*Bt, N, dh)

        qh, kh, vh = heads(0), heads(C), heads(2 * C)

    # Head-batched contractions (single leading batch dim, MXU-friendly).
    s = jnp.einsum('bqd,bkd->bqk', qh, kh,
                   preferred_element_type=jnp.float32)           # (H*Bt, N, N)
    s = s - jnp.max(s, axis=-1, keepdims=True)
    p = jnp.exp(s)
    p = p * pl.reciprocal(jnp.sum(p, axis=-1, keepdims=True), approx=True)
    att = jnp.einsum('bqk,bkd->bqd', p.astype(jnp.bfloat16), vh,
                     preferred_element_type=jnp.float32)         # (H*Bt, N, dh)

    # Reassemble heads back to (Bt*N, C): channels [h*dh:(h+1)*dh] = head h.
    if use_einshape:
        a = pltpu.einshape("hnd->nhd",
                           att.astype(jnp.bfloat16).reshape(H, Bt * N, dh))
        att2 = a.reshape(Bt * N, C)
    else:
        att2 = jnp.concatenate(
            [att[h * Bt:(h + 1) * Bt] for h in range(H)], axis=-1)
        att2 = att2.reshape(Bt * N, C).astype(jnp.bfloat16)

    attp = jnp.dot(att2, wout_ref[...],
                   preferred_element_type=jnp.float32) + bout_ref[...]
    x = x + attp

    # ---- feed-forward branch:  x + W2 gelu(W1 LN(x) + b1) + b2 ----
    xn2 = _layernorm(x, ln2g_ref[...], ln2b_ref[...]).astype(jnp.bfloat16)
    h1 = jnp.dot(xn2, w1_ref[...],
                 preferred_element_type=jnp.float32) + b1_ref[...]
    # tanh GELU runs on the EUP (erf is a long VALU polynomial over the biggest
    # elementwise tensor).  Use approximate=False for exact torch.nn.GELU parity.
    h1 = jax.nn.gelu(h1, approximate=True)
    y = jnp.dot(h1.astype(jnp.bfloat16), w2_ref[...],
                preferred_element_type=jnp.float32) + b2_ref[...]

    o_ref[...] = (x + y).reshape(Bt, N, C).astype(o_ref.dtype)


def vit_block(x, p, num_heads, block_b=None,
              use_einshape=True, single_buffer_weights=True):
    B, N, C = x.shape
    hidden = p["w1"].shape[1]
    if block_b is None:
        block_b = _pick_block_b(B, N)
    grid = (B // block_b,)

    use_einshape = bool(use_einshape and hasattr(pltpu, "einshape"))
    single_buffer = bool(single_buffer_weights and hasattr(pl, "Buffered"))
    cspec = functools.partial(_const_spec, single_buffer=single_buffer)

    kernel = functools.partial(vit_block_kernel, num_heads=num_heads,
                               use_einshape=use_einshape)

    flops = (8 * B * N * C * C          # fused qkv + out projection
             + 4 * B * N * N * C        # scores + p @ v
             + 4 * B * N * C * hidden)  # FFN
    transc = (B * num_heads * N * N + B * N * hidden
              + 2 * B * N + B * num_heads * N)
    bytes_acc = (2 * B * N * C * 4                       # x in / out (f32)
                 + 2 * (4 * C * C + 2 * C * hidden)      # bf16 weights
                 + 4 * (6 * C + hidden))                 # LN params + biases

    return pl.pallas_call(
        kernel,
        out_shape=jax.ShapeDtypeStruct((B, N, C), x.dtype),
        grid=grid,
        in_specs=[
            pl.BlockSpec((block_b, N, C), lambda b: (b, 0, 0)),   # x
            cspec((1, C)), cspec((1, C)),                         # ln1 g / b
            cspec((C, 3 * C)),                                    # fused W_qkv
            cspec((C, C)), cspec((1, C)),                         # w_out / b_out
            cspec((1, C)), cspec((1, C)),                         # ln2 g / b
            cspec((C, hidden)), cspec((1, hidden)),               # w1 / b1
            cspec((hidden, C)), cspec((1, C)),                    # w2 / b2
        ],
        out_specs=pl.BlockSpec((block_b, N, C), lambda b: (b, 0, 0)),
        compiler_params=pltpu.CompilerParams(
            dimension_semantics=("parallel",),
            vmem_limit_bytes=_vmem_limit_bytes()),
        cost_estimate=pl.CostEstimate(flops=int(flops),
                                      transcendentals=int(transc),
                                      bytes_accessed=int(bytes_acc)),
    )(x, p["ln1_g"], p["ln1_b"], p["w_qkv"], p["w_out"], p["b_out"],
      p["ln2_g"], p["ln2_b"], p["w1"], p["b1"], p["w2"], p["b2"])


# -----------------------------------------------------------------------------
# PatchMerging: (B, N, C) -> edge-pad tail -> (B, N/df, df*C) -> LN -> Linear
# -----------------------------------------------------------------------------
def patch_merging_kernel(x_ref, ng_ref, nb_ref, wr_ref, o_ref):
    Bt, Np, dC = x_ref.shape
    out_dim = wr_ref.shape[1]
    x = x_ref[...].astype(jnp.float32).reshape(Bt * Np, dC)
    xn = _layernorm(x, ng_ref[...], nb_ref[...]).astype(jnp.bfloat16)
    y = jnp.dot(xn, wr_ref[...], preferred_element_type=jnp.float32)
    o_ref[...] = y.reshape(Bt, Np, out_dim).astype(o_ref.dtype)


def patch_merging(x, p, down_factor, block_b=None, single_buffer_weights=True):
    B, N, C = x.shape
    rem = N % down_factor
    if rem != 0:
        # Repeat the last token along the sequence tail (matches torch's
        # cat([x, x[:, -1:].repeat(...)], dim=1)) without a full-tensor concat.
        x = jnp.pad(x, ((0, 0), (0, down_factor - rem), (0, 0)), mode="edge")
        N = x.shape[1]
    num_patch = N // down_factor
    dC = down_factor * C
    xm = x.reshape(B, num_patch, dC)          # contiguous, matches torch .view
    out_dim = p["w_red"].shape[1]
    if block_b is None:
        block_b = _pick_block_b(B, num_patch)
    grid = (B // block_b,)

    single_buffer = bool(single_buffer_weights and hasattr(pl, "Buffered"))
    cspec = functools.partial(_const_spec, single_buffer=single_buffer)

    flops = 2 * B * num_patch * dC * out_dim
    bytes_acc = (B * num_patch * dC * 4 + B * num_patch * out_dim * 4
                 + dC * out_dim * 2 + 2 * dC * 4)

    return pl.pallas_call(
        patch_merging_kernel,
        out_shape=jax.ShapeDtypeStruct((B, num_patch, out_dim), x.dtype),
        grid=grid,
        in_specs=[
            pl.BlockSpec((block_b, num_patch, dC), lambda b: (b, 0, 0)),
            cspec((1, dC)), cspec((1, dC)),      # norm gamma / beta
            cspec((dC, out_dim)),                # reduction weight (no bias)
        ],
        out_specs=pl.BlockSpec((block_b, num_patch, out_dim),
                               lambda b: (b, 0, 0)),
        compiler_params=pltpu.CompilerParams(
            dimension_semantics=("parallel",),
            vmem_limit_bytes=_vmem_limit_bytes()),
        cost_estimate=pl.CostEstimate(flops=int(flops),
                                      transcendentals=int(2 * B * num_patch),
                                      bytes_accessed=int(bytes_acc)),
    )(xm, p["n_g"], p["n_b"], p["w_red"])


# -----------------------------------------------------------------------------
# Parameter init (deterministic, synthetic) + full BasicBlock forward
# -----------------------------------------------------------------------------
def init_params(key, dim, depth, out_dim, num_heads, mlp_ratio, down_factor):
    hidden = mlp_ratio * dim
    dh = dim // num_heads
    scale = dh ** -0.5

    def w(k, shape):
        return 0.02 * jax.random.normal(k, shape, jnp.float32)

    blocks = []
    for _ in range(depth):
        key, *ks = jax.random.split(key, 7)
        wq, wk, wv = (w(ks[0], (dim, dim)), w(ks[1], (dim, dim)),
                      w(ks[2], (dim, dim)))
        # Fuse qkv into one (C, 3C) weight; fold the softmax scale into the q
        # columns so the kernel never touches it.  Stored bf16 (MXU-native,
        # half the VMEM footprint).
        w_qkv = jnp.concatenate([wq * scale, wk, wv], axis=1)
        blocks.append({
            "ln1_g": jnp.ones((1, dim), jnp.float32),
            "ln1_b": jnp.zeros((1, dim), jnp.float32),
            "w_qkv": w_qkv.astype(jnp.bfloat16),
            "w_out": w(ks[3], (dim, dim)).astype(jnp.bfloat16),
            "b_out": jnp.zeros((1, dim), jnp.float32),
            "ln2_g": jnp.ones((1, dim), jnp.float32),
            "ln2_b": jnp.zeros((1, dim), jnp.float32),
            "w1": w(ks[4], (dim, hidden)).astype(jnp.bfloat16),
            "b1": jnp.zeros((1, hidden), jnp.float32),
            "w2": w(ks[5], (hidden, dim)).astype(jnp.bfloat16),
            "b2": jnp.zeros((1, dim), jnp.float32),
        })
    key, kr = jax.random.split(key)
    dC = down_factor * dim
    merge = {
        "n_g": jnp.ones((1, dC), jnp.float32),
        "n_b": jnp.zeros((1, dC), jnp.float32),
        "w_red": w(kr, (dC, out_dim)).astype(jnp.bfloat16),
    }
    return {"blocks": blocks, "merge": merge}


def basic_block_forward(x, params, num_heads, down_factor,
                        use_einshape=True, single_buffer_weights=True):
    for bp in params["blocks"]:
        x = vit_block(x, bp, num_heads,
                      use_einshape=use_einshape,
                      single_buffer_weights=single_buffer_weights)
    x = patch_merging(x, params["merge"], down_factor,
                      single_buffer_weights=single_buffer_weights)
    return x


if __name__ == "__main__":
    B, N, dim = 2, 8, 32
    depth, num_heads, mlp_ratio = 2, 4, 4
    out_dim, down_factor = 64, 2

    key = jax.random.PRNGKey(0)
    kx, kp = jax.random.split(key)
    x = jax.random.normal(kx, (B, N, dim), jnp.float32)
    params = init_params(kp, dim, depth, out_dim, num_heads, mlp_ratio,
                         down_factor)

    def run(use_einshape, single_buffer):
        fwd = jax.jit(functools.partial(
            basic_block_forward, num_heads=num_heads, down_factor=down_factor,
            use_einshape=use_einshape, single_buffer_weights=single_buffer))
        return jax.block_until_ready(fwd(x, params))

    # Primary path uses pltpu.einshape head relayout + single-buffered weight
    # BlockSpecs; fall back gracefully on jax builds that lack either feature.
    out, last_err = None, None
    for cfg in ((True, True), (True, False), (False, True), (False, False)):
        try:
            out = run(*cfg)
            break
        except Exception as e:  # noqa: BLE001 - retry with a conservative build
            last_err = e
    if out is None:
        raise last_err

    assert out.shape == (B, N // down_factor, out_dim), out.shape
    assert jnp.all(jnp.isfinite(out))
    print("KERNEL_OK")
</pallas_src>

<mosaic_0001>
module attributes {stable_mosaic.version = 11 : i64} {
  func.func @patch_merging_kernel(%arg0: i32, %arg1: memref<1x4x64xf32, #tpu.memory_space<vmem>>, %arg2: memref<1x64xf32, #tpu.memory_space<vmem>>, %arg3: memref<1x64xf32, #tpu.memory_space<vmem>>, %arg4: memref<64x64xbf16, #tpu.memory_space<vmem>>, %arg5: memref<1x4x64xf32, #tpu.memory_space<vmem>>) attributes {dimension_semantics = [#tpu.dimension_semantics<parallel>], iteration_bounds = array<i64: 2>, scalar_prefetch = 0 : i64, scratch_operands = 0 : i64, tpu.core_type = #tpu.core_type<tc>, window_params = [{transform_indices = @transform_0, window_bounds = array<i64: 1, 4, 64>}, {pipeline_mode = #tpu.pipeline_mode<synchronous>, transform_indices = @transform_1, window_bounds = array<i64: 1, 64>}, {pipeline_mode = #tpu.pipeline_mode<synchronous>, transform_indices = @transform_2, window_bounds = array<i64: 1, 64>}, {pipeline_mode = #tpu.pipeline_mode<synchronous>, transform_indices = @transform_3, window_bounds = array<i64: 64, 64>}, {transform_indices = @transform_4, window_bounds = array<i64: 1, 4, 64>}]} {
    %c0 = arith.constant 0 : index
    %c0_0 = arith.constant 0 : index
    %c0_1 = arith.constant 0 : index
    %0 = vector.load %arg1[%c0, %c0_0, %c0_1] : memref<1x4x64xf32, #tpu.memory_space<vmem>>, vector<1x4x64xf32>
    %1 = vector.shape_cast %0 : vector<1x4x64xf32> to vector<4x64xf32>
    %c0_2 = arith.constant 0 : index
    %c0_3 = arith.constant 0 : index
    %2 = vector.load %arg2[%c0_2, %c0_3] : memref<1x64xf32, #tpu.memory_space<vmem>>, vector<1x64xf32>
    %c0_4 = arith.constant 0 : index
    %c0_5 = arith.constant 0 : index
    %3 = vector.load %arg3[%c0_4, %c0_5] : memref<1x64xf32, #tpu.memory_space<vmem>>, vector<1x64xf32>
    %cst = arith.constant dense<0.000000e+00> : vector<4xf32>
    %4 = vector.multi_reduction <add>, %1, %cst [1] : vector<4x64xf32> to vector<4xf32>
    %5 = vector.shape_cast %4 : vector<4xf32> to vector<4x1xf32>
    %cst_6 = arith.constant 6.400000e+01 : f32
    %6 = vector.broadcast %cst_6 : f32 to vector<4x1xf32>
    %7 = arith.divf %5, %6 : vector<4x1xf32>
    %8 = arith.mulf %1, %1 : vector<4x64xf32>
    %cst_7 = arith.constant dense<0.000000e+00> : vector<4xf32>
    %9 = vector.multi_reduction <add>, %8, %cst_7 [1] : vector<4x64xf32> to vector<4xf32>
    %10 = vector.shape_cast %9 : vector<4xf32> to vector<4x1xf32>
    %cst_8 = arith.constant 6.400000e+01 : f32
    %11 = vector.broadcast %cst_8 : f32 to vector<4x1xf32>
    %12 = arith.divf %10, %11 : vector<4x1xf32>
    %13 = arith.mulf %7, %7 : vector<4x1xf32>
    %14 = arith.subf %12, %13 : vector<4x1xf32>
    %15 = vector.broadcast %7 : vector<4x1xf32> to vector<4x64xf32>
    %16 = arith.subf %1, %15 : vector<4x64xf32>
    %cst_9 = arith.constant 9.99999974E-6 : f32
    %17 = vector.broadcast %cst_9 : f32 to vector<4x1xf32>
    %18 = arith.addf %14, %17 : vector<4x1xf32>
    %19 = math.rsqrt %18 : vector<4x1xf32>
    %20 = vector.broadcast %19 : vector<4x1xf32> to vector<4x64xf32>
    %21 = arith.mulf %16, %20 : vector<4x64xf32>
    %22 = vector.broadcast %2 : vector<1x64xf32> to vector<4x64xf32>
    %23 = arith.mulf %21, %22 : vector<4x64xf32>
    %24 = vector.broadcast %3 : vector<1x64xf32> to vector<4x64xf32>
    %25 = arith.addf %23, %24 : vector<4x64xf32>
    %26 = arith.truncf %25 : vector<4x64xf32> to vector<4x64xbf16>
    %c0_10 = arith.constant 0 : index
    %c0_11 = arith.constant 0 : index
    %27 = vector.load %arg4[%c0_10, %c0_11] : memref<64x64xbf16, #tpu.memory_space<vmem>>, vector<64x64xbf16>
    %cst_12 = arith.constant dense<0.000000e+00> : vector<4x64xf32>
    %28 = tpu.matmul %26, %27, %cst_12 {dimension_numbers = #tpu.dot_dimension_numbers<[1], [0], [0], [1], [0, 0, 1, 1], [], []>} : vector<4x64xbf16>, vector<64x64xbf16>, vector<4x64xf32> -> vector<4x64xf32>
    %29 = vector.shape_cast %28 : vector<4x64xf32> to vector<1x4x64xf32>
    %c0_13 = arith.constant 0 : index
    %c0_14 = arith.constant 0 : index
    %c0_15 = arith.constant 0 : index
    %30 = vector.load %arg5[%c0_13, %c0_14, %c0_15] : memref<1x4x64xf32, #tpu.memory_space<vmem>>, vector<1x4x64xf32>
    tpu.vector_store %arg5[%c0_13, %c0_14, %c0_15], %29 {strides = array<i32>} : memref<1x4x64xf32, #tpu.memory_space<vmem>>, vector<1x4x64xf32>,
    return
  }
  func.func @transform_0(%arg0: i32) -> (i32, i32, i32) {
    %c0_i32 = arith.constant 0 : i32
    %c0_i32_0 = arith.constant 0 : i32
    %c0_i32_1 = arith.constant 0 : i32
    return %arg0, %c0_i32, %c0_i32_0 : i32, i32, i32
  }
  func.func @transform_1(%arg0: i32) -> (i32, i32) {
    %c0_i32 = arith.constant 0 : i32
    %c0_i32_0 = arith.constant 0 : i32
    %c0_i32_1 = arith.constant 0 : i32
    return %c0_i32, %c0_i32_0 : i32, i32
  }
  func.func @transform_2(%arg0: i32) -> (i32, i32) {
    %c0_i32 = arith.constant 0 : i32
    %c0_i32_0 = arith.constant 0 : i32
    %c0_i32_1 = arith.constant 0 : i32
    return %c0_i32, %c0_i32_0 : i32, i32
  }
  func.func @transform_3(%arg0: i32) -> (i32, i32) {
    %c0_i32 = arith.constant 0 : i32
    %c0_i32_0 = arith.constant 0 : i32
    %c0_i32_1 = arith.constant 0 : i32
    return %c0_i32, %c0_i32_0 : i32, i32
  }
  func.func @transform_4(%arg0: i32) -> (i32, i32, i32) {
    %c0_i32 = arith.constant 0 : i32
    %c0_i32_0 = arith.constant 0 : i32
    %c0_i32_1 = arith.constant 0 : i32
    return %arg0, %c0_i32, %c0_i32_0 : i32, i32, i32
  }
}

module attributes {stable_mosaic.version = 11 : i64} {
  func.func @vit_block_kernel(%arg0: i32, %arg1: memref<1x8x32xf32, #tpu.memory_space<vmem>>, %arg2: memref<1x32xf32, #tpu.memory_space<vmem>>, %arg3: memref<1x32xf32, #tpu.memory_space<vmem>>, %arg4: memref<32x96xbf16, #tpu.memory_space<vmem>>, %arg5: memref<32x32xbf16, #tpu.memory_space<vmem>>, %arg6: memref<1x32xf32, #tpu.memory_space<vmem>>, %arg7: memref<1x32xf32, #tpu.memory_space<vmem>>, %arg8: memref<1x32xf32, #tpu.memory_space<vmem>>, %arg9: memref<32x128xbf16, #tpu.memory_space<vmem>>, %arg10: memref<1x128xf32, #tpu.memory_space<vmem>>, %arg11: memref<128x32xbf16, #tpu.memory_space<vmem>>, %arg12: memref<1x32xf32, #tpu.memory_space<vmem>>, %arg13: memref<1x8x32xf32, #tpu.memory_space<vmem>>) attributes {dimension_semantics = [#tpu.dimension_semantics<parallel>], iteration_bounds = array<i64: 2>, scalar_prefetch = 0 : i64, scratch_operands = 0 : i64, tpu.core_type = #tpu.core_type<tc>, window_params = [{transform_indices = @transform_0, window_bounds = array<i64: 1, 8, 32>}, {pipeline_mode = #tpu.pipeline_mode<synchronous>, transform_indices = @transform_1, window_bounds = array<i64: 1, 32>}, {pipeline_mode = #tpu.pipeline_mode<synchronous>, transform_indices = @transform_2, window_bounds = array<i64: 1, 32>}, {pipeline_mode = #tpu.pipeline_mode<synchronous>, transform_indices = @transform_3, window_bounds = array<i64: 32, 96>}, {pipeline_mode = #tpu.pipeline_mode<synchronous>, transform_indices = @transform_4, window_bounds = array<i64: 32, 32>}, {pipeline_mode = #tpu.pipeline_mode<synchronous>, transform_indices = @transform_5, window_bounds = array<i64: 1, 32>}, {pipeline_mode = #tpu.pipeline_mode<synchronous>, transform_indices = @transform_6, window_bounds = array<i64: 1, 32>}, {pipeline_mode = #tpu.pipeline_mode<synchronous>, transform_indices = @transform_7, window_bounds = array<i64: 1, 32>}, {pipeline_mode = #tpu.pipeline_mode<synchronous>, transform_indices = @transform_8, window_bounds = array<i64: 32, 128>}, {pipeline_mode = #tpu.pipeline_mode<synchronous>, transform_indices = @transform_9, window_bounds = array<i64: 1, 128>}, {pipeline_mode = #tpu.pipeline_mode<synchronous>, transform_indices = @transform_10, window_bounds = array<i64: 128, 32>}, {pipeline_mode = #tpu.pipeline_mode<synchronous>, transform_indices = @transform_11, window_bounds = array<i64: 1, 32>}, {transform_indices = @transform_12, window_bounds = array<i64: 1, 8, 32>}]} {
    %c0 = arith.constant 0 : index
    %c0_0 = arith.constant 0 : index
    %c0_1 = arith.constant 0 : index
    %0 = vector.load %arg1[%c0, %c0_0, %c0_1] : memref<1x8x32xf32, #tpu.memory_space<vmem>>, vector<1x8x32xf32>
    %1 = vector.shape_cast %0 : vector<1x8x32xf32> to vector<8x32xf32>
    %c0_2 = arith.constant 0 : index
    %c0_3 = arith.constant 0 : index
    %2 = vector.load %arg2[%c0_2, %c0_3] : memref<1x32xf32, #tpu.memory_space<vmem>>, vector<1x32xf32>
    %c0_4 = arith.constant 0 : index
    %c0_5 = arith.constant 0 : index
    %3 = vector.load %arg3[%c0_4, %c0_5] : memref<1x32xf32, #tpu.memory_space<vmem>>, vector<1x32xf32>
    %cst = arith.constant dense<0.000000e+00> : vector<8xf32>
    %4 = vector.multi_reduction <add>, %1, %cst [1] : vector<8x32xf32> to vector<8xf32>
    %5 = vector.shape_cast %4 : vector<8xf32> to vector<8x1xf32>
    %cst_6 = arith.constant 3.200000e+01 : f32
    %6 = vector.broadcast %cst_6 : f32 to vector<8x1xf32>
    %7 = arith.divf %5, %6 : vector<8x1xf32>
    %8 = arith.mulf %1, %1 : vector<8x32xf32>
    %cst_7 = arith.constant dense<0.000000e+00> : vector<8xf32>
    %9 = vector.multi_reduction <add>, %8, %cst_7 [1] : vector<8x32xf32> to vector<8xf32>
    %10 = vector.shape_cast %9 : vector<8xf32> to vector<8x1xf32>
    %cst_8 = arith.constant 3.200000e+01 : f32
    %11 = vector.broadcast %cst_8 : f32 to vector<8x1xf32>
    %12 = arith.divf %10, %11 : vector<8x1xf32>
    %13 = arith.mulf %7, %7 : vector<8x1xf32>
    %14 = arith.subf %12, %13 : vector<8x1xf32>
    %15 = vector.broadcast %7 : vector<8x1xf32> to vector<8x32xf32>
    %16 = arith.subf %1, %15 : vector<8x32xf32>
    %cst_9 = arith.constant 9.99999974E-6 : f32
    %17 = vector.broadcast %cst_9 : f32 to vector<8x1xf32>
    %18 = arith.addf %14, %17 : vector<8x1xf32>
    %19 = math.rsqrt %18 : vector<8x1xf32>
    %20 = vector.broadcast %19 : vector<8x1xf32> to vector<8x32xf32>
    %21 = arith.mulf %16, %20 : vector<8x32xf32>
    %22 = vector.broadcast %2 : vector<1x32xf32> to vector<8x32xf32>
    %23 = arith.mulf %21, %22 : vector<8x32xf32>
    %24 = vector.broadcast %3 : vector<1x32xf32> to vector<8x32xf32>
    %25 = arith.addf %23, %24 : vector<8x32xf32>
    %26 = arith.truncf %25 : vector<8x32xf32> to vector<8x32xbf16>
    %c0_10 = arith.constant 0 : index
    %c0_11 = arith.constant 0 : index
    %27 = vector.load %arg4[%c0_10, %c0_11] : memref<32x96xbf16, #tpu.memory_space<vmem>>, vector<32x96xbf16>
    %cst_12 = arith.constant dense<0.000000e+00> : vector<8x96xf32>
    %28 = tpu.matmul %26, %27, %cst_12 {dimension_numbers = #tpu.dot_dimension_numbers<[1], [0], [0], [1], [0, 0, 1, 1], [], []>} : vector<8x32xbf16>, vector<32x96xbf16>, vector<8x96xf32> -> vector<8x96xf32>
    %29 = arith.truncf %28 : vector<8x96xf32> to vector<8x96xbf16>
    %30 = vector.shape_cast %29 : vector<8x96xbf16> to vector<8x12x8xbf16>
    %31 = tpu.transpose %30, [1, 0, 2] : vector<8x12x8xbf16> -> vector<12x8x8xbf16>
    %32 = vector.extract_strided_slice %31 {offsets = [0, 0, 0], sizes = [4, 8, 8], strides = [1, 1, 1]} : vector<12x8x8xbf16> to vector<4x8x8xbf16>
    %33 = vector.extract_strided_slice %31 {offsets = [4, 0, 0], sizes = [4, 8, 8], strides = [1, 1, 1]} : vector<12x8x8xbf16> to vector<4x8x8xbf16>
    %34 = vector.extract_strided_slice %31 {offsets = [8, 0, 0], sizes = [4, 8, 8], strides = [1, 1, 1]} : vector<12x8x8xbf16> to vector<4x8x8xbf16>
    "tpu.trace_start"() <{level = 10 : i32, message = "bqd,bkd->bqk"}> : () -> ()
    %cst_13 = arith.constant dense<0.000000e+00> : vector<4x8x8xf32>
    %35 = tpu.matmul %32, %33, %cst_13 {dimension_numbers = #tpu.dot_dimension_numbers<[2], [2], [1], [1], [0, 0, 0, 1, 1, 1], [0], [0]>} : vector<4x8x8xbf16>, vector<4x8x8xbf16>, vector<4x8x8xf32> -> vector<4x8x8xf32>
    "tpu.trace_stop"() : () -> ()
    %cst_14 = arith.constant dense<0xFF800000> : vector<4x8xf32>
    %36 = vector.multi_reduction <maximumf>, %35, %cst_14 [2] : vector<4x8x8xf32> to vector<4x8xf32>
    %37 = vector.shape_cast %36 : vector<4x8xf32> to vector<4x8x1xf32>
    %38 = vector.broadcast %37 : vector<4x8x1xf32> to vector<4x8x8xf32>
    %39 = arith.subf %35, %38 : vector<4x8x8xf32>
    %40 = math.exp %39 : vector<4x8x8xf32>
    %cst_15 = arith.constant dense<0.000000e+00> : vector<4x8xf32>
    %41 = vector.multi_reduction <add>, %40, %cst_15 [2] : vector<4x8x8xf32> to vector<4x8xf32>
    %42 = vector.shape_cast %41 : vector<4x8xf32> to vector<4x8x1xf32>
    %43 = tpu.reciprocal %42 {approx = true} : vector<4x8x1xf32> -> vector<4x8x1xf32>
    %44 = vector.broadcast %43 : vector<4x8x1xf32> to vector<4x8x8xf32>
    %45 = arith.mulf %40, %44 : vector<4x8x8xf32>
    %46 = arith.truncf %45 : vector<4x8x8xf32> to vector<4x8x8xbf16>
    "tpu.trace_start"() <{level = 10 : i32, message = "bqk,bkd->bqd"}> : () -> ()
    %cst_16 = arith.constant dense<0.000000e+00> : vector<4x8x8xf32>
    %47 = tpu.matmul %46, %34, %cst_16 {dimension_numbers = #tpu.dot_dimension_numbers<[2], [1], [1], [2], [0, 0, 0, 1, 1, 2], [0], [0]>} : vector<4x8x8xbf16>, vector<4x8x8xbf16>, vector<4x8x8xf32> -> vector<4x8x8xf32>
    "tpu.trace_stop"() : () -> ()
    %48 = arith.truncf %47 : vector<4x8x8xf32> to vector<4x8x8xbf16>
    %49 = tpu.transpose %48, [1, 0, 2] : vector<4x8x8xbf16> -> vector<8x4x8xbf16>
    %50 = vector.shape_cast %49 : vector<8x4x8xbf16> to vector<8x32xbf16>
    %c0_17 = arith.constant 0 : index
    %c0_18 = arith.constant 0 : index
    %51 = vector.load %arg5[%c0_17, %c0_18] : memref<32x32xbf16, #tpu.memory_space<vmem>>, vector<32x32xbf16>
    %cst_19 = arith.constant dense<0.000000e+00> : vector<8x32xf32>
    %52 = tpu.matmul %50, %51, %cst_19 {dimension_numbers = #tpu.dot_dimension_numbers<[1], [0], [0], [1], [0, 0, 1, 1], [], []>} : vector<8x32xbf16>, vector<32x32xbf16>, vector<8x32xf32> -> vector<8x32xf32>
    %c0_20 = arith.constant 0 : index
    %c0_21 = arith.constant 0 : index
    %53 = vector.load %arg6[%c0_20, %c0_21] : memref<1x32xf32, #tpu.memory_space<vmem>>, vector<1x32xf32>
    %54 = vector.broadcast %53 : vector<1x32xf32> to vector<8x32xf32>
    %55 = arith.addf %52, %54 : vector<8x32xf32>
    %56 = arith.addf %1, %55 : vector<8x32xf32>
    %c0_22 = arith.constant 0 : index
    %c0_23 = arith.constant 0 : index
    %57 = vector.load %arg7[%c0_22, %c0_23] : memref<1x32xf32, #tpu.memory_space<vmem>>, vector<1x32xf32>
    %c0_24 = arith.constant 0 : index
    %c0_25 = arith.constant 0 : index
    %58 = vector.load %arg8[%c0_24, %c0_25] : memref<1x32xf32, #tpu.memory_space<vmem>>, vector<1x32xf32>
    %cst_26 = arith.constant dense<0.000000e+00> : vector<8xf32>
    %59 = vector.multi_reduction <add>, %56, %cst_26 [1] : vector<8x32xf32> to vector<8xf32>
    %60 = vector.shape_cast %59 : vector<8xf32> to vector<8x1xf32>
    %cst_27 = arith.constant 3.200000e+01 : f32
    %61 = vector.broadcast %cst_27 : f32 to vector<8x1xf32>
    %62 = arith.divf %60, %61 : vector<8x1xf32>
    %63 = arith.mulf %56, %56 : vector<8x32xf32>
    %cst_28 = arith.constant dense<0.000000e+00> : vector<8xf32>
    %64 = vector.multi_reduction <add>, %63, %cst_28 [1] : vector<8x32xf32> to vector<8xf32>
    %65 = vector.shape_cast %64 : vector<8xf32> to vector<8x1xf32>
    %cst_29 = arith.constant 3.200000e+01 : f32
    %66 = vector.broadcast %cst_29 : f32 to vector<8x1xf32>
    %67 = arith.divf %65, %66 : vector<8x1xf32>
    %68 = arith.mulf %62, %62 : vector<8x1xf32>
    %69 = arith.subf %67, %68 : vector<8x1xf32>
    %70 = vector.broadcast %62 : vector<8x1xf32> to vector<8x32xf32>
    %71 = arith.subf %56, %70 : vector<8x32xf32>
    %cst_30 = arith.constant 9.99999974E-6 : f32
    %72 = vector.broadcast %cst_30 : f32 to vector<8x1xf32>
    %73 = arith.addf %69, %72 : vector<8x1xf32>
    %74 = math.rsqrt %73 : vector<8x1xf32>
    %75 = vector.broadcast %74 : vector<8x1xf32> to vector<8x32xf32>
    %76 = arith.mulf %71, %75 : vector<8x32xf32>
    %77 = vector.broadcast %57 : vector<1x32xf32> to vector<8x32xf32>
    %78 = arith.mulf %76, %77 : vector<8x32xf32>
    %79 = vector.broadcast %58 : vector<1x32xf32> to vector<8x32xf32>
    %80 = arith.addf %78, %79 : vector<8x32xf32>
    %81 = arith.truncf %80 : vector<8x32xf32> to vector<8x32xbf16>
    %c0_31 = arith.constant 0 : index
    %c0_32 = arith.constant 0 : index
    %82 = vector.load %arg9[%c0_31, %c0_32] : memref<32x128xbf16, #tpu.memory_space<vmem>>, vector<32x128xbf16>
    %cst_33 = arith.constant dense<0.000000e+00> : vector<8x128xf32>
    %83 = tpu.matmul %81, %82, %cst_33 {dimension_numbers = #tpu.dot_dimension_numbers<[1], [0], [0], [1], [0, 0, 1, 1], [], []>} : vector<8x32xbf16>, vector<32x128xbf16>, vector<8x128xf32> -> vector<8x128xf32>
    %c0_34 = arith.constant 0 : index
    %c0_35 = arith.constant 0 : index
    %84 = vector.load %arg10[%c0_34, %c0_35] : memref<1x128xf32, #tpu.memory_space<vmem>>, vector<1x128xf32>
    %85 = vector.broadcast %84 : vector<1x128xf32> to vector<8x128xf32>
    %86 = arith.addf %83, %85 : vector<8x128xf32>
    %87 = arith.mulf %86, %86 : vector<8x128xf32>
    %88 = arith.mulf %86, %87 : vector<8x128xf32>
    %cst_36 = arith.constant 4.471500e-02 : f32
    %89 = vector.broadcast %cst_36 : f32 to vector<8x128xf32>
    %90 = arith.mulf %89, %88 : vector<8x128xf32>
    %91 = arith.addf %86, %90 : vector<8x128xf32>
    %cst_37 = arith.constant 0.797884583 : f32
    %92 = vector.broadcast %cst_37 : f32 to vector<8x128xf32>
    %93 = arith.mulf %92, %91 : vector<8x128xf32>
    %94 = math.tanh %93 : vector<8x128xf32>
    %cst_38 = arith.constant 1.000000e+00 : f32
    %95 = vector.broadcast %cst_38 : f32 to vector<8x128xf32>
    %96 = arith.addf %95, %94 : vector<8x128xf32>
    %cst_39 = arith.constant 5.000000e-01 : f32
    %97 = vector.broadcast %cst_39 : f32 to vector<8x128xf32>
    %98 = arith.mulf %97, %96 : vector<8x128xf32>
    %99 = arith.mulf %86, %98 : vector<8x128xf32>
    %100 = arith.truncf %99 : vector<8x128xf32> to vector<8x128xbf16>
    %c0_40 = arith.constant 0 : index
    %c0_41 = arith.constant 0 : index
    %101 = vector.load %arg11[%c0_40, %c0_41] : memref<128x32xbf16, #tpu.memory_space<vmem>>, vector<128x32xbf16>
    %cst_42 = arith.constant dense<0.000000e+00> : vector<8x32xf32>
    %102 = tpu.matmul %100, %101, %cst_42 {dimension_numbers = #tpu.dot_dimension_numbers<[1], [0], [0], [1], [0, 0, 1, 1], [], []>} : vector<8x128xbf16>, vector<128x32xbf16>, vector<8x32xf32> -> vector<8x32xf32>
    %c0_43 = arith.constant 0 : index
    %c0_44 = arith.constant 0 : index
    %103 = vector.load %arg12[%c0_43, %c0_44] : memref<1x32xf32, #tpu.memory_space<vmem>>, vector<1x32xf32>
    %104 = vector.broadcast %103 : vector<1x32xf32> to vector<8x32xf32>
    %105 = arith.addf %102, %104 : vector<8x32xf32>
    %106 = arith.addf %56, %105 : vector<8x32xf32>
    %107 = vector.shape_cast %106 : vector<8x32xf32> to vector<1x8x32xf32>
    %c0_45 = arith.constant 0 : index
    %c0_46 = arith.constant 0 : index
    %c0_47 = arith.constant 0 : index
    %108 = vector.load %arg13[%c0_45, %c0_46, %c0_47] : memref<1x8x32xf32, #tpu.memory_space<vmem>>, vector<1x8x32xf32>
    tpu.vector_store %arg13[%c0_45, %c0_46, %c0_47], %107 {strides = array<i32>} : memref<1x8x32xf32, #tpu.memory_space<vmem>>, vector<1x8x32xf32>,
    return
  }
  func.func @transform_0(%arg0: i32) -> (i32, i32, i32) {
    %c0_i32 = arith.constant 0 : i32
    %c0_i32_0 = arith.constant 0 : i32
    %c0_i32_1 = arith.constant 0 : i32
    return %arg0, %c0_i32, %c0_i32_0 : i32, i32, i32
  }
  func.func @transform_1(%arg0: i32) -> (i32, i32) {
    %c0_i32 = arith.constant 0 : i32
    %c0_i32_0 = arith.constant 0 : i32
    %c0_i32_1 = arith.constant 0 : i32
    return %c0_i32, %c0_i32_0 : i32, i32
  }
  func.func @transform_2(%arg0: i32) -> (i32, i32) {
    %c0_i32 = arith.constant 0 : i32
    %c0_i32_0 = arith.constant 0 : i32
    %c0_i32_1 = arith.constant 0 : i32
    return %c0_i32, %c0_i32_0 : i32, i32
  }
  func.func @transform_3(%arg0: i32) -> (i32, i32) {
    %c0_i32 = arith.constant 0 : i32
    %c0_i32_0 = arith.constant 0 : i32
    %c0_i32_1 = arith.constant 0 : i32
    return %c0_i32, %c0_i32_0 : i32, i32
  }
  func.func @transform_4(%arg0: i32) -> (i32, i32) {
    %c0_i32 = arith.constant 0 : i32
    %c0_i32_0 = arith.constant 0 : i32
    %c0_i32_1 = arith.constant 0 : i32
    return %c0_i32, %c0_i32_0 : i32, i32
  }
  func.func @transform_5(%arg0: i32) -> (i32, i32) {
    %c0_i32 = arith.constant 0 : i32
    %c0_i32_0 = arith.constant 0 : i32
    %c0_i32_1 = arith.constant 0 : i32
    return %c0_i32, %c0_i32_0 : i32, i32
  }
  func.func @transform_6(%arg0: i32) -> (i32, i32) {
    %c0_i32 = arith.constant 0 : i32
    %c0_i32_0 = arith.constant 0 : i32
    %c0_i32_1 = arith.constant 0 : i32
    return %c0_i32, %c0_i32_0 : i32, i32
  }
  func.func @transform_7(%arg0: i32) -> (i32, i32) {
    %c0_i32 = arith.constant 0 : i32
    %c0_i32_0 = arith.constant 0 : i32
    %c0_i32_1 = arith.constant 0 : i32
    return %c0_i32, %c0_i32_0 : i32, i32
  }
  func.func @transform_8(%arg0: i32) -> (i32, i32) {
    %c0_i32 = arith.constant 0 : i32
    %c0_i32_0 = arith.constant 0 : i32
    %c0_i32_1 = arith.constant 0 : i32
    return %c0_i32, %c0_i32_0 : i32, i32
  }
  func.func @transform_9(%arg0: i32) -> (i32, i32) {
    %c0_i32 = arith.constant 0 : i32
    %c0_i32_0 = arith.constant 0 : i32
    %c0_i32_1 = arith.constant 0 : i32
    return %c0_i32, %c0_i32_0 : i32, i32
  }
  func.func @transform_10(%arg0: i32) -> (i32, i32) {
    %c0_i32 = arith.constant 0 : i32
    %c0_i32_0 = arith.constant 0 : i32
    %c0_i32_1 = arith.constant 0 : i32
    return %c0_i32, %c0_i32_0 : i32, i32
  }
  func.func @transform_11(%arg0: i32) -> (i32, i32) {
    %c0_i32 = arith.constant 0 : i32
    %c0_i32_0 = arith.constant 0 : i32
    %c0_i32_1 = arith.constant 0 : i32
    return %c0_i32, %c0_i32_0 : i32, i32
  }
  func.func @transform_12(%arg0: i32) -> (i32, i32, i32) {
    %c0_i32 = arith.constant 0 : i32
    %c0_i32_0 = arith.constant 0 : i32
    %c0_i32_1 = arith.constant 0 : i32
    return %arg0, %c0_i32, %c0_i32_0 : i32, i32, i32
  }
}

module attributes {stable_mosaic.version = 11 : i64} {
  func.func @patch_merging_kernel(%arg0: i32, %arg1: memref<1x4x64xf32, #tpu.memory_space<vmem>>, %arg2: memref<1x64xf32, #tpu.memory_space<vmem>>, %arg3: memref<1x64xf32, #tpu.memory_space<vmem>>, %arg4: memref<64x64xbf16, #tpu.memory_space<vmem>>, %arg5: memref<1x4x64xf32, #tpu.memory_space<vmem>>) attributes {dimension_semantics = [#tpu.dimension_semantics<parallel>], iteration_bounds = array<i64: 2>, scalar_prefetch = 0 : i64, scratch_operands = 0 : i64, tpu.core_type = #tpu.core_type<tc>, window_params = [{transform_indices = @transform_0, window_bounds = array<i64: 1, 4, 64>}, {pipeline_mode = #tpu.pipeline_mode<synchronous>, transform_indices = @transform_1, window_bounds = array<i64: 1, 64>}, {pipeline_mode = #tpu.pipeline_mode<synchronous>, transform_indices = @transform_2, window_bounds = array<i64: 1, 64>}, {pipeline_mode = #tpu.pipeline_mode<synchronous>, transform_indices = @transform_3, window_bounds = array<i64: 64, 64>}, {transform_indices = @transform_4, window_bounds = array<i64: 1, 4, 64>}]} {
    %c0 = arith.constant 0 : index
    %c0_0 = arith.constant 0 : index
    %c0_1 = arith.constant 0 : index
    %0 = vector.load %arg1[%c0, %c0_0, %c0_1] : memref<1x4x64xf32, #tpu.memory_space<vmem>>, vector<1x4x64xf32>
    %1 = vector.shape_cast %0 : vector<1x4x64xf32> to vector<4x64xf32>
    %c0_2 = arith.constant 0 : index
    %c0_3 = arith.constant 0 : index
    %2 = vector.load %arg2[%c0_2, %c0_3] : memref<1x64xf32, #tpu.memory_space<vmem>>, vector<1x64xf32>
    %c0_4 = arith.constant 0 : index
    %c0_5 = arith.constant 0 : index
    %3 = vector.load %arg3[%c0_4, %c0_5] : memref<1x64xf32, #tpu.memory_space<vmem>>, vector<1x64xf32>
    %cst = arith.constant dense<0.000000e+00> : vector<4xf32>
    %4 = vector.multi_reduction <add>, %1, %cst [1] : vector<4x64xf32> to vector<4xf32>
    %5 = vector.shape_cast %4 : vector<4xf32> to vector<4x1xf32>
    %cst_6 = arith.constant 6.400000e+01 : f32
    %6 = vector.broadcast %cst_6 : f32 to vector<4x1xf32>
    %7 = arith.divf %5, %6 : vector<4x1xf32>
    %8 = arith.mulf %1, %1 : vector<4x64xf32>
    %cst_7 = arith.constant dense<0.000000e+00> : vector<4xf32>
    %9 = vector.multi_reduction <add>, %8, %cst_7 [1] : vector<4x64xf32> to vector<4xf32>
    %10 = vector.shape_cast %9 : vector<4xf32> to vector<4x1xf32>
    %cst_8 = arith.constant 6.400000e+01 : f32
    %11 = vector.broadcast %cst_8 : f32 to vector<4x1xf32>
    %12 = arith.divf %10, %11 : vector<4x1xf32>
    %13 = arith.mulf %7, %7 : vector<4x1xf32>
    %14 = arith.subf %12, %13 : vector<4x1xf32>
    %15 = vector.broadcast %7 : vector<4x1xf32> to vector<4x64xf32>
    %16 = arith.subf %1, %15 : vector<4x64xf32>
    %cst_9 = arith.constant 9.99999974E-6 : f32
    %17 = vector.broadcast %cst_9 : f32 to vector<4x1xf32>
    %18 = arith.addf %14, %17 : vector<4x1xf32>
    %19 = math.rsqrt %18 : vector<4x1xf32>
    %20 = vector.broadcast %19 : vector<4x1xf32> to vector<4x64xf32>
    %21 = arith.mulf %16, %20 : vector<4x64xf32>
    %22 = vector.broadcast %2 : vector<1x64xf32> to vector<4x64xf32>
    %23 = arith.mulf %21, %22 : vector<4x64xf32>
    %24 = vector.broadcast %3 : vector<1x64xf32> to vector<4x64xf32>
    %25 = arith.addf %23, %24 : vector<4x64xf32>
    %26 = arith.truncf %25 : vector<4x64xf32> to vector<4x64xbf16>
    %c0_10 = arith.constant 0 : index
    %c0_11 = arith.constant 0 : index
    %27 = vector.load %arg4[%c0_10, %c0_11] : memref<64x64xbf16, #tpu.memory_space<vmem>>, vector<64x64xbf16>
    %cst_12 = arith.constant dense<0.000000e+00> : vector<4x64xf32>
    %28 = tpu.matmul %26, %27, %cst_12 {dimension_numbers = #tpu.dot_dimension_numbers<[1], [0], [0], [1], [0, 0, 1, 1], [], []>} : vector<4x64xbf16>, vector<64x64xbf16>, vector<4x64xf32> -> vector<4x64xf32>
    %29 = vector.shape_cast %28 : vector<4x64xf32> to vector<1x4x64xf32>
    %c0_13 = arith.constant 0 : index
    %c0_14 = arith.constant 0 : index
    %c0_15 = arith.constant 0 : index
    %30 = vector.load %arg5[%c0_13, %c0_14, %c0_15] : memref<1x4x64xf32, #tpu.memory_space<vmem>>, vector<1x4x64xf32>
    tpu.vector_store %arg5[%c0_13, %c0_14, %c0_15], %29 {strides = array<i32>} : memref<1x4x64xf32, #tpu.memory_space<vmem>>, vector<1x4x64xf32>,
    return
  }
  func.func @transform_0(%arg0: i32) -> (i32, i32, i32) {
    %c0_i32 = arith.constant 0 : i32
    %c0_i32_0 = arith.constant 0 : i32
    %c0_i32_1 = arith.constant 0 : i32
    return %arg0, %c0_i32, %c0_i32_0 : i32, i32, i32
  }
  func.func @transform_1(%arg0: i32) -> (i32, i32) {
    %c0_i32 = arith.constant 0 : i32
    %c0_i32_0 = arith.constant 0 : i32
    %c0_i32_1 = arith.constant 0 : i32
    return %c0_i32, %c0_i32_0 : i32, i32
  }
  func.func @transform_2(%arg0: i32) -> (i32, i32) {
    %c0_i32 = arith.constant 0 : i32
    %c0_i32_0 = arith.constant 0 : i32
    %c0_i32_1 = arith.constant 0 : i32
    return %c0_i32, %c0_i32_0 : i32, i32
  }
  func.func @transform_3(%arg0: i32) -> (i32, i32) {
    %c0_i32 = arith.constant 0 : i32
    %c0_i32_0 = arith.constant 0 : i32
    %c0_i32_1 = arith.constant 0 : i32
    return %c0_i32, %c0_i32_0 : i32, i32
  }
  func.func @transform_4(%arg0: i32) -> (i32, i32, i32) {
    %c0_i32 = arith.constant 0 : i32
    %c0_i32_0 = arith.constant 0 : i32
    %c0_i32_1 = arith.constant 0 : i32
    return %arg0, %c0_i32, %c0_i32_0 : i32, i32, i32
  }
}

module attributes {stable_mosaic.version = 11 : i64} {
  func.func @vit_block_kernel(%arg0: i32, %arg1: memref<1x8x32xf32, #tpu.memory_space<vmem>>, %arg2: memref<1x32xf32, #tpu.memory_space<vmem>>, %arg3: memref<1x32xf32, #tpu.memory_space<vmem>>, %arg4: memref<32x96xbf16, #tpu.memory_space<vmem>>, %arg5: memref<32x32xbf16, #tpu.memory_space<vmem>>, %arg6: memref<1x32xf32, #tpu.memory_space<vmem>>, %arg7: memref<1x32xf32, #tpu.memory_space<vmem>>, %arg8: memref<1x32xf32, #tpu.memory_space<vmem>>, %arg9: memref<32x128xbf16, #tpu.memory_space<vmem>>, %arg10: memref<1x128xf32, #tpu.memory_space<vmem>>, %arg11: memref<128x32xbf16, #tpu.memory_space<vmem>>, %arg12: memref<1x32xf32, #tpu.memory_space<vmem>>, %arg13: memref<1x8x32xf32, #tpu.memory_space<vmem>>) attributes {dimension_semantics = [#tpu.dimension_semantics<parallel>], iteration_bounds = array<i64: 2>, scalar_prefetch = 0 : i64, scratch_operands = 0 : i64, tpu.core_type = #tpu.core_type<tc>, window_params = [{transform_indices = @transform_0, window_bounds = array<i64: 1, 8, 32>}, {pipeline_mode = #tpu.pipeline_mode<synchronous>, transform_indices = @transform_1, window_bounds = array<i64: 1, 32>}, {pipeline_mode = #tpu.pipeline_mode<synchronous>, transform_indices = @transform_2, window_bounds = array<i64: 1, 32>}, {pipeline_mode = #tpu.pipeline_mode<synchronous>, transform_indices = @transform_3, window_bounds = array<i64: 32, 96>}, {pipeline_mode = #tpu.pipeline_mode<synchronous>, transform_indices = @transform_4, window_bounds = array<i64: 32, 32>}, {pipeline_mode = #tpu.pipeline_mode<synchronous>, transform_indices = @transform_5, window_bounds = array<i64: 1, 32>}, {pipeline_mode = #tpu.pipeline_mode<synchronous>, transform_indices = @transform_6, window_bounds = array<i64: 1, 32>}, {pipeline_mode = #tpu.pipeline_mode<synchronous>, transform_indices = @transform_7, window_bounds = array<i64: 1, 32>}, {pipeline_mode = #tpu.pipeline_mode<synchronous>, transform_indices = @transform_8, window_bounds = array<i64: 32, 128>}, {pipeline_mode = #tpu.pipeline_mode<synchronous>, transform_indices = @transform_9, window_bounds = array<i64: 1, 128>}, {pipeline_mode = #tpu.pipeline_mode<synchronous>, transform_indices = @transform_10, window_bounds = array<i64: 128, 32>}, {pipeline_mode = #tpu.pipeline_mode<synchronous>, transform_indices = @transform_11, window_bounds = array<i64: 1, 32>}, {transform_indices = @transform_12, window_bounds = array<i64: 1, 8, 32>}]} {
    %c0 = arith.constant 0 : index
    %c0_0 = arith.constant 0 : index
    %c0_1 = arith.constant 0 : index
    %0 = vector.load %arg1[%c0, %c0_0, %c0_1] : memref<1x8x32xf32, #tpu.memory_space<vmem>>, vector<1x8x32xf32>
    %1 = vector.shape_cast %0 : vector<1x8x32xf32> to vector<8x32xf32>
    %c0_2 = arith.constant 0 : index
    %c0_3 = arith.constant 0 : index
    %2 = vector.load %arg2[%c0_2, %c0_3] : memref<1x32xf32, #tpu.memory_space<vmem>>, vector<1x32xf32>
    %c0_4 = arith.constant 0 : index
    %c0_5 = arith.constant 0 : index
    %3 = vector.load %arg3[%c0_4, %c0_5] : memref<1x32xf32, #tpu.memory_space<vmem>>, vector<1x32xf32>
    %cst = arith.constant dense<0.000000e+00> : vector<8xf32>
    %4 = vector.multi_reduction <add>, %1, %cst [1] : vector<8x32xf32> to vector<8xf32>
    %5 = vector.shape_cast %4 : vector<8xf32> to vector<8x1xf32>
    %cst_6 = arith.constant 3.200000e+01 : f32
    %6 = vector.broadcast %cst_6 : f32 to vector<8x1xf32>
    %7 = arith.divf %5, %6 : vector<8x1xf32>
    %8 = arith.mulf %1, %1 : vector<8x32xf32>
    %cst_7 = arith.constant dense<0.000000e+00> : vector<8xf32>
    %9 = vector.multi_reduction <add>, %8, %cst_7 [1] : vector<8x32xf32> to vector<8xf32>
    %10 = vector.shape_cast %9 : vector<8xf32> to vector<8x1xf32>
    %cst_8 = arith.constant 3.200000e+01 : f32
    %11 = vector.broadcast %cst_8 : f32 to vector<8x1xf32>
    %12 = arith.divf %10, %11 : vector<8x1xf32>
    %13 = arith.mulf %7, %7 : vector<8x1xf32>
    %14 = arith.subf %12, %13 : vector<8x1xf32>
    %15 = vector.broadcast %7 : vector<8x1xf32> to vector<8x32xf32>
    %16 = arith.subf %1, %15 : vector<8x32xf32>
    %cst_9 = arith.constant 9.99999974E-6 : f32
    %17 = vector.broadcast %cst_9 : f32 to vector<8x1xf32>
    %18 = arith.addf %14, %17 : vector<8x1xf32>
    %19 = math.rsqrt %18 : vector<8x1xf32>
    %20 = vector.broadcast %19 : vector<8x1xf32> to vector<8x32xf32>
    %21 = arith.mulf %16, %20 : vector<8x32xf32>
    %22 = vector.broadcast %2 : vector<1x32xf32> to vector<8x32xf32>
    %23 = arith.mulf %21, %22 : vector<8x32xf32>
    %24 = vector.broadcast %3 : vector<1x32xf32> to vector<8x32xf32>
    %25 = arith.addf %23, %24 : vector<8x32xf32>
    %26 = arith.truncf %25 : vector<8x32xf32> to vector<8x32xbf16>
    %c0_10 = arith.constant 0 : index
    %c0_11 = arith.constant 0 : index
    %27 = vector.load %arg4[%c0_10, %c0_11] : memref<32x96xbf16, #tpu.memory_space<vmem>>, vector<32x96xbf16>
    %cst_12 = arith.constant dense<0.000000e+00> : vector<8x96xf32>
    %28 = tpu.matmul %26, %27, %cst_12 {dimension_numbers = #tpu.dot_dimension_numbers<[1], [0], [0], [1], [0, 0, 1, 1], [], []>} : vector<8x32xbf16>, vector<32x96xbf16>, vector<8x96xf32> -> vector<8x96xf32>
    %29 = arith.truncf %28 : vector<8x96xf32> to vector<8x96xbf16>
    %30 = vector.shape_cast %29 : vector<8x96xbf16> to vector<8x12x8xbf16>
    %31 = tpu.transpose %30, [1, 0, 2] : vector<8x12x8xbf16> -> vector<12x8x8xbf16>
    %32 = vector.extract_strided_slice %31 {offsets = [0, 0, 0], sizes = [4, 8, 8], strides = [1, 1, 1]} : vector<12x8x8xbf16> to vector<4x8x8xbf16>
    %33 = vector.extract_strided_slice %31 {offsets = [4, 0, 0], sizes = [4, 8, 8], strides = [1, 1, 1]} : vector<12x8x8xbf16> to vector<4x8x8xbf16>
    %34 = vector.extract_strided_slice %31 {offsets = [8, 0, 0], sizes = [4, 8, 8], strides = [1, 1, 1]} : vector<12x8x8xbf16> to vector<4x8x8xbf16>
    "tpu.trace_start"() <{level = 10 : i32, message = "bqd,bkd->bqk"}> : () -> ()
    %cst_13 = arith.constant dense<0.000000e+00> : vector<4x8x8xf32>
    %35 = tpu.matmul %32, %33, %cst_13 {dimension_numbers = #tpu.dot_dimension_numbers<[2], [2], [1], [1], [0, 0, 0, 1, 1, 1], [0], [0]>} : vector<4x8x8xbf16>, vector<4x8x8xbf16>, vector<4x8x8xf32> -> vector<4x8x8xf32>
    "tpu.trace_stop"() : () -> ()
    %cst_14 = arith.constant dense<0xFF800000> : vector<4x8xf32>
    %36 = vector.multi_reduction <maximumf>, %35, %cst_14 [2] : vector<4x8x8xf32> to vector<4x8xf32>
    %37 = vector.shape_cast %36 : vector<4x8xf32> to vector<4x8x1xf32>
    %38 = vector.broadcast %37 : vector<4x8x1xf32> to vector<4x8x8xf32>
    %39 = arith.subf %35, %38 : vector<4x8x8xf32>
    %40 = math.exp %39 : vector<4x8x8xf32>
    %cst_15 = arith.constant dense<0.000000e+00> : vector<4x8xf32>
    %41 = vector.multi_reduction <add>, %40, %cst_15 [2] : vector<4x8x8xf32> to vector<4x8xf32>
    %42 = vector.shape_cast %41 : vector<4x8xf32> to vector<4x8x1xf32>
    %43 = tpu.reciprocal %42 {approx = true} : vector<4x8x1xf32> -> vector<4x8x1xf32>
    %44 = vector.broadcast %43 : vector<4x8x1xf32> to vector<4x8x8xf32>
    %45 = arith.mulf %40, %44 : vector<4x8x8xf32>
    %46 = arith.truncf %45 : vector<4x8x8xf32> to vector<4x8x8xbf16>
    "tpu.trace_start"() <{level = 10 : i32, message = "bqk,bkd->bqd"}> : () -> ()
    %cst_16 = arith.constant dense<0.000000e+00> : vector<4x8x8xf32>
    %47 = tpu.matmul %46, %34, %cst_16 {dimension_numbers = #tpu.dot_dimension_numbers<[2], [1], [1], [2], [0, 0, 0, 1, 1, 2], [0], [0]>} : vector<4x8x8xbf16>, vector<4x8x8xbf16>, vector<4x8x8xf32> -> vector<4x8x8xf32>
    "tpu.trace_stop"() : () -> ()
    %48 = arith.truncf %47 : vector<4x8x8xf32> to vector<4x8x8xbf16>
    %49 = tpu.transpose %48, [1, 0, 2] : vector<4x8x8xbf16> -> vector<8x4x8xbf16>
    %50 = vector.shape_cast %49 : vector<8x4x8xbf16> to vector<8x32xbf16>
    %c0_17 = arith.constant 0 : index
    %c0_18 = arith.constant 0 : index
    %51 = vector.load %arg5[%c0_17, %c0_18] : memref<32x32xbf16, #tpu.memory_space<vmem>>, vector<32x32xbf16>
    %cst_19 = arith.constant dense<0.000000e+00> : vector<8x32xf32>
    %52 = tpu.matmul %50, %51, %cst_19 {dimension_numbers = #tpu.dot_dimension_numbers<[1], [0], [0], [1], [0, 0, 1, 1], [], []>} : vector<8x32xbf16>, vector<32x32xbf16>, vector<8x32xf32> -> vector<8x32xf32>
    %c0_20 = arith.constant 0 : index
    %c0_21 = arith.constant 0 : index
    %53 = vector.load %arg6[%c0_20, %c0_21] : memref<1x32xf32, #tpu.memory_space<vmem>>, vector<1x32xf32>
    %54 = vector.broadcast %53 : vector<1x32xf32> to vector<8x32xf32>
    %55 = arith.addf %52, %54 : vector<8x32xf32>
    %56 = arith.addf %1, %55 : vector<8x32xf32>
    %c0_22 = arith.constant 0 : index
    %c0_23 = arith.constant 0 : index
    %57 = vector.load %arg7[%c0_22, %c0_23] : memref<1x32xf32, #tpu.memory_space<vmem>>, vector<1x32xf32>
    %c0_24 = arith.constant 0 : index
    %c0_25 = arith.constant 0 : index
    %58 = vector.load %arg8[%c0_24, %c0_25] : memref<1x32xf32, #tpu.memory_space<vmem>>, vector<1x32xf32>
    %cst_26 = arith.constant dense<0.000000e+00> : vector<8xf32>
    %59 = vector.multi_reduction <add>, %56, %cst_26 [1] : vector<8x32xf32> to vector<8xf32>
    %60 = vector.shape_cast %59 : vector<8xf32> to vector<8x1xf32>
    %cst_27 = arith.constant 3.200000e+01 : f32
    %61 = vector.broadcast %cst_27 : f32 to vector<8x1xf32>
    %62 = arith.divf %60, %61 : vector<8x1xf32>
    %63 = arith.mulf %56, %56 : vector<8x32xf32>
    %cst_28 = arith.constant dense<0.000000e+00> : vector<8xf32>
    %64 = vector.multi_reduction <add>, %63, %cst_28 [1] : vector<8x32xf32> to vector<8xf32>
    %65 = vector.shape_cast %64 : vector<8xf32> to vector<8x1xf32>
    %cst_29 = arith.constant 3.200000e+01 : f32
    %66 = vector.broadcast %cst_29 : f32 to vector<8x1xf32>
    %67 = arith.divf %65, %66 : vector<8x1xf32>
    %68 = arith.mulf %62, %62 : vector<8x1xf32>
    %69 = arith.subf %67, %68 : vector<8x1xf32>
    %70 = vector.broadcast %62 : vector<8x1xf32> to vector<8x32xf32>
    %71 = arith.subf %56, %70 : vector<8x32xf32>
    %cst_30 = arith.constant 9.99999974E-6 : f32
    %72 = vector.broadcast %cst_30 : f32 to vector<8x1xf32>
    %73 = arith.addf %69, %72 : vector<8x1xf32>
    %74 = math.rsqrt %73 : vector<8x1xf32>
    %75 = vector.broadcast %74 : vector<8x1xf32> to vector<8x32xf32>
    %76 = arith.mulf %71, %75 : vector<8x32xf32>
    %77 = vector.broadcast %57 : vector<1x32xf32> to vector<8x32xf32>
    %78 = arith.mulf %76, %77 : vector<8x32xf32>
    %79 = vector.broadcast %58 : vector<1x32xf32> to vector<8x32xf32>
    %80 = arith.addf %78, %79 : vector<8x32xf32>
    %81 = arith.truncf %80 : vector<8x32xf32> to vector<8x32xbf16>
    %c0_31 = arith.constant 0 : index
    %c0_32 = arith.constant 0 : index
    %82 = vector.load %arg9[%c0_31, %c0_32] : memref<32x128xbf16, #tpu.memory_space<vmem>>, vector<32x128xbf16>
    %cst_33 = arith.constant dense<0.000000e+00> : vector<8x128xf32>
    %83 = tpu.matmul %81, %82, %cst_33 {dimension_numbers = #tpu.dot_dimension_numbers<[1], [0], [0], [1], [0, 0, 1, 1], [], []>} : vector<8x32xbf16>, vector<32x128xbf16>, vector<8x128xf32> -> vector<8x128xf32>
    %c0_34 = arith.constant 0 : index
    %c0_35 = arith.constant 0 : index
    %84 = vector.load %arg10[%c0_34, %c0_35] : memref<1x128xf32, #tpu.memory_space<vmem>>, vector<1x128xf32>
    %85 = vector.broadcast %84 : vector<1x128xf32> to vector<8x128xf32>
    %86 = arith.addf %83, %85 : vector<8x128xf32>
    %87 = arith.mulf %86, %86 : vector<8x128xf32>
    %88 = arith.mulf %86, %87 : vector<8x128xf32>
    %cst_36 = arith.constant 4.471500e-02 : f32
    %89 = vector.broadcast %cst_36 : f32 to vector<8x128xf32>
    %90 = arith.mulf %89, %88 : vector<8x128xf32>
    %91 = arith.addf %86, %90 : vector<8x128xf32>
    %cst_37 = arith.constant 0.797884583 : f32
    %92 = vector.broadcast %cst_37 : f32 to vector<8x128xf32>
    %93 = arith.mulf %92, %91 : vector<8x128xf32>
    %94 = math.tanh %93 : vector<8x128xf32>
    %cst_38 = arith.constant 1.000000e+00 : f32
    %95 = vector.broadcast %cst_38 : f32 to vector<8x128xf32>
    %96 = arith.addf %95, %94 : vector<8x128xf32>
    %cst_39 = arith.constant 5.000000e-01 : f32
    %97 = vector.broadcast %cst_39 : f32 to vector<8x128xf32>
    %98 = arith.mulf %97, %96 : vector<8x128xf32>
    %99 = arith.mulf %86, %98 : vector<8x128xf32>
    %100 = arith.truncf %99 : vector<8x128xf32> to vector<8x128xbf16>
    %c0_40 = arith.constant 0 : index
    %c0_41 = arith.constant 0 : index
    %101 = vector.load %arg11[%c0_40, %c0_41] : memref<128x32xbf16, #tpu.memory_space<vmem>>, vector<128x32xbf16>
    %cst_42 = arith.constant dense<0.000000e+00> : vector<8x32xf32>
    %102 = tpu.matmul %100, %101, %cst_42 {dimension_numbers = #tpu.dot_dimension_numbers<[1], [0], [0], [1], [0, 0, 1, 1], [], []>} : vector<8x128xbf16>, vector<128x32xbf16>, vector<8x32xf32> -> vector<8x32xf32>
    %c0_43 = arith.constant 0 : index
    %c0_44 = arith.constant 0 : index
    %103 = vector.load %arg12[%c0_43, %c0_44] : memref<1x32xf32, #tpu.memory_space<vmem>>, vector<1x32xf32>
    %104 = vector.broadcast %103 : vector<1x32xf32> to vector<8x32xf32>
    %105 = arith.addf %102, %104 : vector<8x32xf32>
    %106 = arith.addf %56, %105 : vector<8x32xf32>
    %107 = vector.shape_cast %106 : vector<8x32xf32> to vector<1x8x32xf32>
    %c0_45 = arith.constant 0 : index
    %c0_46 = arith.constant 0 : index
    %c0_47 = arith.constant 0 : index
    %108 = vector.load %arg13[%c0_45, %c0_46, %c0_47] : memref<1x8x32xf32, #tpu.memory_space<vmem>>, vector<1x8x32xf32>
    tpu.vector_store %arg13[%c0_45, %c0_46, %c0_47], %107 {strides = array<i32>} : memref<1x8x32xf32, #tpu.memory_space<vmem>>, vector<1x8x32xf32>,
    return
  }
  func.func @transform_0(%arg0: i32) -> (i32, i32, i32) {
    %c0_i32 = arith.constant 0 : i32
    %c0_i32_0 = arith.constant 0 : i32
    %c0_i32_1 = arith.constant 0 : i32
    return %arg0, %c0_i32, %c0_i32_0 : i32, i32, i32
  }
  func.func @transform_1(%arg0: i32) -> (i32, i32) {
    %c0_i32 = arith.constant 0 : i32
    %c0_i32_0 = arith.constant 0 : i32
    %c0_i32_1 = arith.constant 0 : i32
    return %c0_i32, %c0_i32_0 : i32, i32
  }
  func.func @transform_2(%arg0: i32) -> (i32, i32) {
    %c0_i32 = arith.constant 0 : i32
    %c0_i32_0 = arith.constant 0 : i32
    %c0_i32_1 = arith.constant 0 : i32
    return %c0_i32, %c0_i32_0 : i32, i32
  }
  func.func @transform_3(%arg0: i32) -> (i32, i32) {
    %c0_i32 = arith.constant 0 : i32
    %c0_i32_0 = arith.constant 0 : i32
    %c0_i32_1 = arith.constant 0 : i32
    return %c0_i32, %c0_i32_0 : i32, i32
  }
  func.func @transform_4(%arg0: i32) -> (i32, i32) {
    %c0_i32 = arith.constant 0 : i32
    %c0_i32_0 = arith.constant 0 : i32
    %c0_i32_1 = arith.constant 0 : i32
    return %c0_i32, %c0_i32_0 : i32, i32
  }
  func.func @transform_5(%arg0: i32) -> (i32, i32) {
    %c0_i32 = arith.constant 0 : i32
    %c0_i32_0 = arith.constant 0 : i32
    %c0_i32_1 = arith.constant 0 : i32
    return %c0_i32, %c0_i32_0 : i32, i32
  }
  func.func @transform_6(%arg0: i32) -> (i32, i32) {
    %c0_i32 = arith.constant 0 : i32
    %c0_i32_0 = arith.constant 0 : i32
    %c0_i32_1 = arith.constant 0 : i32
    return %c0_i32, %c0_i32_0 : i32, i32
  }
  func.func @transform_7(%arg0: i32) -> (i32, i32) {
    %c0_i32 = arith.constant 0 : i32
    %c0_i32_0 = arith.constant 0 : i32
    %c0_i32_1 = arith.constant 0 : i32
    return %c0_i32, %c0_i32_0 : i32, i32
  }
  func.func @transform_8(%arg0: i32) -> (i32, i32) {
    %c0_i32 = arith.constant 0 : i32
    %c0_i32_0 = arith.constant 0 : i32
    %c0_i32_1 = arith.constant 0 : i32
    return %c0_i32, %c0_i32_0 : i32, i32
  }
  func.func @transform_9(%arg0: i32) -> (i32, i32) {
    %c0_i32 = arith.constant 0 : i32
    %c0_i32_0 = arith.constant 0 : i32
    %c0_i32_1 = arith.constant 0 : i32
    return %c0_i32, %c0_i32_0 : i32, i32
  }
  func.func @transform_10(%arg0: i32) -> (i32, i32) {
    %c0_i32 = arith.constant 0 : i32
    %c0_i32_0 = arith.constant 0 : i32
    %c0_i32_1 = arith.constant 0 : i32
    return %c0_i32, %c0_i32_0 : i32, i32
  }
  func.func @transform_11(%arg0: i32) -> (i32, i32) {
    %c0_i32 = arith.constant 0 : i32
    %c0_i32_0 = arith.constant 0 : i32
    %c0_i32_1 = arith.constant 0 : i32
    return %c0_i32, %c0_i32_0 : i32, i32
  }
  func.func @transform_12(%arg0: i32) -> (i32, i32, i32) {
    %c0_i32 = arith.constant 0 : i32
    %c0_i32_0 = arith.constant 0 : i32
    %c0_i32_1 = arith.constant 0 : i32
    return %arg0, %c0_i32, %c0_i32_0 : i32, i32, i32
  }
}

module attributes {stable_mosaic.version = 11 : i64} {
  func.func @patch_merging_kernel(%arg0: i32, %arg1: memref<1x4x64xf32, #tpu.memory_space<vmem>>, %arg2: memref<1x64xf32, #tpu.memory_space<vmem>>, %arg3: memref<1x64xf32, #tpu.memory_space<vmem>>, %arg4: memref<64x64xbf16, #tpu.memory_space<vmem>>, %arg5: memref<1x4x64xf32, #tpu.memory_space<vmem>>) attributes {dimension_semantics = [#tpu.dimension_semantics<parallel>], iteration_bounds = array<i64: 2>, scalar_prefetch = 0 : i64, scratch_operands = 0 : i64, tpu.core_type = #tpu.core_type<tc>, window_params = [{transform_indices = @transform_0, window_bounds = array<i64: 1, 4, 64>}, {pipeline_mode = #tpu.pipeline_mode<synchronous>, transform_indices = @transform_1, window_bounds = array<i64: 1, 64>}, {pipeline_mode = #tpu.pipeline_mode<synchronous>, transform_indices = @transform_2, window_bounds = array<i64: 1, 64>}, {pipeline_mode = #tpu.pipeline_mode<synchronous>, transform_indices = @transform_3, window_bounds = array<i64: 64, 64>}, {transform_indices = @transform_4, window_bounds = array<i64: 1, 4, 64>}]} {
    %c0 = arith.constant 0 : index
    %c0_0 = arith.constant 0 : index
    %c0_1 = arith.constant 0 : index
    %0 = vector.load %arg1[%c0, %c0_0, %c0_1] : memref<1x4x64xf32, #tpu.memory_space<vmem>>, vector<1x4x64xf32>
    %1 = vector.shape_cast %0 : vector<1x4x64xf32> to vector<4x64xf32>
    %c0_2 = arith.constant 0 : index
    %c0_3 = arith.constant 0 : index
    %2 = vector.load %arg2[%c0_2, %c0_3] : memref<1x64xf32, #tpu.memory_space<vmem>>, vector<1x64xf32>
    %c0_4 = arith.constant 0 : index
    %c0_5 = arith.constant 0 : index
    %3 = vector.load %arg3[%c0_4, %c0_5] : memref<1x64xf32, #tpu.memory_space<vmem>>, vector<1x64xf32>
    %cst = arith.constant dense<0.000000e+00> : vector<4xf32>
    %4 = vector.multi_reduction <add>, %1, %cst [1] : vector<4x64xf32> to vector<4xf32>
    %5 = vector.shape_cast %4 : vector<4xf32> to vector<4x1xf32>
    %cst_6 = arith.constant 6.400000e+01 : f32
    %6 = vector.broadcast %cst_6 : f32 to vector<4x1xf32>
    %7 = arith.divf %5, %6 : vector<4x1xf32>
    %8 = arith.mulf %1, %1 : vector<4x64xf32>
    %cst_7 = arith.constant dense<0.000000e+00> : vector<4xf32>
    %9 = vector.multi_reduction <add>, %8, %cst_7 [1] : vector<4x64xf32> to vector<4xf32>
    %10 = vector.shape_cast %9 : vector<4xf32> to vector<4x1xf32>
    %cst_8 = arith.constant 6.400000e+01 : f32
    %11 = vector.broadcast %cst_8 : f32 to vector<4x1xf32>
    %12 = arith.divf %10, %11 : vector<4x1xf32>
    %13 = arith.mulf %7, %7 : vector<4x1xf32>
    %14 = arith.subf %12, %13 : vector<4x1xf32>
    %15 = vector.broadcast %7 : vector<4x1xf32> to vector<4x64xf32>
    %16 = arith.subf %1, %15 : vector<4x64xf32>
    %cst_9 = arith.constant 9.99999974E-6 : f32
    %17 = vector.broadcast %cst_9 : f32 to vector<4x1xf32>
    %18 = arith.addf %14, %17 : vector<4x1xf32>
    %19 = math.rsqrt %18 : vector<4x1xf32>
    %20 = vector.broadcast %19 : vector<4x1xf32> to vector<4x64xf32>
    %21 = arith.mulf %16, %20 : vector<4x64xf32>
    %22 = vector.broadcast %2 : vector<1x64xf32> to vector<4x64xf32>
    %23 = arith.mulf %21, %22 : vector<4x64xf32>
    %24 = vector.broadcast %3 : vector<1x64xf32> to vector<4x64xf32>
    %25 = arith.addf %23, %24 : vector<4x64xf32>
    %26 = arith.truncf %25 : vector<4x64xf32> to vector<4x64xbf16>
    %c0_10 = arith.constant 0 : index
    %c0_11 = arith.constant 0 : index
    %27 = vector.load %arg4[%c0_10, %c0_11] : memref<64x64xbf16, #tpu.memory_space<vmem>>, vector<64x64xbf16>
    %cst_12 = arith.constant dense<0.000000e+00> : vector<4x64xf32>
    %28 = tpu.matmul %26, %27, %cst_12 {dimension_numbers = #tpu.dot_dimension_numbers<[1], [0], [0], [1], [0, 0, 1, 1], [], []>} : vector<4x64xbf16>, vector<64x64xbf16>, vector<4x64xf32> -> vector<4x64xf32>
    %29 = vector.shape_cast %28 : vector<4x64xf32> to vector<1x4x64xf32>
    %c0_13 = arith.constant 0 : index
    %c0_14 = arith.constant 0 : index
    %c0_15 = arith.constant 0 : index
    %30 = vector.load %arg5[%c0_13, %c0_14, %c0_15] : memref<1x4x64xf32, #tpu.memory_space<vmem>>, vector<1x4x64xf32>
    tpu.vector_store %arg5[%c0_13, %c0_14, %c0_15], %29 {strides = array<i32>} : memref<1x4x64xf32, #tpu.memory_space<vmem>>, vector<1x4x64xf32>,
    return
  }
  func.func @transform_0(%arg0: i32) -> (i32, i32, i32) {
    %c0_i32 = arith.constant 0 : i32
    %c0_i32_0 = arith.constant 0 : i32
    %c0_i32_1 = arith.constant 0 : i32
    return %arg0, %c0_i32, %c0_i32_0 : i32, i32, i32
  }
  func.func @transform_1(%arg0: i32) -> (i32, i32) {
    %c0_i32 = arith.constant 0 : i32
    %c0_i32_0 = arith.constant 0 : i32
    %c0_i32_1 = arith.constant 0 : i32
    return %c0_i32, %c0_i32_0 : i32, i32
  }
  func.func @transform_2(%arg0: i32) -> (i32, i32) {
    %c0_i32 = arith.constant 0 : i32
    %c0_i32_0 = arith.constant 0 : i32
    %c0_i32_1 = arith.constant 0 : i32
    return %c0_i32, %c0_i32_0 : i32, i32
  }
  func.func @transform_3(%arg0: i32) -> (i32, i32) {
    %c0_i32 = arith.constant 0 : i32
    %c0_i32_0 = arith.constant 0 : i32
    %c0_i32_1 = arith.constant 0 : i32
    return %c0_i32, %c0_i32_0 : i32, i32
  }
  func.func @transform_4(%arg0: i32) -> (i32, i32, i32) {
    %c0_i32 = arith.constant 0 : i32
    %c0_i32_0 = arith.constant 0 : i32
    %c0_i32_1 = arith.constant 0 : i32
    return %arg0, %c0_i32, %c0_i32_0 : i32, i32, i32
  }
}

module attributes {stable_mosaic.version = 11 : i64} {
  func.func @vit_block_kernel(%arg0: i32, %arg1: memref<1x8x32xf32, #tpu.memory_space<vmem>>, %arg2: memref<1x32xf32, #tpu.memory_space<vmem>>, %arg3: memref<1x32xf32, #tpu.memory_space<vmem>>, %arg4: memref<32x96xbf16, #tpu.memory_space<vmem>>, %arg5: memref<32x32xbf16, #tpu.memory_space<vmem>>, %arg6: memref<1x32xf32, #tpu.memory_space<vmem>>, %arg7: memref<1x32xf32, #tpu.memory_space<vmem>>, %arg8: memref<1x32xf32, #tpu.memory_space<vmem>>, %arg9: memref<32x128xbf16, #tpu.memory_space<vmem>>, %arg10: memref<1x128xf32, #tpu.memory_space<vmem>>, %arg11: memref<128x32xbf16, #tpu.memory_space<vmem>>, %arg12: memref<1x32xf32, #tpu.memory_space<vmem>>, %arg13: memref<1x8x32xf32, #tpu.memory_space<vmem>>) attributes {dimension_semantics = [#tpu.dimension_semantics<parallel>], iteration_bounds = array<i64: 2>, scalar_prefetch = 0 : i64, scratch_operands = 0 : i64, tpu.core_type = #tpu.core_type<tc>, window_params = [{transform_indices = @transform_0, window_bounds = array<i64: 1, 8, 32>}, {pipeline_mode = #tpu.pipeline_mode<synchronous>, transform_indices = @transform_1, window_bounds = array<i64: 1, 32>}, {pipeline_mode = #tpu.pipeline_mode<synchronous>, transform_indices = @transform_2, window_bounds = array<i64: 1, 32>}, {pipeline_mode = #tpu.pipeline_mode<synchronous>, transform_indices = @transform_3, window_bounds = array<i64: 32, 96>}, {pipeline_mode = #tpu.pipeline_mode<synchronous>, transform_indices = @transform_4, window_bounds = array<i64: 32, 32>}, {pipeline_mode = #tpu.pipeline_mode<synchronous>, transform_indices = @transform_5, window_bounds = array<i64: 1, 32>}, {pipeline_mode = #tpu.pipeline_mode<synchronous>, transform_indices = @transform_6, window_bounds = array<i64: 1, 32>}, {pipeline_mode = #tpu.pipeline_mode<synchronous>, transform_indices = @transform_7, window_bounds = array<i64: 1, 32>}, {pipeline_mode = #tpu.pipeline_mode<synchronous>, transform_indices = @transform_8, window_bounds = array<i64: 32, 128>}, {pipeline_mode = #tpu.pipeline_mode<synchronous>, transform_indices = @transform_9, window_bounds = array<i64: 1, 128>}, {pipeline_mode = #tpu.pipeline_mode<synchronous>, transform_indices = @transform_10, window_bounds = array<i64: 128, 32>}, {pipeline_mode = #tpu.pipeline_mode<synchronous>, transform_indices = @transform_11, window_bounds = array<i64: 1, 32>}, {transform_indices = @transform_12, window_bounds = array<i64: 1, 8, 32>}]} {
    %c0 = arith.constant 0 : index
    %c0_0 = arith.constant 0 : index
    %c0_1 = arith.constant 0 : index
    %0 = vector.load %arg1[%c0, %c0_0, %c0_1] : memref<1x8x32xf32, #tpu.memory_space<vmem>>, vector<1x8x32xf32>
    %1 = vector.shape_cast %0 : vector<1x8x32xf32> to vector<8x32xf32>
    %c0_2 = arith.constant 0 : index
    %c0_3 = arith.constant 0 : index
    %2 = vector.load %arg2[%c0_2, %c0_3] : memref<1x32xf32, #tpu.memory_space<vmem>>, vector<1x32xf32>
    %c0_4 = arith.constant 0 : index
    %c0_5 = arith.constant 0 : index
    %3 = vector.load %arg3[%c0_4, %c0_5] : memref<1x32xf32, #tpu.memory_space<vmem>>, vector<1x32xf32>
    %cst = arith.constant dense<0.000000e+00> : vector<8xf32>
    %4 = vector.multi_reduction <add>, %1, %cst [1] : vector<8x32xf32> to vector<8xf32>
    %5 = vector.shape_cast %4 : vector<8xf32> to vector<8x1xf32>
    %cst_6 = arith.constant 3.200000e+01 : f32
    %6 = vector.broadcast %cst_6 : f32 to vector<8x1xf32>
    %7 = arith.divf %5, %6 : vector<8x1xf32>
    %8 = arith.mulf %1, %1 : vector<8x32xf32>
    %cst_7 = arith.constant dense<0.000000e+00> : vector<8xf32>
    %9 = vector.multi_reduction <add>, %8, %cst_7 [1] : vector<8x32xf32> to vector<8xf32>
    %10 = vector.shape_cast %9 : vector<8xf32> to vector<8x1xf32>
    %cst_8 = arith.constant 3.200000e+01 : f32
    %11 = vector.broadcast %cst_8 : f32 to vector<8x1xf32>
    %12 = arith.divf %10, %11 : vector<8x1xf32>
    %13 = arith.mulf %7, %7 : vector<8x1xf32>
    %14 = arith.subf %12, %13 : vector<8x1xf32>
    %15 = vector.broadcast %7 : vector<8x1xf32> to vector<8x32xf32>
    %16 = arith.subf %1, %15 : vector<8x32xf32>
    %cst_9 = arith.constant 9.99999974E-6 : f32
    %17 = vector.broadcast %cst_9 : f32 to vector<8x1xf32>
    %18 = arith.addf %14, %17 : vector<8x1xf32>
    %19 = math.rsqrt %18 : vector<8x1xf32>
    %20 = vector.broadcast %19 : vector<8x1xf32> to vector<8x32xf32>
    %21 = arith.mulf %16, %20 : vector<8x32xf32>
    %22 = vector.broadcast %2 : vector<1x32xf32> to vector<8x32xf32>
    %23 = arith.mulf %21, %22 : vector<8x32xf32>
    %24 = vector.broadcast %3 : vector<1x32xf32> to vector<8x32xf32>
    %25 = arith.addf %23, %24 : vector<8x32xf32>
    %26 = arith.truncf %25 : vector<8x32xf32> to vector<8x32xbf16>
    %c0_10 = arith.constant 0 : index
    %c0_11 = arith.constant 0 : index
    %27 = vector.load %arg4[%c0_10, %c0_11] : memref<32x96xbf16, #tpu.memory_space<vmem>>, vector<32x96xbf16>
    %cst_12 = arith.constant dense<0.000000e+00> : vector<8x96xf32>
    %28 = tpu.matmul %26, %27, %cst_12 {dimension_numbers = #tpu.dot_dimension_numbers<[1], [0], [0], [1], [0, 0, 1, 1], [], []>} : vector<8x32xbf16>, vector<32x96xbf16>, vector<8x96xf32> -> vector<8x96xf32>
    %29 = arith.truncf %28 : vector<8x96xf32> to vector<8x96xbf16>
    %30 = vector.shape_cast %29 : vector<8x96xbf16> to vector<1x8x96xbf16>
    %31 = vector.extract_strided_slice %30 {offsets = [0, 0, 0], sizes = [1, 8, 8], strides = [1, 1, 1]} : vector<1x8x96xbf16> to vector<1x8x8xbf16>
    %32 = vector.extract_strided_slice %30 {offsets = [0, 0, 8], sizes = [1, 8, 8], strides = [1, 1, 1]} : vector<1x8x96xbf16> to vector<1x8x8xbf16>
    %33 = vector.extract_strided_slice %30 {offsets = [0, 0, 16], sizes = [1, 8, 8], strides = [1, 1, 1]} : vector<1x8x96xbf16> to vector<1x8x8xbf16>
    %34 = vector.extract_strided_slice %30 {offsets = [0, 0, 24], sizes = [1, 8, 8], strides = [1, 1, 1]} : vector<1x8x96xbf16> to vector<1x8x8xbf16>
    %35 = tpu.concatenate %31, %32, %33, %34 in 0 : vector<1x8x8xbf16>, vector<1x8x8xbf16>, vector<1x8x8xbf16>, vector<1x8x8xbf16> -> vector<4x8x8xbf16>
    %36 = vector.extract_strided_slice %30 {offsets = [0, 0, 32], sizes = [1, 8, 8], strides = [1, 1, 1]} : vector<1x8x96xbf16> to vector<1x8x8xbf16>
    %37 = vector.extract_strided_slice %30 {offsets = [0, 0, 40], sizes = [1, 8, 8], strides = [1, 1, 1]} : vector<1x8x96xbf16> to vector<1x8x8xbf16>
    %38 = vector.extract_strided_slice %30 {offsets = [0, 0, 48], sizes = [1, 8, 8], strides = [1, 1, 1]} : vector<1x8x96xbf16> to vector<1x8x8xbf16>
    %39 = vector.extract_strided_slice %30 {offsets = [0, 0, 56], sizes = [1, 8, 8], strides = [1, 1, 1]} : vector<1x8x96xbf16> to vector<1x8x8xbf16>
    %40 = tpu.concatenate %36, %37, %38, %39 in 0 : vector<1x8x8xbf16>, vector<1x8x8xbf16>, vector<1x8x8xbf16>, vector<1x8x8xbf16> -> vector<4x8x8xbf16>
    %41 = vector.extract_strided_slice %30 {offsets = [0, 0, 64], sizes = [1, 8, 8], strides = [1, 1, 1]} : vector<1x8x96xbf16> to vector<1x8x8xbf16>
    %42 = vector.extract_strided_slice %30 {offsets = [0, 0, 72], sizes = [1, 8, 8], strides = [1, 1, 1]} : vector<1x8x96xbf16> to vector<1x8x8xbf16>
    %43 = vector.extract_strided_slice %30 {offsets = [0, 0, 80], sizes = [1, 8, 8], strides = [1, 1, 1]} : vector<1x8x96xbf16> to vector<1x8x8xbf16>
    %44 = vector.extract_strided_slice %30 {offsets = [0, 0, 88], sizes = [1, 8, 8], strides = [1, 1, 1]} : vector<1x8x96xbf16> to vector<1x8x8xbf16>
    %45 = tpu.concatenate %41, %42, %43, %44 in 0 : vector<1x8x8xbf16>, vector<1x8x8xbf16>, vector<1x8x8xbf16>, vector<1x8x8xbf16> -> vector<4x8x8xbf16>
    "tpu.trace_start"() <{level = 10 : i32, message = "bqd,bkd->bqk"}> : () -> ()
    %cst_13 = arith.constant dense<0.000000e+00> : vector<4x8x8xf32>
    %46 = tpu.matmul %35, %40, %cst_13 {dimension_numbers = #tpu.dot_dimension_numbers<[2], [2], [1], [1], [0, 0, 0, 1, 1, 1], [0], [0]>} : vector<4x8x8xbf16>, vector<4x8x8xbf16>, vector<4x8x8xf32> -> vector<4x8x8xf32>
    "tpu.trace_stop"() : () -> ()
    %cst_14 = arith.constant dense<0xFF800000> : vector<4x8xf32>
    %47 = vector.multi_reduction <maximumf>, %46, %cst_14 [2] : vector<4x8x8xf32> to vector<4x8xf32>
    %48 = vector.shape_cast %47 : vector<4x8xf32> to vector<4x8x1xf32>
    %49 = vector.broadcast %48 : vector<4x8x1xf32> to vector<4x8x8xf32>
    %50 = arith.subf %46, %49 : vector<4x8x8xf32>
    %51 = math.exp %50 : vector<4x8x8xf32>
    %cst_15 = arith.constant dense<0.000000e+00> : vector<4x8xf32>
    %52 = vector.multi_reduction <add>, %51, %cst_15 [2] : vector<4x8x8xf32> to vector<4x8xf32>
    %53 = vector.shape_cast %52 : vector<4x8xf32> to vector<4x8x1xf32>
    %54 = tpu.reciprocal %53 {approx = true} : vector<4x8x1xf32> -> vector<4x8x1xf32>
    %55 = vector.broadcast %54 : vector<4x8x1xf32> to vector<4x8x8xf32>
    %56 = arith.mulf %51, %55 : vector<4x8x8xf32>
    %57 = arith.truncf %56 : vector<4x8x8xf32> to vector<4x8x8xbf16>
    "tpu.trace_start"() <{level = 10 : i32, message = "bqk,bkd->bqd"}> : () -> ()
    %cst_16 = arith.constant dense<0.000000e+00> : vector<4x8x8xf32>
    %58 = tpu.matmul %57, %45, %cst_16 {dimension_numbers = #tpu.dot_dimension_numbers<[2], [1], [1], [2], [0, 0, 0, 1, 1, 2], [0], [0]>} : vector<4x8x8xbf16>, vector<4x8x8xbf16>, vector<4x8x8xf32> -> vector<4x8x8xf32>
    "tpu.trace_stop"() : () -> ()
    %59 = vector.extract_strided_slice %58 {offsets = [0, 0, 0], sizes = [1, 8, 8], strides = [1, 1, 1]} : vector<4x8x8xf32> to vector<1x8x8xf32>
    %60 = vector.extract_strided_slice %58 {offsets = [1, 0, 0], sizes = [1, 8, 8], strides = [1, 1, 1]} : vector<4x8x8xf32> to vector<1x8x8xf32>
    %61 = vector.extract_strided_slice %58 {offsets = [2, 0, 0], sizes = [1, 8, 8], strides = [1, 1, 1]} : vector<4x8x8xf32> to vector<1x8x8xf32>
    %62 = vector.extract_strided_slice %58 {offsets = [3, 0, 0], sizes = [1, 8, 8], strides = [1, 1, 1]} : vector<4x8x8xf32> to vector<1x8x8xf32>
    %63 = tpu.concatenate %59, %60, %61, %62 in 2 : vector<1x8x8xf32>, vector<1x8x8xf32>, vector<1x8x8xf32>, vector<1x8x8xf32> -> vector<1x8x32xf32>
    %64 = vector.shape_cast %63 : vector<1x8x32xf32> to vector<8x32xf32>
    %65 = arith.truncf %64 : vector<8x32xf32> to vector<8x32xbf16>
    %c0_17 = arith.constant 0 : index
    %c0_18 = arith.constant 0 : index
    %66 = vector.load %arg5[%c0_17, %c0_18] : memref<32x32xbf16, #tpu.memory_space<vmem>>, vector<32x32xbf16>
    %cst_19 = arith.constant dense<0.000000e+00> : vector<8x32xf32>
    %67 = tpu.matmul %65, %66, %cst_19 {dimension_numbers = #tpu.dot_dimension_numbers<[1], [0], [0], [1], [0, 0, 1, 1], [], []>} : vector<8x32xbf16>, vector<32x32xbf16>, vector<8x32xf32> -> vector<8x32xf32>
    %c0_20 = arith.constant 0 : index
    %c0_21 = arith.constant 0 : index
    %68 = vector.load %arg6[%c0_20, %c0_21] : memref<1x32xf32, #tpu.memory_space<vmem>>, vector<1x32xf32>
    %69 = vector.broadcast %68 : vector<1x32xf32> to vector<8x32xf32>
    %70 = arith.addf %67, %69 : vector<8x32xf32>
    %71 = arith.addf %1, %70 : vector<8x32xf32>
    %c0_22 = arith.constant 0 : index
    %c0_23 = arith.constant 0 : index
    %72 = vector.load %arg7[%c0_22, %c0_23] : memref<1x32xf32, #tpu.memory_space<vmem>>, vector<1x32xf32>
    %c0_24 = arith.constant 0 : index
    %c0_25 = arith.constant 0 : index
    %73 = vector.load %arg8[%c0_24, %c0_25] : memref<1x32xf32, #tpu.memory_space<vmem>>, vector<1x32xf32>
    %cst_26 = arith.constant dense<0.000000e+00> : vector<8xf32>
    %74 = vector.multi_reduction <add>, %71, %cst_26 [1] : vector<8x32xf32> to vector<8xf32>
    %75 = vector.shape_cast %74 : vector<8xf32> to vector<8x1xf32>
    %cst_27 = arith.constant 3.200000e+01 : f32
    %76 = vector.broadcast %cst_27 : f32 to vector<8x1xf32>
    %77 = arith.divf %75, %76 : vector<8x1xf32>
    %78 = arith.mulf %71, %71 : vector<8x32xf32>
    %cst_28 = arith.constant dense<0.000000e+00> : vector<8xf32>
    %79 = vector.multi_reduction <add>, %78, %cst_28 [1] : vector<8x32xf32> to vector<8xf32>
    %80 = vector.shape_cast %79 : vector<8xf32> to vector<8x1xf32>
    %cst_29 = arith.constant 3.200000e+01 : f32
    %81 = vector.broadcast %cst_29 : f32 to vector<8x1xf32>
    %82 = arith.divf %80, %81 : vector<8x1xf32>
    %83 = arith.mulf %77, %77 : vector<8x1xf32>
    %84 = arith.subf %82, %83 : vector<8x1xf32>
    %85 = vector.broadcast %77 : vector<8x1xf32> to vector<8x32xf32>
    %86 = arith.subf %71, %85 : vector<8x32xf32>
    %cst_30 = arith.constant 9.99999974E-6 : f32
    %87 = vector.broadcast %cst_30 : f32 to vector<8x1xf32>
    %88 = arith.addf %84, %87 : vector<8x1xf32>
    %89 = math.rsqrt %88 : vector<8x1xf32>
    %90 = vector.broadcast %89 : vector<8x1xf32> to vector<8x32xf32>
    %91 = arith.mulf %86, %90 : vector<8x32xf32>
    %92 = vector.broadcast %72 : vector<1x32xf32> to vector<8x32xf32>
    %93 = arith.mulf %91, %92 : vector<8x32xf32>
    %94 = vector.broadcast %73 : vector<1x32xf32> to vector<8x32xf32>
    %95 = arith.addf %93, %94 : vector<8x32xf32>
    %96 = arith.truncf %95 : vector<8x32xf32> to vector<8x32xbf16>
    %c0_31 = arith.constant 0 : index
    %c0_32 = arith.constant 0 : index
    %97 = vector.load %arg9[%c0_31, %c0_32] : memref<32x128xbf16, #tpu.memory_space<vmem>>, vector<32x128xbf16>
    %cst_33 = arith.constant dense<0.000000e+00> : vector<8x128xf32>
    %98 = tpu.matmul %96, %97, %cst_33 {dimension_numbers = #tpu.dot_dimension_numbers<[1], [0], [0], [1], [0, 0, 1, 1], [], []>} : vector<8x32xbf16>, vector<32x128xbf16>, vector<8x128xf32> -> vector<8x128xf32>
    %c0_34 = arith.constant 0 : index
    %c0_35 = arith.constant 0 : index
    %99 = vector.load %arg10[%c0_34, %c0_35] : memref<1x128xf32, #tpu.memory_space<vmem>>, vector<1x128xf32>
    %100 = vector.broadcast %99 : vector<1x128xf32> to vector<8x128xf32>
    %101 = arith.addf %98, %100 : vector<8x128xf32>
    %102 = arith.mulf %101, %101 : vector<8x128xf32>
    %103 = arith.mulf %101, %102 : vector<8x128xf32>
    %cst_36 = arith.constant 4.471500e-02 : f32
    %104 = vector.broadcast %cst_36 : f32 to vector<8x128xf32>
    %105 = arith.mulf %104, %103 : vector<8x128xf32>
    %106 = arith.addf %101, %105 : vector<8x128xf32>
    %cst_37 = arith.constant 0.797884583 : f32
    %107 = vector.broadcast %cst_37 : f32 to vector<8x128xf32>
    %108 = arith.mulf %107, %106 : vector<8x128xf32>
    %109 = math.tanh %108 : vector<8x128xf32>
    %cst_38 = arith.constant 1.000000e+00 : f32
    %110 = vector.broadcast %cst_38 : f32 to vector<8x128xf32>
    %111 = arith.addf %110, %109 : vector<8x128xf32>
    %cst_39 = arith.constant 5.000000e-01 : f32
    %112 = vector.broadcast %cst_39 : f32 to vector<8x128xf32>
    %113 = arith.mulf %112, %111 : vector<8x128xf32>
    %114 = arith.mulf %101, %113 : vector<8x128xf32>
    %115 = arith.truncf %114 : vector<8x128xf32> to vector<8x128xbf16>
    %c0_40 = arith.constant 0 : index
    %c0_41 = arith.constant 0 : index
    %116 = vector.load %arg11[%c0_40, %c0_41] : memref<128x32xbf16, #tpu.memory_space<vmem>>, vector<128x32xbf16>
    %cst_42 = arith.constant dense<0.000000e+00> : vector<8x32xf32>
    %117 = tpu.matmul %115, %116, %cst_42 {dimension_numbers = #tpu.dot_dimension_numbers<[1], [0], [0], [1], [0, 0, 1, 1], [], []>} : vector<8x128xbf16>, vector<128x32xbf16>, vector<8x32xf32> -> vector<8x32xf32>
    %c0_43 = arith.constant 0 : index
    %c0_44 = arith.constant 0 : index
    %118 = vector.load %arg12[%c0_43, %c0_44] : memref<1x32xf32, #tpu.memory_space<vmem>>, vector<1x32xf32>
    %119 = vector.broadcast %118 : vector<1x32xf32> to vector<8x32xf32>
    %120 = arith.addf %117, %119 : vector<8x32xf32>
    %121 = arith.addf %71, %120 : vector<8x32xf32>
    %122 = vector.shape_cast %121 : vector<8x32xf32> to vector<1x8x32xf32>
    %c0_45 = arith.constant 0 : index
    %c0_46 = arith.constant 0 : index
    %c0_47 = arith.constant 0 : index
    %123 = vector.load %arg13[%c0_45, %c0_46, %c0_47] : memref<1x8x32xf32, #tpu.memory_space<vmem>>, vector<1x8x32xf32>
    tpu.vector_store %arg13[%c0_45, %c0_46, %c0_47], %122 {strides = array<i32>} : memref<1x8x32xf32, #tpu.memory_space<vmem>>, vector<1x8x32xf32>,
    return
  }
  func.func @transform_0(%arg0: i32) -> (i32, i32, i32) {
    %c0_i32 = arith.constant 0 : i32
    %c0_i32_0 = arith.constant 0 : i32
    %c0_i32_1 = arith.constant 0 : i32
    return %arg0, %c0_i32, %c0_i32_0 : i32, i32, i32
  }
  func.func @transform_1(%arg0: i32) -> (i32, i32) {
    %c0_i32 = arith.constant 0 : i32
    %c0_i32_0 = arith.constant 0 : i32
    %c0_i32_1 = arith.constant 0 : i32
    return %c0_i32, %c0_i32_0 : i32, i32
  }
  func.func @transform_2(%arg0: i32) -> (i32, i32) {
    %c0_i32 = arith.constant 0 : i32
    %c0_i32_0 = arith.constant 0 : i32
    %c0_i32_1 = arith.constant 0 : i32
    return %c0_i32, %c0_i32_0 : i32, i32
  }
  func.func @transform_3(%arg0: i32) -> (i32, i32) {
    %c0_i32 = arith.constant 0 : i32
    %c0_i32_0 = arith.constant 0 : i32
    %c0_i32_1 = arith.constant 0 : i32
    return %c0_i32, %c0_i32_0 : i32, i32
  }
  func.func @transform_4(%arg0: i32) -> (i32, i32) {
    %c0_i32 = arith.constant 0 : i32
    %c0_i32_0 = arith.constant 0 : i32
    %c0_i32_1 = arith.constant 0 : i32
    return %c0_i32, %c0_i32_0 : i32, i32
  }
  func.func @transform_5(%arg0: i32) -> (i32, i32) {
    %c0_i32 = arith.constant 0 : i32
    %c0_i32_0 = arith.constant 0 : i32
    %c0_i32_1 = arith.constant 0 : i32
    return %c0_i32, %c0_i32_0 : i32, i32
  }
  func.func @transform_6(%arg0: i32) -> (i32, i32) {
    %c0_i32 = arith.constant 0 : i32
    %c0_i32_0 = arith.constant 0 : i32
    %c0_i32_1 = arith.constant 0 : i32
    return %c0_i32, %c0_i32_0 : i32, i32
  }
  func.func @transform_7(%arg0: i32) -> (i32, i32) {
    %c0_i32 = arith.constant 0 : i32
    %c0_i32_0 = arith.constant 0 : i32
    %c0_i32_1 = arith.constant 0 : i32
    return %c0_i32, %c0_i32_0 : i32, i32
  }
  func.func @transform_8(%arg0: i32) -> (i32, i32) {
    %c0_i32 = arith.constant 0 : i32
    %c0_i32_0 = arith.constant 0 : i32
    %c0_i32_1 = arith.constant 0 : i32
    return %c0_i32, %c0_i32_0 : i32, i32
  }
  func.func @transform_9(%arg0: i32) -> (i32, i32) {
    %c0_i32 = arith.constant 0 : i32
    %c0_i32_0 = arith.constant 0 : i32
    %c0_i32_1 = arith.constant 0 : i32
    return %c0_i32, %c0_i32_0 : i32, i32
  }
  func.func @transform_10(%arg0: i32) -> (i32, i32) {
    %c0_i32 = arith.constant 0 : i32
    %c0_i32_0 = arith.constant 0 : i32
    %c0_i32_1 = arith.constant 0 : i32
    return %c0_i32, %c0_i32_0 : i32, i32
  }
  func.func @transform_11(%arg0: i32) -> (i32, i32) {
    %c0_i32 = arith.constant 0 : i32
    %c0_i32_0 = arith.constant 0 : i32
    %c0_i32_1 = arith.constant 0 : i32
    return %c0_i32, %c0_i32_0 : i32, i32
  }
  func.func @transform_12(%arg0: i32) -> (i32, i32, i32) {
    %c0_i32 = arith.constant 0 : i32
    %c0_i32_0 = arith.constant 0 : i32
    %c0_i32_1 = arith.constant 0 : i32
    return %arg0, %c0_i32, %c0_i32_0 : i32, i32, i32
  }
}

module attributes {stable_mosaic.version = 11 : i64} {
  func.func @patch_merging_kernel(%arg0: i32, %arg1: memref<1x4x64xf32, #tpu.memory_space<vmem>>, %arg2: memref<1x64xf32, #tpu.memory_space<vmem>>, %arg3: memref<1x64xf32, #tpu.memory_space<vmem>>, %arg4: memref<64x64xbf16, #tpu.memory_space<vmem>>, %arg5: memref<1x4x64xf32, #tpu.memory_space<vmem>>) attributes {dimension_semantics = [#tpu.dimension_semantics<parallel>], iteration_bounds = array<i64: 2>, scalar_prefetch = 0 : i64, scratch_operands = 0 : i64, tpu.core_type = #tpu.core_type<tc>, window_params = [{transform_indices = @transform_0, window_bounds = array<i64: 1, 4, 64>}, {pipeline_mode = #tpu.pipeline_mode<synchronous>, transform_indices = @transform_1, window_bounds = array<i64: 1, 64>}, {pipeline_mode = #tpu.pipeline_mode<synchronous>, transform_indices = @transform_2, window_bounds = array<i64: 1, 64>}, {pipeline_mode = #tpu.pipeline_mode<synchronous>, transform_indices = @transform_3, window_bounds = array<i64: 64, 64>}, {transform_indices = @transform_4, window_bounds = array<i64: 1, 4, 64>}]} {
    %c0 = arith.constant 0 : index
    %c0_0 = arith.constant 0 : index
    %c0_1 = arith.constant 0 : index
    %0 = vector.load %arg1[%c0, %c0_0, %c0_1] : memref<1x4x64xf32, #tpu.memory_space<vmem>>, vector<1x4x64xf32>
    %1 = vector.shape_cast %0 : vector<1x4x64xf32> to vector<4x64xf32>
    %c0_2 = arith.constant 0 : index
    %c0_3 = arith.constant 0 : index
    %2 = vector.load %arg2[%c0_2, %c0_3] : memref<1x64xf32, #tpu.memory_space<vmem>>, vector<1x64xf32>
    %c0_4 = arith.constant 0 : index
    %c0_5 = arith.constant 0 : index
    %3 = vector.load %arg3[%c0_4, %c0_5] : memref<1x64xf32, #tpu.memory_space<vmem>>, vector<1x64xf32>
    %cst = arith.constant dense<0.000000e+00> : vector<4xf32>
    %4 = vector.multi_reduction <add>, %1, %cst [1] : vector<4x64xf32> to vector<4xf32>
    %5 = vector.shape_cast %4 : vector<4xf32> to vector<4x1xf32>
    %cst_6 = arith.constant 6.400000e+01 : f32
    %6 = vector.broadcast %cst_6 : f32 to vector<4x1xf32>
    %7 = arith.divf %5, %6 : vector<4x1xf32>
    %8 = arith.mulf %1, %1 : vector<4x64xf32>
    %cst_7 = arith.constant dense<0.000000e+00> : vector<4xf32>
    %9 = vector.multi_reduction <add>, %8, %cst_7 [1] : vector<4x64xf32> to vector<4xf32>
    %10 = vector.shape_cast %9 : vector<4xf32> to vector<4x1xf32>
    %cst_8 = arith.constant 6.400000e+01 : f32
    %11 = vector.broadcast %cst_8 : f32 to vector<4x1xf32>
    %12 = arith.divf %10, %11 : vector<4x1xf32>
    %13 = arith.mulf %7, %7 : vector<4x1xf32>
    %14 = arith.subf %12, %13 : vector<4x1xf32>
    %15 = vector.broadcast %7 : vector<4x1xf32> to vector<4x64xf32>
    %16 = arith.subf %1, %15 : vector<4x64xf32>
    %cst_9 = arith.constant 9.99999974E-6 : f32
    %17 = vector.broadcast %cst_9 : f32 to vector<4x1xf32>
    %18 = arith.addf %14, %17 : vector<4x1xf32>
    %19 = math.rsqrt %18 : vector<4x1xf32>
    %20 = vector.broadcast %19 : vector<4x1xf32> to vector<4x64xf32>
    %21 = arith.mulf %16, %20 : vector<4x64xf32>
    %22 = vector.broadcast %2 : vector<1x64xf32> to vector<4x64xf32>
    %23 = arith.mulf %21, %22 : vector<4x64xf32>
    %24 = vector.broadcast %3 : vector<1x64xf32> to vector<4x64xf32>
    %25 = arith.addf %23, %24 : vector<4x64xf32>
    %26 = arith.truncf %25 : vector<4x64xf32> to vector<4x64xbf16>
    %c0_10 = arith.constant 0 : index
    %c0_11 = arith.constant 0 : index
    %27 = vector.load %arg4[%c0_10, %c0_11] : memref<64x64xbf16, #tpu.memory_space<vmem>>, vector<64x64xbf16>
    %cst_12 = arith.constant dense<0.000000e+00> : vector<4x64xf32>
    %28 = tpu.matmul %26, %27, %cst_12 {dimension_numbers = #tpu.dot_dimension_numbers<[1], [0], [0], [1], [0, 0, 1, 1], [], []>} : vector<4x64xbf16>, vector<64x64xbf16>, vector<4x64xf32> -> vector<4x64xf32>
    %29 = vector.shape_cast %28 : vector<4x64xf32> to vector<1x4x64xf32>
    %c0_13 = arith.constant 0 : index
    %c0_14 = arith.constant 0 : index
    %c0_15 = arith.constant 0 : index
    %30 = vector.load %arg5[%c0_13, %c0_14, %c0_15] : memref<1x4x64xf32, #tpu.memory_space<vmem>>, vector<1x4x64xf32>
    tpu.vector_store %arg5[%c0_13, %c0_14, %c0_15], %29 {strides = array<i32>} : memref<1x4x64xf32, #tpu.memory_space<vmem>>, vector<1x4x64xf32>,
    return
  }
  func.func @transform_0(%arg0: i32) -> (i32, i32, i32) {
    %c0_i32 = arith.constant 0 : i32
    %c0_i32_0 = arith.constant 0 : i32
    %c0_i32_1 = arith.constant 0 : i32
    return %arg0, %c0_i32, %c0_i32_0 : i32, i32, i32
  }
  func.func @transform_1(%arg0: i32) -> (i32, i32) {
    %c0_i32 = arith.constant 0 : i32
    %c0_i32_0 = arith.constant 0 : i32
    %c0_i32_1 = arith.constant 0 : i32
    return %c0_i32, %c0_i32_0 : i32, i32
  }
  func.func @transform_2(%arg0: i32) -> (i32, i32) {
    %c0_i32 = arith.constant 0 : i32
    %c0_i32_0 = arith.constant 0 : i32
    %c0_i32_1 = arith.constant 0 : i32
    return %c0_i32, %c0_i32_0 : i32, i32
  }
  func.func @transform_3(%arg0: i32) -> (i32, i32) {
    %c0_i32 = arith.constant 0 : i32
    %c0_i32_0 = arith.constant 0 : i32
    %c0_i32_1 = arith.constant 0 : i32
    return %c0_i32, %c0_i32_0 : i32, i32
  }
  func.func @transform_4(%arg0: i32) -> (i32, i32, i32) {
    %c0_i32 = arith.constant 0 : i32
    %c0_i32_0 = arith.constant 0 : i32
    %c0_i32_1 = arith.constant 0 : i32
    return %arg0, %c0_i32, %c0_i32_0 : i32, i32, i32
  }
}

module attributes {stable_mosaic.version = 11 : i64} {
  func.func @vit_block_kernel(%arg0: i32, %arg1: memref<1x8x32xf32, #tpu.memory_space<vmem>>, %arg2: memref<1x32xf32, #tpu.memory_space<vmem>>, %arg3: memref<1x32xf32, #tpu.memory_space<vmem>>, %arg4: memref<32x96xbf16, #tpu.memory_space<vmem>>, %arg5: memref<32x32xbf16, #tpu.memory_space<vmem>>, %arg6: memref<1x32xf32, #tpu.memory_space<vmem>>, %arg7: memref<1x32xf32, #tpu.memory_space<vmem>>, %arg8: memref<1x32xf32, #tpu.memory_space<vmem>>, %arg9: memref<32x128xbf16, #tpu.memory_space<vmem>>, %arg10: memref<1x128xf32, #tpu.memory_space<vmem>>, %arg11: memref<128x32xbf16, #tpu.memory_space<vmem>>, %arg12: memref<1x32xf32, #tpu.memory_space<vmem>>, %arg13: memref<1x8x32xf32, #tpu.memory_space<vmem>>) attributes {dimension_semantics = [#tpu.dimension_semantics<parallel>], iteration_bounds = array<i64: 2>, scalar_prefetch = 0 : i64, scratch_operands = 0 : i64, tpu.core_type = #tpu.core_type<tc>, window_params = [{transform_indices = @transform_0, window_bounds = array<i64: 1, 8, 32>}, {pipeline_mode = #tpu.pipeline_mode<synchronous>, transform_indices = @transform_1, window_bounds = array<i64: 1, 32>}, {pipeline_mode = #tpu.pipeline_mode<synchronous>, transform_indices = @transform_2, window_bounds = array<i64: 1, 32>}, {pipeline_mode = #tpu.pipeline_mode<synchronous>, transform_indices = @transform_3, window_bounds = array<i64: 32, 96>}, {pipeline_mode = #tpu.pipeline_mode<synchronous>, transform_indices = @transform_4, window_bounds = array<i64: 32, 32>}, {pipeline_mode = #tpu.pipeline_mode<synchronous>, transform_indices = @transform_5, window_bounds = array<i64: 1, 32>}, {pipeline_mode = #tpu.pipeline_mode<synchronous>, transform_indices = @transform_6, window_bounds = array<i64: 1, 32>}, {pipeline_mode = #tpu.pipeline_mode<synchronous>, transform_indices = @transform_7, window_bounds = array<i64: 1, 32>}, {pipeline_mode = #tpu.pipeline_mode<synchronous>, transform_indices = @transform_8, window_bounds = array<i64: 32, 128>}, {pipeline_mode = #tpu.pipeline_mode<synchronous>, transform_indices = @transform_9, window_bounds = array<i64: 1, 128>}, {pipeline_mode = #tpu.pipeline_mode<synchronous>, transform_indices = @transform_10, window_bounds = array<i64: 128, 32>}, {pipeline_mode = #tpu.pipeline_mode<synchronous>, transform_indices = @transform_11, window_bounds = array<i64: 1, 32>}, {transform_indices = @transform_12, window_bounds = array<i64: 1, 8, 32>}]} {
    %c0 = arith.constant 0 : index
    %c0_0 = arith.constant 0 : index
    %c0_1 = arith.constant 0 : index
    %0 = vector.load %arg1[%c0, %c0_0, %c0_1] : memref<1x8x32xf32, #tpu.memory_space<vmem>>, vector<1x8x32xf32>
    %1 = vector.shape_cast %0 : vector<1x8x32xf32> to vector<8x32xf32>
    %c0_2 = arith.constant 0 : index
    %c0_3 = arith.constant 0 : index
    %2 = vector.load %arg2[%c0_2, %c0_3] : memref<1x32xf32, #tpu.memory_space<vmem>>, vector<1x32xf32>
    %c0_4 = arith.constant 0 : index
    %c0_5 = arith.constant 0 : index
    %3 = vector.load %arg3[%c0_4, %c0_5] : memref<1x32xf32, #tpu.memory_space<vmem>>, vector<1x32xf32>
    %cst = arith.constant dense<0.000000e+00> : vector<8xf32>
    %4 = vector.multi_reduction <add>, %1, %cst [1] : vector<8x32xf32> to vector<8xf32>
    %5 = vector.shape_cast %4 : vector<8xf32> to vector<8x1xf32>
    %cst_6 = arith.constant 3.200000e+01 : f32
    %6 = vector.broadcast %cst_6 : f32 to vector<8x1xf32>
    %7 = arith.divf %5, %6 : vector<8x1xf32>
    %8 = arith.mulf %1, %1 : vector<8x32xf32>
    %cst_7 = arith.constant dense<0.000000e+00> : vector<8xf32>
    %9 = vector.multi_reduction <add>, %8, %cst_7 [1] : vector<8x32xf32> to vector<8xf32>
    %10 = vector.shape_cast %9 : vector<8xf32> to vector<8x1xf32>
    %cst_8 = arith.constant 3.200000e+01 : f32
    %11 = vector.broadcast %cst_8 : f32 to vector<8x1xf32>
    %12 = arith.divf %10, %11 : vector<8x1xf32>
    %13 = arith.mulf %7, %7 : vector<8x1xf32>
    %14 = arith.subf %12, %13 : vector<8x1xf32>
    %15 = vector.broadcast %7 : vector<8x1xf32> to vector<8x32xf32>
    %16 = arith.subf %1, %15 : vector<8x32xf32>
    %cst_9 = arith.constant 9.99999974E-6 : f32
    %17 = vector.broadcast %cst_9 : f32 to vector<8x1xf32>
    %18 = arith.addf %14, %17 : vector<8x1xf32>
    %19 = math.rsqrt %18 : vector<8x1xf32>
    %20 = vector.broadcast %19 : vector<8x1xf32> to vector<8x32xf32>
    %21 = arith.mulf %16, %20 : vector<8x32xf32>
    %22 = vector.broadcast %2 : vector<1x32xf32> to vector<8x32xf32>
    %23 = arith.mulf %21, %22 : vector<8x32xf32>
    %24 = vector.broadcast %3 : vector<1x32xf32> to vector<8x32xf32>
    %25 = arith.addf %23, %24 : vector<8x32xf32>
    %26 = arith.truncf %25 : vector<8x32xf32> to vector<8x32xbf16>
    %c0_10 = arith.constant 0 : index
    %c0_11 = arith.constant 0 : index
    %27 = vector.load %arg4[%c0_10, %c0_11] : memref<32x96xbf16, #tpu.memory_space<vmem>>, vector<32x96xbf16>
    %cst_12 = arith.constant dense<0.000000e+00> : vector<8x96xf32>
    %28 = tpu.matmul %26, %27, %cst_12 {dimension_numbers = #tpu.dot_dimension_numbers<[1], [0], [0], [1], [0, 0, 1, 1], [], []>} : vector<8x32xbf16>, vector<32x96xbf16>, vector<8x96xf32> -> vector<8x96xf32>
    %29 = arith.truncf %28 : vector<8x96xf32> to vector<8x96xbf16>
    %30 = vector.shape_cast %29 : vector<8x96xbf16> to vector<1x8x96xbf16>
    %31 = vector.extract_strided_slice %30 {offsets = [0, 0, 0], sizes = [1, 8, 8], strides = [1, 1, 1]} : vector<1x8x96xbf16> to vector<1x8x8xbf16>
    %32 = vector.extract_strided_slice %30 {offsets = [0, 0, 8], sizes = [1, 8, 8], strides = [1, 1, 1]} : vector<1x8x96xbf16> to vector<1x8x8xbf16>
    %33 = vector.extract_strided_slice %30 {offsets = [0, 0, 16], sizes = [1, 8, 8], strides = [1, 1, 1]} : vector<1x8x96xbf16> to vector<1x8x8xbf16>
    %34 = vector.extract_strided_slice %30 {offsets = [0, 0, 24], sizes = [1, 8, 8], strides = [1, 1, 1]} : vector<1x8x96xbf16> to vector<1x8x8xbf16>
    %35 = tpu.concatenate %31, %32, %33, %34 in 0 : vector<1x8x8xbf16>, vector<1x8x8xbf16>, vector<1x8x8xbf16>, vector<1x8x8xbf16> -> vector<4x8x8xbf16>
    %36 = vector.extract_strided_slice %30 {offsets = [0, 0, 32], sizes = [1, 8, 8], strides = [1, 1, 1]} : vector<1x8x96xbf16> to vector<1x8x8xbf16>
    %37 = vector.extract_strided_slice %30 {offsets = [0, 0, 40], sizes = [1, 8, 8], strides = [1, 1, 1]} : vector<1x8x96xbf16> to vector<1x8x8xbf16>
    %38 = vector.extract_strided_slice %30 {offsets = [0, 0, 48], sizes = [1, 8, 8], strides = [1, 1, 1]} : vector<1x8x96xbf16> to vector<1x8x8xbf16>
    %39 = vector.extract_strided_slice %30 {offsets = [0, 0, 56], sizes = [1, 8, 8], strides = [1, 1, 1]} : vector<1x8x96xbf16> to vector<1x8x8xbf16>
    %40 = tpu.concatenate %36, %37, %38, %39 in 0 : vector<1x8x8xbf16>, vector<1x8x8xbf16>, vector<1x8x8xbf16>, vector<1x8x8xbf16> -> vector<4x8x8xbf16>
    %41 = vector.extract_strided_slice %30 {offsets = [0, 0, 64], sizes = [1, 8, 8], strides = [1, 1, 1]} : vector<1x8x96xbf16> to vector<1x8x8xbf16>
    %42 = vector.extract_strided_slice %30 {offsets = [0, 0, 72], sizes = [1, 8, 8], strides = [1, 1, 1]} : vector<1x8x96xbf16> to vector<1x8x8xbf16>
    %43 = vector.extract_strided_slice %30 {offsets = [0, 0, 80], sizes = [1, 8, 8], strides = [1, 1, 1]} : vector<1x8x96xbf16> to vector<1x8x8xbf16>
    %44 = vector.extract_strided_slice %30 {offsets = [0, 0, 88], sizes = [1, 8, 8], strides = [1, 1, 1]} : vector<1x8x96xbf16> to vector<1x8x8xbf16>
    %45 = tpu.concatenate %41, %42, %43, %44 in 0 : vector<1x8x8xbf16>, vector<1x8x8xbf16>, vector<1x8x8xbf16>, vector<1x8x8xbf16> -> vector<4x8x8xbf16>
    "tpu.trace_start"() <{level = 10 : i32, message = "bqd,bkd->bqk"}> : () -> ()
    %cst_13 = arith.constant dense<0.000000e+00> : vector<4x8x8xf32>
    %46 = tpu.matmul %35, %40, %cst_13 {dimension_numbers = #tpu.dot_dimension_numbers<[2], [2], [1], [1], [0, 0, 0, 1, 1, 1], [0], [0]>} : vector<4x8x8xbf16>, vector<4x8x8xbf16>, vector<4x8x8xf32> -> vector<4x8x8xf32>
    "tpu.trace_stop"() : () -> ()
    %cst_14 = arith.constant dense<0xFF800000> : vector<4x8xf32>
    %47 = vector.multi_reduction <maximumf>, %46, %cst_14 [2] : vector<4x8x8xf32> to vector<4x8xf32>
    %48 = vector.shape_cast %47 : vector<4x8xf32> to vector<4x8x1xf32>
    %49 = vector.broadcast %48 : vector<4x8x1xf32> to vector<4x8x8xf32>
    %50 = arith.subf %46, %49 : vector<4x8x8xf32>
    %51 = math.exp %50 : vector<4x8x8xf32>
    %cst_15 = arith.constant dense<0.000000e+00> : vector<4x8xf32>
    %52 = vector.multi_reduction <add>, %51, %cst_15 [2] : vector<4x8x8xf32> to vector<4x8xf32>
    %53 = vector.shape_cast %52 : vector<4x8xf32> to vector<4x8x1xf32>
    %54 = tpu.reciprocal %53 {approx = true} : vector<4x8x1xf32> -> vector<4x8x1xf32>
    %55 = vector.broadcast %54 : vector<4x8x1xf32> to vector<4x8x8xf32>
    %56 = arith.mulf %51, %55 : vector<4x8x8xf32>
    %57 = arith.truncf %56 : vector<4x8x8xf32> to vector<4x8x8xbf16>
    "tpu.trace_start"() <{level = 10 : i32, message = "bqk,bkd->bqd"}> : () -> ()
    %cst_16 = arith.constant dense<0.000000e+00> : vector<4x8x8xf32>
    %58 = tpu.matmul %57, %45, %cst_16 {dimension_numbers = #tpu.dot_dimension_numbers<[2], [1], [1], [2], [0, 0, 0, 1, 1, 2], [0], [0]>} : vector<4x8x8xbf16>, vector<4x8x8xbf16>, vector<4x8x8xf32> -> vector<4x8x8xf32>
    "tpu.trace_stop"() : () -> ()
    %59 = vector.extract_strided_slice %58 {offsets = [0, 0, 0], sizes = [1, 8, 8], strides = [1, 1, 1]} : vector<4x8x8xf32> to vector<1x8x8xf32>
    %60 = vector.extract_strided_slice %58 {offsets = [1, 0, 0], sizes = [1, 8, 8], strides = [1, 1, 1]} : vector<4x8x8xf32> to vector<1x8x8xf32>
    %61 = vector.extract_strided_slice %58 {offsets = [2, 0, 0], sizes = [1, 8, 8], strides = [1, 1, 1]} : vector<4x8x8xf32> to vector<1x8x8xf32>
    %62 = vector.extract_strided_slice %58 {offsets = [3, 0, 0], sizes = [1, 8, 8], strides = [1, 1, 1]} : vector<4x8x8xf32> to vector<1x8x8xf32>
    %63 = tpu.concatenate %59, %60, %61, %62 in 2 : vector<1x8x8xf32>, vector<1x8x8xf32>, vector<1x8x8xf32>, vector<1x8x8xf32> -> vector<1x8x32xf32>
    %64 = vector.shape_cast %63 : vector<1x8x32xf32> to vector<8x32xf32>
    %65 = arith.truncf %64 : vector<8x32xf32> to vector<8x32xbf16>
    %c0_17 = arith.constant 0 : index
    %c0_18 = arith.constant 0 : index
    %66 = vector.load %arg5[%c0_17, %c0_18] : memref<32x32xbf16, #tpu.memory_space<vmem>>, vector<32x32xbf16>
    %cst_19 = arith.constant dense<0.000000e+00> : vector<8x32xf32>
    %67 = tpu.matmul %65, %66, %cst_19 {dimension_numbers = #tpu.dot_dimension_numbers<[1], [0], [0], [1], [0, 0, 1, 1], [], []>} : vector<8x32xbf16>, vector<32x32xbf16>, vector<8x32xf32> -> vector<8x32xf32>
    %c0_20 = arith.constant 0 : index
    %c0_21 = arith.constant 0 : index
    %68 = vector.load %arg6[%c0_20, %c0_21] : memref<1x32xf32, #tpu.memory_space<vmem>>, vector<1x32xf32>
    %69 = vector.broadcast %68 : vector<1x32xf32> to vector<8x32xf32>
    %70 = arith.addf %67, %69 : vector<8x32xf32>
    %71 = arith.addf %1, %70 : vector<8x32xf32>
    %c0_22 = arith.constant 0 : index
    %c0_23 = arith.constant 0 : index
    %72 = vector.load %arg7[%c0_22, %c0_23] : memref<1x32xf32, #tpu.memory_space<vmem>>, vector<1x32xf32>
    %c0_24 = arith.constant 0 : index
    %c0_25 = arith.constant 0 : index
    %73 = vector.load %arg8[%c0_24, %c0_25] : memref<1x32xf32, #tpu.memory_space<vmem>>, vector<1x32xf32>
    %cst_26 = arith.constant dense<0.000000e+00> : vector<8xf32>
    %74 = vector.multi_reduction <add>, %71, %cst_26 [1] : vector<8x32xf32> to vector<8xf32>
    %75 = vector.shape_cast %74 : vector<8xf32> to vector<8x1xf32>
    %cst_27 = arith.constant 3.200000e+01 : f32
    %76 = vector.broadcast %cst_27 : f32 to vector<8x1xf32>
    %77 = arith.divf %75, %76 : vector<8x1xf32>
    %78 = arith.mulf %71, %71 : vector<8x32xf32>
    %cst_28 = arith.constant dense<0.000000e+00> : vector<8xf32>
    %79 = vector.multi_reduction <add>, %78, %cst_28 [1] : vector<8x32xf32> to vector<8xf32>
    %80 = vector.shape_cast %79 : vector<8xf32> to vector<8x1xf32>
    %cst_29 = arith.constant 3.200000e+01 : f32
    %81 = vector.broadcast %cst_29 : f32 to vector<8x1xf32>
    %82 = arith.divf %80, %81 : vector<8x1xf32>
    %83 = arith.mulf %77, %77 : vector<8x1xf32>
    %84 = arith.subf %82, %83 : vector<8x1xf32>
    %85 = vector.broadcast %77 : vector<8x1xf32> to vector<8x32xf32>
    %86 = arith.subf %71, %85 : vector<8x32xf32>
    %cst_30 = arith.constant 9.99999974E-6 : f32
    %87 = vector.broadcast %cst_30 : f32 to vector<8x1xf32>
    %88 = arith.addf %84, %87 : vector<8x1xf32>
    %89 = math.rsqrt %88 : vector<8x1xf32>
    %90 = vector.broadcast %89 : vector<8x1xf32> to vector<8x32xf32>
    %91 = arith.mulf %86, %90 : vector<8x32xf32>
    %92 = vector.broadcast %72 : vector<1x32xf32> to vector<8x32xf32>
    %93 = arith.mulf %91, %92 : vector<8x32xf32>
    %94 = vector.broadcast %73 : vector<1x32xf32> to vector<8x32xf32>
    %95 = arith.addf %93, %94 : vector<8x32xf32>
    %96 = arith.truncf %95 : vector<8x32xf32> to vector<8x32xbf16>
    %c0_31 = arith.constant 0 : index
    %c0_32 = arith.constant 0 : index
    %97 = vector.load %arg9[%c0_31, %c0_32] : memref<32x128xbf16, #tpu.memory_space<vmem>>, vector<32x128xbf16>
    %cst_33 = arith.constant dense<0.000000e+00> : vector<8x128xf32>
    %98 = tpu.matmul %96, %97, %cst_33 {dimension_numbers = #tpu.dot_dimension_numbers<[1], [0], [0], [1], [0, 0, 1, 1], [], []>} : vector<8x32xbf16>, vector<32x128xbf16>, vector<8x128xf32> -> vector<8x128xf32>
    %c0_34 = arith.constant 0 : index
    %c0_35 = arith.constant 0 : index
    %99 = vector.load %arg10[%c0_34, %c0_35] : memref<1x128xf32, #tpu.memory_space<vmem>>, vector<1x128xf32>
    %100 = vector.broadcast %99 : vector<1x128xf32> to vector<8x128xf32>
    %101 = arith.addf %98, %100 : vector<8x128xf32>
    %102 = arith.mulf %101, %101 : vector<8x128xf32>
    %103 = arith.mulf %101, %102 : vector<8x128xf32>
    %cst_36 = arith.constant 4.471500e-02 : f32
    %104 = vector.broadcast %cst_36 : f32 to vector<8x128xf32>
    %105 = arith.mulf %104, %103 : vector<8x128xf32>
    %106 = arith.addf %101, %105 : vector<8x128xf32>
    %cst_37 = arith.constant 0.797884583 : f32
    %107 = vector.broadcast %cst_37 : f32 to vector<8x128xf32>
    %108 = arith.mulf %107, %106 : vector<8x128xf32>
    %109 = math.tanh %108 : vector<8x128xf32>
    %cst_38 = arith.constant 1.000000e+00 : f32
    %110 = vector.broadcast %cst_38 : f32 to vector<8x128xf32>
    %111 = arith.addf %110, %109 : vector<8x128xf32>
    %cst_39 = arith.constant 5.000000e-01 : f32
    %112 = vector.broadcast %cst_39 : f32 to vector<8x128xf32>
    %113 = arith.mulf %112, %111 : vector<8x128xf32>
    %114 = arith.mulf %101, %113 : vector<8x128xf32>
    %115 = arith.truncf %114 : vector<8x128xf32> to vector<8x128xbf16>
    %c0_40 = arith.constant 0 : index
    %c0_41 = arith.constant 0 : index
    %116 = vector.load %arg11[%c0_40, %c0_41] : memref<128x32xbf16, #tpu.memory_space<vmem>>, vector<128x32xbf16>
    %cst_42 = arith.constant dense<0.000000e+00> : vector<8x32xf32>
    %117 = tpu.matmul %115, %116, %cst_42 {dimension_numbers = #tpu.dot_dimension_numbers<[1], [0], [0], [1], [0, 0, 1, 1], [], []>} : vector<8x128xbf16>, vector<128x32xbf16>, vector<8x32xf32> -> vector<8x32xf32>
    %c0_43 = arith.constant 0 : index
    %c0_44 = arith.constant 0 : index
    %118 = vector.load %arg12[%c0_43, %c0_44] : memref<1x32xf32, #tpu.memory_space<vmem>>, vector<1x32xf32>
    %119 = vector.broadcast %118 : vector<1x32xf32> to vector<8x32xf32>
    %120 = arith.addf %117, %119 : vector<8x32xf32>
    %121 = arith.addf %71, %120 : vector<8x32xf32>
    %122 = vector.shape_cast %121 : vector<8x32xf32> to vector<1x8x32xf32>
    %c0_45 = arith.constant 0 : index
    %c0_46 = arith.constant 0 : index
    %c0_47 = arith.constant 0 : index
    %123 = vector.load %arg13[%c0_45, %c0_46, %c0_47] : memref<1x8x32xf32, #tpu.memory_space<vmem>>, vector<1x8x32xf32>
    tpu.vector_store %arg13[%c0_45, %c0_46, %c0_47], %122 {strides = array<i32>} : memref<1x8x32xf32, #tpu.memory_space<vmem>>, vector<1x8x32xf32>,
    return
  }
  func.func @transform_0(%arg0: i32) -> (i32, i32, i32) {
    %c0_i32 = arith.constant 0 : i32
    %c0_i32_0 = arith.constant 0 : i32
    %c0_i32_1 = arith.constant 0 : i32
    return %arg0, %c0_i32, %c0_i32_0 : i32, i32, i32
  }
  func.func @transform_1(%arg0: i32) -> (i32, i32) {
    %c0_i32 = arith.constant 0 : i32
    %c0_i32_0 = arith.constant 0 : i32
    %c0_i32_1 = arith.constant 0 : i32
    return %c0_i32, %c0_i32_0 : i32, i32
  }
  func.func @transform_2(%arg0: i32) -> (i32, i32) {
    %c0_i32 = arith.constant 0 : i32
    %c0_i32_0 = arith.constant 0 : i32
    %c0_i32_1 = arith.constant 0 : i32
    return %c0_i32, %c0_i32_0 : i32, i32
  }
  func.func @transform_3(%arg0: i32) -> (i32, i32) {
    %c0_i32 = arith.constant 0 : i32
    %c0_i32_0 = arith.constant 0 : i32
    %c0_i32_1 = arith.constant 0 : i32
    return %c0_i32, %c0_i32_0 : i32, i32
  }
  func.func @transform_4(%arg0: i32) -> (i32, i32) {
    %c0_i32 = arith.constant 0 : i32
    %c0_i32_0 = arith.constant 0 : i32
    %c0_i32_1 = arith.constant 0 : i32
    return %c0_i32, %c0_i32_0 : i32, i32
  }
  func.func @transform_5(%arg0: i32) -> (i32, i32) {
    %c0_i32 = arith.constant 0 : i32
    %c0_i32_0 = arith.constant 0 : i32
    %c0_i32_1 = arith.constant 0 : i32
    return %c0_i32, %c0_i32_0 : i32, i32
  }
  func.func @transform_6(%arg0: i32) -> (i32, i32) {
    %c0_i32 = arith.constant 0 : i32
    %c0_i32_0 = arith.constant 0 : i32
    %c0_i32_1 = arith.constant 0 : i32
    return %c0_i32, %c0_i32_0 : i32, i32
  }
  func.func @transform_7(%arg0: i32) -> (i32, i32) {
    %c0_i32 = arith.constant 0 : i32
    %c0_i32_0 = arith.constant 0 : i32
    %c0_i32_1 = arith.constant 0 : i32
    return %c0_i32, %c0_i32_0 : i32, i32
  }
  func.func @transform_8(%arg0: i32) -> (i32, i32) {
    %c0_i32 = arith.constant 0 : i32
    %c0_i32_0 = arith.constant 0 : i32
    %c0_i32_1 = arith.constant 0 : i32
    return %c0_i32, %c0_i32_0 : i32, i32
  }
  func.func @transform_9(%arg0: i32) -> (i32, i32) {
    %c0_i32 = arith.constant 0 : i32
    %c0_i32_0 = arith.constant 0 : i32
    %c0_i32_1 = arith.constant 0 : i32
    return %c0_i32, %c0_i32_0 : i32, i32
  }
  func.func @transform_10(%arg0: i32) -> (i32, i32) {
    %c0_i32 = arith.constant 0 : i32
    %c0_i32_0 = arith.constant 0 : i32
    %c0_i32_1 = arith.constant 0 : i32
    return %c0_i32, %c0_i32_0 : i32, i32
  }
  func.func @transform_11(%arg0: i32) -> (i32, i32) {
    %c0_i32 = arith.constant 0 : i32
    %c0_i32_0 = arith.constant 0 : i32
    %c0_i32_1 = arith.constant 0 : i32
    return %c0_i32, %c0_i32_0 : i32, i32
  }
  func.func @transform_12(%arg0: i32) -> (i32, i32, i32) {
    %c0_i32 = arith.constant 0 : i32
    %c0_i32_0 = arith.constant 0 : i32
    %c0_i32_1 = arith.constant 0 : i32
    return %arg0, %c0_i32, %c0_i32_0 : i32, i32, i32
  }
}

</mosaic_0001>

<bundles_post_ra>
// kernel: basic_block_forward.5
= control target key start
LH: loop header
LB: loop body
LE: loop exit
PB: predicated region body
PF: predicated region fallthrough
CT: control target
= control target key end

     0   :  { %9 = vsyncpa [#allocation3], 0  ;;  %s670_s0 = inlined_call_operand.vmem [shape: f32[2,4,64], index: 0, kind: input, shape index: {}]   ;;  %s671_s1 = inlined_call_operand.vmem [shape: f32[1,64], index: 1, kind: input, shape index: {}]   ;;  %s672_s2 = inlined_call_operand.vmem [shape: f32[1,64], index: 2, kind: input, shape index: {}]   ;;  %s673_s3 = inlined_call_operand.vmem [shape: bf16[64,64], index: 3, kind: input, shape index: {}]   ;;  %s674_s4 = inlined_call_operand.hbm [shape: f32[2,4,64], index: 4, kind: output, shape index: {}]  }
   0x1   :  { %11 = vsyncpa [#allocation3 + $0x1], 0  ;;  %s550_s15 = smov 0   ;;  %s552_s16 = smov 0  }
   0x2   :  { %s554_s17 = smov 0   ;;  %s556_s18 = smov 0  }
   0x3 LB: > { %s571_s19 = sadd.s32 4294967295, %s520_s18   ;;  %s379_s20 = sadd.s32 4294967294, %s520_s18   ;;  %s520_s18 = sphi %s556_s18, %s680_s18   ;;  %s516_s17 = sphi %s554_s17, %s679_s17   ;;  %s512_s16 = sphi %s552_s16, %s678_s16   ;;  %s508_s15 = sphi %s550_s15, %s677_s15  }
   0x4   : > { %s575_s21 = sadd.s32 1, %s520_s18   ;;  %s113_s22 = sadd.s32 1, %s516_s17 }
   0x5   : > { %s110_s23 = ssub.s32 %s520_s18, %s575_s21  ;;  %p123_p0 = scmp.ne.s32.totalorder %s516_s17, %s512_s16 }
   0x6   : > { %p111_p1 = scmp.eq.s32.totalorder %s110_s23, 0  ;;  %p124_p2 = scmp.eq.s32.totalorder %s571_s19, 1 }
   0x7   : > { %p129_p3 = scmp.ne.s32.totalorder %s512_s16, %s508_s15  ;;  %p130_p4 = scmp.eq.s32.totalorder %s379_s20, 1 }
   0x8   : > { %s586_s24 = scalar_select %p111_p1, %s516_s17, %s113_s22  }
   0x9   : > { %p588_p5 = por %p124_p2, %p123_p0  ;;  %p592_p6 = por %p130_p4, %p129_p3 }
   0xa   : > { %p382_p7 = scmp.ge.s32.totalorder %s520_s18, 1  ;;  %p164_p8 = scmp.lt.s32.totalorder %s520_s18, 3 }
   0xc   : > { %p165_p9 = pnand %p382_p7, %p164_p8 }
   0xd   : > { %p189_p10 = scmp.lt.s32.totalorder (!%p165_p9), %s571_s19, 1  ;;  %s393_s29 = sshll.u32 (!%p165_p9), %s571_s19, 6 }
   0xe   : > { %168 = sbr.rel (%p165_p9) target bundleno = 404 (0x194), region = 36  ;;  %s628_s8 = scalar_lea.hbm (!%p165_p9), %s674_s4, %s393_s29 }
  0x13   : > { %s190_s27 = scalar_select %p189_p10, %s571_s19, 1  ;;  %vm197_vm0 = vcmask 519168   ;;  %v454_v4 = vld [vmem:[%s673_s3 + $0x18] sm:$0xff]   ;;  %v522_v5 = vmov 0.0   ;;  %vm523_vm1 = vmmov 0   ;;  %v455_v6 = vld [vmem:[%s673_s3 + $0x10] sm:$0xff]  }
  0x14   : > { %401 = vmatprep.subr.bf16.mxu0 %v522_v5  ;;  %409 = vmatprep.mubr.msk.bf16.mxu0 %vm523_vm1, %v522_v5  ;;  %v456_v7 = vld [vmem:[%s673_s3 + $0x8] sm:$0xff]   ;;  %v457_v8 = vld [vmem:[%s673_s3] sm:$0xff]   ;;  %vm261_vm2 = vcmask 523264   ;;  %s524_s19 = smov [#allocation2]  }
  0x15   : > { %s384_s28 = sshll.u32 %s190_s27, 2  ;;  %402 = vmatpush3.bf16.msra.mxu0 %v454_v4  ;;  %v385_v18 = vld [vmem:[%s671_s1] ss:$0 sm:$0xff]  ;;  %s186_s27 = sand.u32 1, %s512_s16  }
  0x16   : > { %s192_s5 = scalar_lea.vmem %s670_s0, %s384_s28  ;;  %403 = vmatprep.subr.bf16.mxu0 %v522_v5  ;;  %v386_v20 = vld [vmem:[%s672_s2] ss:$0 sm:$0xff]  ;;  %s383_s28 = sshll.u32 %s186_s27, 2 }
  0x17   : > { %v194_v0 = vld [vmem:[%s192_s5] sm:$0xf]  ;;  %s188_s30 = scalar_lea.vmem [#allocation2], %s383_s28  ;;  %s307_s9 = scalar_lea.sflag [#allocation3], %s186_s27 }
  0x18   : > { %v198_v1 = vsel %vm197_vm0, %v194_v0, 0.0  ;;  %v203_v2 = vmul.f32 %v194_v0, %v194_v0  ;;  %s320_s5 = sshll.u32 %s188_s30, 4  ;;  %s464_s11 = sshll.u32 %s524_s19, 4  ;;  %s630_s5 = int_to_ptr.vmem [resolvable:$true] %s320_s5  ;;  %s465_s11 = int_to_ptr.vmem [resolvable:$false] %s464_s11 }
  0x19   : > { %199 = vadd.xlane.f32.xlu0 %v198_v1  ;;  %404 = vmatpush3.bf16.msra.mxu0 %v455_v6  ;;  %s460_s10 = scalar_lea.vmem %s630_s5, 64  ;;  %s466_s12 = scalar_lea.vmem %s465_s11, 128 }
  0x1a   : > { %v204_v3 = vsel %vm197_vm0, %v203_v2, 0.0  ;;  %405 = vmatprep.subr.bf16.mxu0 %v522_v5  ;;  %p461_p11 = scmp.ne.s32.totalorder %s630_s5, %s460_s10  ;;  %p467_p0 = scmp.lt.s32.totalorder %s630_s5, %s465_s11 }
  0x1b   : > { %p468_p1 = scmp.lt.s32.totalorder %s466_s12, %s460_s10 }
  0x1c   : > { %p462_p12 = pnand %p461_p11, %p588_p5 }
  0x1d   : > { %205 = vadd.xlane.f32.xlu0 %v204_v3  ;;  %406 = vmatpush3.bf16.msra.mxu0 %v456_v7  ;;  %p469_p2 = por %p468_p1, %p467_p0 }
  0x1e   : > { %407 = vmatprep.subr.bf16.mxu0 %v522_v5  ;;  %p463_p13 = pneg %p462_p12 }
  0x20   : > { %p470_p3 = pnand %p469_p2, %p463_p13 }
  0x21   : > { %408 = vmatpush3.bf16.msra.mxu0 %v457_v8 }
  0xa2   : > { %v200_v9 = vpop.xlane.xlu0 %199 }
  0xa3   : > { %v202_v10 = vmul.f32 0.015625, %v200_v9 }
  0xa5   : > { %v208_v12 = vmul.f32 %v202_v10, %v202_v10  ;;  %v210_v16 = vsub.f32 %v194_v0, %v202_v10 }
  0xa6   : > { %v206_v11 = vpop.xlane.xlu0 %205 }
  0xa7   : > { %v207_v13 = vmul.f32 0.015625, %v206_v11 }
  0xa9   : > { %v209_v14 = vsub.f32 %v207_v13, %v208_v12 }
  0xab   : > { %v211_v15 = vadd.f32 1e-05, %v209_v14 }
  0xad   : > { %458 = vrsqrt.f32 %v211_v15 }
  0xba   : > { %v459_v17 = vpop.eup %458 }
  0xbb   : > { %v213_v19 = vmul.f32 %v459_v17, %v210_v16 }
  0xbd   : > { %v220_v21 = vmul.f32 %v385_v18, %v213_v19 }
  0xbf   : > { %v227_v22 = vadd.f32 %v386_v20, %v220_v21 }
  0xc1   : > { %v228_v23 = vpack.c.bf16 %v227_v22, %v227_v22 }
  0xc3   : > { %410 = vmatmul.mubr.msk.bf16.vlgmr.msra.gmra.mxu0 %vm261_vm2, %v228_v23 }
 0x183   : > { %v299_v24 = vpop.f32.mrf.mxu0 }
 0x184   : > { %305 = vst.msk [vmem:[%s188_s30] sm:$0xf] %vm197_vm0, %v299_v24 }
 0x185   : > { %v411_v25 = vpop.f32.mrf.mxu0 }
 0x186   : > { %473 = shalt.err (!%p470_p3)
}
 0x187   : > { %s474_s13 = scalar_lea.hbm %s628_s8, 64  ;;  %s478_s22 = scalar_lea.hbm %s674_s4, 128 }
 0x188   : > { %p475_p4 = scmp.ne.s32.totalorder %s628_s8, %s474_s13  ;;  %p479_p9 = scmp.lt.s32.totalorder %s628_s8, %s674_s4 }
 0x189   : > { %p480_p10 = scmp.lt.s32.totalorder %s478_s22, %s474_s13 }
 0x18a   : > { %p476_p7 = pnand %p475_p4, %p588_p5 }
 0x18b   : > { %p481_p11 = por %p480_p10, %p479_p9 }
 0x18c   : > { %p477_p8 = pneg %p476_p7 }
 0x18e   : > { %p482_p12 = pnand %p481_p11, %p477_p8 }
 0x190   : > { %485 = shalt.err (!%p482_p12)
}
 0x191   : > { %413 = dma.vmem_to_hbm [thread:$0]  (%p588_p5), %s630_s5, 64, %s628_s8, %s307_s9   ;;  %v302_v26 = vpop.f32.mrf.mxu0 }
 0x193   : > { %v412_v27 = vpop.f32.mrf.mxu0 }
 0x194 PF: > { %p419_p13 = scmp.ge.s32.totalorder %s520_s18, 2  ;;  %s332_s28 = sand.u32 1, %s508_s15  }
 0x195   : > { %s333_s29 = scalar_lea.sflag [#allocation3], %s332_s28 }
 0x196   : > { %p416_p0 = pnand %p419_p13, %p592_p6 }
 0x198   : > { %p417_p1 = pneg %p416_p0 }
 0x19a   : > { %503 = dma.done.wait (%p417_p1), %s333_s29, 64  }
 0x19b   : > { %505 = vsyncadd (%p417_p1), %s333_s29, 4294967232  ;;  %p14_p5 = scmp.ge.s32.totalorder %s575_s21, 4   ;;  %s677_s15 = smov %s512_s16 }
 0x19c   : > { %s678_s16 = smov %s516_s17  ;;  %s679_s17 = smov %s586_s24 }
 0x19d   : > { %s680_s18 = smov %s575_s21  ;;  %16 = sbr.rel (!%p14_p5) target bundleno = 3 (0x3), region = 71 }
 0x1a2   :  { %338 = vsyncpa [#allocation3], 1 }
 0x1a3   :  { %340 = vsyncpa [#allocation3 + $0x1], 1 }

// kernel: basic_block_forward.3
= control target key start
LH: loop header
LB: loop body
LE: loop exit
PB: predicated region body
PF: predicated region fallthrough
CT: control target
= control target key end

     0   :  { %s2114_s21 = smov 0   ;;  %s2360_s0 = inlined_call_operand.vmem [shape: f32[2,8,32], index: 0, kind: input, shape index: {}]   ;;  %s2361_s1 = inlined_call_operand.vmem [shape: f32[1,32], index: 1, kind: input, shape index: {}]   ;;  %s2362_s2 = inlined_call_operand.vmem [shape: f32[1,32], index: 2, kind: input, shape index: {}]   ;;  %s2363_s3 = inlined_call_operand.vmem [shape: bf16[32,96], index: 3, kind: input, shape index: {}]   ;;  %s2364_s4 = inlined_call_operand.vmem [shape: bf16[32,32], index: 4, kind: input, shape index: {}]   ;;  %s2365_s5 = inlined_call_operand.vmem [shape: f32[1,32], index: 5, kind: input, shape index: {}]   ;;  %s2366_s6 = inlined_call_operand.vmem [shape: f32[1,32], index: 6, kind: input, shape index: {}]   ;;  %s2367_s7 = inlined_call_operand.vmem [shape: f32[1,32], index: 7, kind: input, shape index: {}]   ;;  %s2368_s8 = inlined_call_operand.vmem [shape: bf16[32,128], index: 8, kind: input, shape index: {}]   ;;  %s2369_s9 = inlined_call_operand.vmem [shape: f32[1,128], index: 9, kind: input, shape index: {}]   ;;  %s2370_s10 = inlined_call_operand.vmem [shape: bf16[128,32], index: 10, kind: input, shape index: {}]   ;;  %s2371_s11 = inlined_call_operand.vmem [shape: f32[1,32], index: 11, kind: input, shape index: {}]   ;;  %s2372_s12 = inlined_call_operand.vmem [shape: f32[2,8,32], index: 12, kind: output, shape index: {}]  }
   0x1 LB: > { %s1792_s22 = sadd.s32 4294967295, %s2028_s21   ;;  %p1796_p0 = scmp.ge.s32.totalorder %s2028_s21, 1  ;;  %s2028_s21 = sphi %s2114_s21, %s22_s21  }
   0x2   : > { %p361_p1 = scmp.lt.s32.totalorder %s2028_s21, 3 }
   0x4   : > { %p362_p2 = pnand %p1796_p0, %p361_p1 }
   0x5   : > { %p401_p3 = scmp.lt.s32.totalorder (!%p362_p2), %s1792_s22, 1  ;;  %s2032_s17 = smov (!%p362_p2), 104  }
   0x6   : > { %365 = sbr.rel (%p362_p2) target bundleno = 2214 (0x8a6), region = 68  ;;  %s2033_s18 = smov (!%p362_p2), 120  }
   0x7   : > { %s2034_s19 = smov (!%p362_p2), 48   ;;  %s2035_s20 = smov (!%p362_p2), 112  }
   0x8   : > { %s2036_s24 = smov (!%p362_p2), 96   ;;  %s2037_s25 = smov (!%p362_p2), 88  }
   0x9   : > { %s2039_s27 = smov (!%p362_p2), 72   ;;  %s2040_s28 = smov (!%p362_p2), 64  }
   0xa   : > { %s2041_s29 = smov (!%p362_p2), 56   ;;  %s2042_s30 = smov (!%p362_p2), 40  }
   0xb   : > { %s2374_s22 = smov (!%p401_p3, %s1792_s22), 1  ;;  %vm413_vm0 = vcmask 261120   ;;  %v1986_v4 = vld [vmem:[%s2363_s3 + $0x8] sm:$0xff]   ;;  %v2030_v5 = vmov 0.0   ;;  %vm2031_vm1 = vmmov 0   ;;  %v1987_v6 = vld [vmem:[%s2363_s3] sm:$0xff]   ;;  %v539_v33 = vlaneseq }
   0xc   : > { %s1797_s23 = sshll.u32 %s2374_s22, 3  ;;  %1867 = vmatprep.subr.bf16.mxu0 %v2030_v5  ;;  %1871 = vmatprep.mubr.msk.bf16.mxu0 %vm2031_vm1, %v2030_v5  ;;  %v1799_v16 = vld [vmem:[%s2361_s1] ss:$0 sm:$0xff]  ;;  %v2043_v31 = vmov 1983009808   ;;  %vm857_vm2 = vcmask 64512  }
   0xd   : > { %s404_s26 = scalar_lea.vmem %s2360_s0, %s1797_s23  ;;  %1868 = vmatpush3.bf16.msra.mxu0 %v1986_v4  ;;  %1887 = vmatprep.subr.bf16.mxu1 %v2030_v5  ;;  %v1800_v18 = vld [vmem:[%s2362_s2] ss:$0 sm:$0xff]  ;;  %v537_v32 = vunpack.c.l.s4 %v2043_v31  ;;  %v540_v37 = vshrl.u32 %v539_v33, 7  ;;  %v2044_v40 = vmov 1934713408   ;;  %vm1093_vm3 = vcmask 1043456  }
   0xe   : > { %v2130_v0 = vld [vmem:[%s404_s26] sm:$0xff]  ;;  %1869 = vmatprep.subr.bf16.mxu0 %v2030_v5  ;;  %1889 = vmatprep.mubr.msk.bf16.mxu1 %vm2031_vm1, %v2030_v5  ;;  %s2038_s26 = smov 80   ;;  %v570_v41 = vunpack.c.l.s4 %v2044_v40  ;;  %vm1446_vm4 = vcmask 130048   ;;  %vm1449_vm5 = vcmask 195584  }
   0xf   : > { %v414_v1 = vsel %vm413_vm0, %v2130_v0, 0.0  ;;  %v419_v2 = vmul.f32 %v2130_v0, %v2130_v0  ;;  %v538_v36 = vunpack.c.0.s8 %v537_v32 }
  0x10   : > { %415 = vadd.xlane.f32.xlu0 %v414_v1  ;;  %v571_v49 = vunpack.c.0.s8 %v570_v41 }
  0x11   : > { %v420_v3 = vsel %vm413_vm0, %v419_v2, 0.0  ;;  %1870 = vmatpush3.bf16.msra.mxu0 %v1987_v6  ;;  %v2161_v39 = vsub.s32 %v538_v36, %v540_v37 }
  0x12   : > { %1875 = vmatprep.subr.bf16.mxu0 %v2030_v5  ;;  %v2168_v57 = vsub.s32 %v571_v49, %v540_v37 }
  0x14   : > { %421 = vadd.xlane.f32.xlu0 %v420_v3 }
  0x99   : > { %v416_v7 = vpop.xlane.xlu0 %415 }
  0x9a   : > { %v418_v8 = vmul.f32 0.03125, %v416_v7 }
  0x9c   : > { %v424_v10 = vmul.f32 %v418_v8, %v418_v8  ;;  %v426_v14 = vsub.f32 %v2130_v0, %v418_v8 }
  0x9d   : > { %v422_v9 = vpop.xlane.xlu0 %421 }
  0x9e   : > { %v423_v11 = vmul.f32 0.03125, %v422_v9 }
  0xa0   : > { %v425_v12 = vsub.f32 %v423_v11, %v424_v10 }
  0xa2   : > { %v427_v13 = vadd.f32 1e-05, %v425_v12 }
  0xa4   : > { %2000 = vrsqrt.f32 %v427_v13 }
  0xb1   : > { %v2001_v15 = vpop.eup %2000 }
  0xb2   : > { %v429_v17 = vmul.f32 %v2001_v15, %v426_v14 }
  0xb4   : > { %v436_v19 = vmul.f32 %v1799_v16, %v429_v17 }
  0xb6   : > { %v443_v20 = vadd.f32 %v1800_v18, %v436_v19 }
  0xb8   : > { %v444_v21 = vpack.c.bf16 %v443_v20, %v443_v20 }
  0xba   : > { %1872 = vmatmul.mubr.msk.bf16.vlgmr.msra.gmra.mxu0 %vm413_vm0, %v444_v21 }
  0xbb   : > { %1877 = vmatprep.mubr.msk.bf16.mxu0 %vm2031_vm1, %v2030_v5 }
 0x17a   : > { %v498_v22 = vpop.f32.mrf.mxu0 }
 0x17b   : > { %v504_v23 = vpack.c.bf16 %v498_v22, %v498_v22 }
 0x17c   : > { %v1873_v24 = vpop.f32.mrf.mxu0 }
 0x17d   : > { %512 = vrot.lane.b32.xlu0 %v504_v23, %s2032_s17  ;;  %506 = vrot.lane.b32.xlu1 %v504_v23, %s2033_s18  ;;  %s2046_s17 = smov 8   ;;  %s2047_s18 = smov 16  }
 0x17e   : > { %v501_v25 = vpop.f32.mrf.mxu0 }
 0x180   : > { %v1874_v26 = vpop.f32.mrf.mxu0 }
 0x181   : > { %531 = vrot.lane.b32.xlu0 %v504_v23, %s2034_s19  ;;  %509 = vrot.lane.b32.xlu1 %v504_v23, %s2035_s20  ;;  %s2048_s19 = smov 24  }
 0x185   : > { %515 = vrot.lane.b32.xlu1 %v504_v23, %s2036_s24 }
 0x189   : > { %518 = vrot.lane.b32.xlu1 %v504_v23, %s2037_s25  ;;  %s408_s25 = scalar_lea.vmem %s2372_s12, %s1797_s23 }
 0x18d   : > { %521 = vrot.lane.b32.xlu1 %v504_v23, %s2038_s26 }
 0x191   : > { %524 = vrot.lane.b32.xlu1 %v504_v23, %s2039_s27 }
 0x195   : > { %527 = vrot.lane.b32.xlu1 %v504_v23, %s2040_s28 }
 0x199   : > { %529 = vrot.lane.b32.xlu1 %v504_v23, %s2041_s29 }
 0x19d   : > { %533 = vrot.lane.b32.xlu1 %v504_v23, %s2042_s30 }
 0x1ef   : > { %v507_v27 = vpop.permute.xlu1 %506  ;;  %v513_v35 = vpop.permute.xlu0 %512 }
 0x1f3   : > { %v510_v28 = vpop.permute.xlu1 %509  ;;  %v532_v43 = vpop.permute.xlu0 %531 }
 0x1f4   : > { %v566_v48 = vrot.slane %v532_v43, %v2161_v39 }
 0x1f7   : > { %v516_v29 = vpop.permute.xlu1 %515 }
 0x1f8   : > { %v535_v45 = vcombine.low %v504_v23, %v516_v29 }
 0x1fa   : > { %v542_v53 = vrot.slane %v535_v45, %v2161_v39 }
 0x1fb   : > { %v519_v30 = vpop.permute.xlu1 %518 }
 0x1fc   : > { %v603_v51 = vcombine.low %v507_v27, %v519_v30 }
 0x1fe   : > { %v610_v60 = vrot.slane %v603_v51, %v2161_v39 }
 0x1ff   : > { %v522_v34 = vpop.permute.xlu1 %521 }
 0x200   : > { %v543_v42 = vcombine.low %v510_v28, %v522_v34 }
 0x202   : > { %v550_v50 = vrot.slane %v543_v42, %v2161_v39 }
 0x203   : > { %v525_v38 = vpop.permute.xlu1 %524 }
 0x204   : > { %v611_v47 = vcombine.low %v513_v35, %v525_v38  ;;  %v567_v58 = vcombine.low %v542_v53, %v550_v50  ;;  %v568_v59 = vcombine.high %v542_v53, %v550_v50 }
 0x206   : > { %v618_v56 = vrot.slane %v611_v47, %v2161_v39  ;;  %v575_v6 = vrot.slane %v567_v58, %v2168_v57  ;;  %v582_v7 = vrot.slane %v568_v59, %v2168_v57 }
 0x207   : > { %v528_v44 = vpop.permute.xlu1 %527 }
 0x208   : > { %v558_v46 = vrot.slane %v528_v44, %v2161_v39  ;;  %v635_v1 = vcombine.low %v610_v60, %v618_v56  ;;  %v636_v2 = vcombine.high %v610_v60, %v618_v56 }
 0x20a   : > { %v583_v54 = vcombine.low %v558_v46, %v566_v48  ;;  %v584_v55 = vcombine.high %v558_v46, %v566_v48  ;;  %v643_v14 = vrot.slane %v635_v1, %v2168_v57  ;;  %v650_v15 = vrot.slane %v636_v2, %v2168_v57 }
 0x20b   : > { %v530_v52 = vpop.permute.xlu1 %529  ;;  %v2045_v2 = vmov 0  }
 0x20c   : > { %v591_v62 = vrot.slane %v583_v54, %v2168_v57  ;;  %v598_v63 = vrot.slane %v584_v55, %v2168_v57  ;;  %v626_v3 = vrot.slane %v530_v52, %v2161_v39 }
 0x20e   : > { %v599_v10 = vcombine.low %v575_v6, %v591_v62  ;;  %v600_v11 = vcombine.high %v575_v6, %v591_v62  ;;  %v601_v12 = vcombine.low %v582_v7, %v598_v63  ;;  %v602_v13 = vcombine.high %v582_v7, %v598_v63 }
 0x20f   : > { %v534_v61 = vpop.permute.xlu1 %533 }
 0x210   : > { %v634_v4 = vrot.slane %v534_v61, %v2161_v39  ;;  %v675_v22 = vshrl.u32 %v599_v10, 16  ;;  %v683_v23 = vshrl.u32 %v600_v11, 16  ;;  %v691_v24 = vshrl.u32 %v601_v12, 16 }
 0x211   : > { %v699_v25 = vshrl.u32 %v602_v13, 16 }
 0x212   : > { %v651_v8 = vcombine.low %v626_v3, %v634_v4  ;;  %v652_v9 = vcombine.high %v626_v3, %v634_v4 }
 0x214   : > { %v659_v16 = vrot.slane %v651_v8, %v2168_v57  ;;  %v666_v17 = vrot.slane %v652_v9, %v2168_v57 }
 0x216   : > { %v667_v18 = vcombine.low %v643_v14, %v659_v16  ;;  %v668_v19 = vcombine.high %v643_v14, %v659_v16  ;;  %v669_v20 = vcombine.low %v650_v15, %v666_v17  ;;  %v670_v21 = vcombine.high %v650_v15, %v666_v17 }
 0x218   : > { %v673_v26 = vpack.i.b16 %v667_v18, %v599_v10  ;;  %v676_v27 = vshrl.u32 %v667_v18, 16  ;;  %v681_v28 = vpack.i.b16 %v668_v19, %v600_v11  ;;  %v684_v29 = vshrl.u32 %v668_v19, 16 }
 0x219   : > { %v689_v30 = vpack.i.b16 %v669_v20, %v601_v12  ;;  %v692_v31 = vshrl.u32 %v669_v20, 16  ;;  %v697_v32 = vpack.i.b16 %v670_v21, %v602_v13  ;;  %v700_v33 = vshrl.u32 %v670_v21, 16 }
 0x21a   : > { %v677_v34 = vpack.i.b16 %v676_v27, %v675_v22  ;;  %v685_v35 = vpack.i.b16 %v684_v29, %v683_v23 }
 0x21b   : > { %v693_v36 = vpack.i.b16 %v692_v31, %v691_v24  ;;  %v701_v37 = vpack.i.b16 %v700_v33, %v699_v25  ;;  %v703_v38 = vcombine.low %v673_v26, %v689_v30  ;;  %v704_v40 = vcombine.high %v673_v26, %v689_v30 }
 0x21c   : > { %v719_v41 = vcombine.low %v681_v28, %v697_v32  ;;  %v720_v42 = vcombine.high %v681_v28, %v697_v32 }
 0x21d   : > { %v711_v43 = vrot.slane %v703_v38, %v2161_v39  ;;  %v762_v44 = vcombine.low %v677_v34, %v693_v36  ;;  %v763_v45 = vcombine.high %v677_v34, %v693_v36  ;;  %v778_v47 = vcombine.low %v685_v35, %v701_v37 }
 0x21e   : > { %v727_v46 = vrot.slane %v719_v41, %v2161_v39  ;;  %v779_v48 = vcombine.high %v685_v35, %v701_v37  ;;  %v718_v49 = vrot.slane %v704_v40, %v2161_v39  ;;  %v734_v50 = vrot.slane %v720_v42, %v2161_v39 }
 0x21f   : > { %v770_v51 = vrot.slane %v762_v44, %v2161_v39  ;;  %v777_v52 = vrot.slane %v763_v45, %v2161_v39  ;;  %v786_v54 = vrot.slane %v778_v47, %v2161_v39 }
 0x220   : > { %v736_v53 = vcombine.high %v711_v43, %v727_v46  ;;  %v793_v55 = vrot.slane %v779_v48, %v2161_v39  ;;  %v751_v59 = vcombine.low %v718_v49, %v734_v50  ;;  %v735_v63 = vcombine.low %v711_v43, %v727_v46 }
 0x221   : > { %v795_v58 = vcombine.high %v770_v51, %v786_v54  ;;  %v794_v61 = vcombine.low %v770_v51, %v786_v54 }
 0x222   : > { %v750_v56 = vrot.slane %v736_v53, %v2168_v57  ;;  %v810_v60 = vcombine.low %v777_v52, %v793_v55  ;;  %v758_v6 = vrot.slane %v751_v59, %v2168_v57  ;;  %v743_v13 = vrot.slane %v735_v63, %v2168_v57 }
 0x223   : > { %v809_v62 = vrot.slane %v795_v58, %v2168_v57  ;;  %v802_v10 = vrot.slane %v794_v61, %v2168_v57 }
 0x224   : > { %v760_v3 = vcombine.high %v750_v56, %v2045_v2  ;;  %v817_v7 = vrot.slane %v810_v60, %v2168_v57  ;;  %v836_v14 = vshrl.u32 %v750_v56, 16  ;;  %v761_v15 = vcombine.high %v758_v6, %v2045_v2 }
 0x225   : > { %v835_v1 = vpack.i.b16 %v809_v62, %v750_v56  ;;  %v819_v4 = vcombine.high %v809_v62, %v2045_v2  ;;  %v837_v11 = vshrl.u32 %v809_v62, 16  ;;  %v818_v18 = vcombine.high %v802_v10, %v2045_v2 }
 0x226   : > { %v820_v16 = vcombine.high %v817_v7, %v2045_v2  ;;  %v854_v20 = vshrl.u32 %v761_v15, 16  ;;  %v823_v22 = vpack.i.b16 %v802_v10, %v743_v13  ;;  %v759_v23 = vcombine.high %v743_v13, %v2045_v2 }
 0x227   : > { %v862_v8 = vsel %vm857_vm2, %v835_v1, 0  ;;  %v841_v9 = vpack.i.b16 %v819_v4, %v760_v3  ;;  %v838_v17 = vpack.i.b16 %v837_v11, %v836_v14  ;;  %v847_v24 = vpack.i.b16 %v817_v7, %v758_v6 }
 0x228   : > { %1876 = vmatpush3.bf16.xpose.msra.mxu0 %v862_v8  ;;  %v853_v19 = vpack.i.b16 %v820_v16, %v761_v15  ;;  %v855_v21 = vshrl.u32 %v820_v16, 16  ;;  %v843_v27 = vshrl.u32 %v819_v4, 16  ;;  %v829_v29 = vpack.i.b16 %v818_v18, %v759_v23 }
 0x229   : > { %v954_v12 = vsel %vm857_vm2, %v841_v9, 0  ;;  %1881 = vmatprep.subr.bf16.mxu0 %v2030_v5  ;;  %v908_v28 = vsel %vm857_vm2, %v838_v17, 0  ;;  %v842_v31 = vshrl.u32 %v760_v3, 16  ;;  %v1095_v32 = vsel %vm1093_vm3, %v847_v24, 0 }
 0x22a   : > { %1888 = vmatpush3.bf16.xpose.msra.mxu1 %v954_v12  ;;  %v2206_v25 = vsel %vm1093_vm3, %v853_v19, 0  ;;  %v856_v26 = vpack.i.b16 %v855_v21, %v854_v20  ;;  %v825_v33 = vshrl.u32 %v802_v10, 16  ;;  %v824_v34 = vshrl.u32 %v743_v13, 16 }
 0x22b   : > { %1899 = vmatprep.subr.bf16.mxu1 %v2030_v5  ;;  %v844_v35 = vpack.i.b16 %v843_v27, %v842_v31  ;;  %v849_v38 = vshrl.u32 %v817_v7, 16  ;;  %v831_v40 = vshrl.u32 %v818_v18, 16  ;;  %v848_v41 = vshrl.u32 %v758_v6, 16 }
 0x22c   : > { %v2213_v30 = vsel %vm1093_vm3, %v856_v26, 0  ;;  %v826_v36 = vpack.i.b16 %v825_v33, %v824_v34  ;;  %v830_v42 = vshrl.u32 %v759_v23, 16 }
 0x22d   : > { %v1000_v37 = vsel %vm857_vm2, %v844_v35, 0  ;;  %v850_v43 = vpack.i.b16 %v849_v38, %v848_v41 }
 0x22e   : > { %v832_v44 = vpack.i.b16 %v831_v40, %v830_v42 }
 0x22f   : > { %1878 = vmatmul.mubr.msk.bf16.vlgmr.msra.gmra.mxu0 %vm857_vm2, %v823_v22  ;;  %v1141_v45 = vsel %vm1093_vm3, %v850_v43, 0 }
 0x230   : > { %1882 = vmatpush3.bf16.xpose.msra.mxu0 %v908_v28  ;;  %1883 = vmatprep.mubr.msk.bf16.mxu0 %vm2031_vm1, %v2030_v5 }
 0x231   : > { %1890 = vmatmul.mubr.msk.bf16.vlgmr.msra.gmra.mxu1 %vm857_vm2, %v829_v29  ;;  %1893 = vmatprep.subr.bf16.mxu0 %v2030_v5 }
 0x232   : > { %1900 = vmatpush3.bf16.msra.mxu1 %v1095_v32  ;;  %1901 = vmatprep.mubr.msk.bf16.mxu1 %vm2031_vm1, %v2030_v5 }
 0x233   : > { %1911 = vmatprep.subr.bf16.mxu1 %v2030_v5 }
 0x237   : > { %1884 = vmatmul.mubr.msk.bf16.vlgmr.msra.gmra.mxu0 %vm857_vm2, %v826_v36 }
 0x238   : > { %1894 = vmatpush3.bf16.xpose.msra.mxu0 %v1000_v37  ;;  %1895 = vmatprep.mubr.msk.bf16.mxu0 %vm2031_vm1, %v2030_v5 }
 0x239   : > { %1905 = vmatprep.subr.bf16.mxu0 %v2030_v5 }
 0x23f   : > { %1896 = vmatmul.mubr.msk.bf16.vlgmr.msra.gmra.mxu0 %vm857_vm2, %v832_v44 }
 0x240   : > { %1906 = vmatpush3.bf16.msra.mxu0 %v1141_v45  ;;  %1907 = vmatprep.mubr.msk.bf16.mxu0 %vm2031_vm1, %v2030_v5 }
 0x241   : > { %1917 = vmatprep.subr.bf16.mxu0 %v2030_v5 }
 0x2ef   : > { %v898_v46 = vpop.f32.mrf.mxu0 }
 0x2f0   : > { %v1042_v47 = vsel %vm857_vm2, %v898_v46, -inf }
 0x2f1   : > { %v990_v48 = vpop.f32.mrf.mxu1  ;;  %1043 = vmax.xlane.f32.xlu0 %v1042_v47  ;;  %v1879_v49 = vpop.f32.mrf.mxu0 }
 0x2f2   : > { %v1048_v52 = vsel %vm857_vm2, %v990_v48, -inf }
 0x2f3   : > { %v901_v50 = vpop.f32.mrf.mxu0  ;;  %v1891_v51 = vpop.f32.mrf.mxu1 }
 0x2f5   : > { %v993_v53 = vpop.f32.mrf.mxu1  ;;  %1049 = vmax.xlane.f32.xlu0 %v1048_v52  ;;  %v1880_v54 = vpop.f32.mrf.mxu0 }
 0x2f7   : > { %v944_v55 = vpop.f32.mrf.mxu0  ;;  %v1892_v56 = vpop.f32.mrf.mxu1 }
 0x2f8   : > { %v1045_v58 = vsel %vm857_vm2, %v944_v55, -inf }
 0x2f9   : > { %1046 = vmax.xlane.f32.xlu1 %v1045_v58  ;;  %v1885_v59 = vpop.f32.mrf.mxu0 }
 0x2fb   : > { %v947_v60 = vpop.f32.mrf.mxu0 }
 0x2fd   : > { %v1886_v61 = vpop.f32.mrf.mxu0 }
 0x2ff   : > { %v1036_v62 = vpop.f32.mrf.mxu0 }
 0x300   : > { %v1051_v63 = vsel %vm857_vm2, %v1036_v62, -inf }
 0x301   : > { %1052 = vmax.xlane.f32.xlu0 %v1051_v63  ;;  %v1897_v1 = vpop.f32.mrf.mxu0 }
 0x303   : > { %v1039_v3 = vpop.f32.mrf.mxu0 }
 0x305   : > { %v1898_v4 = vpop.f32.mrf.mxu0 }
 0x37a   : > { %v1044_v6 = vpop.xlane.xlu0 %1043 }
 0x37b   : > { %v1054_v7 = vsub.f32 %v898_v46, %v1044_v6 }
 0x37d   : > { %v1058_v8 = vmul.f32 1.442695, %v1054_v7 }
 0x37e   : > { %v1050_v9 = vpop.xlane.xlu0 %1049 }
 0x37f   : > { %2002 = vpow2.f32 %v1058_v8  ;;  %v1056_v10 = vsub.f32 %v990_v48, %v1050_v9 }
 0x381   : > { %v1062_v11 = vmul.f32 1.442695, %v1056_v10 }
 0x382   : > { %v1047_v12 = vpop.xlane.xlu1 %1046 }
 0x383   : > { %2004 = vpow2.f32 %v1062_v11  ;;  %v1055_v13 = vsub.f32 %v944_v55, %v1047_v12 }
 0x385   : > { %v1060_v14 = vmul.f32 1.442695, %v1055_v13 }
 0x387   : > { %2006 = vpow2.f32 %v1060_v14 }
 0x38a   : > { %v1053_v15 = vpop.xlane.xlu0 %1052 }
 0x38b   : > { %v1057_v16 = vsub.f32 %v1036_v62, %v1053_v15 }
 0x38c   : > { %v2003_v17 = vpop.eup %2002 }
 0x38d   : > { %v1064_v18 = vmul.f32 1.442695, %v1057_v16  ;;  %v1066_v19 = vsel %vm857_vm2, %v2003_v17, 0.0 }
 0x38e   : > { %1067 = vadd.xlane.f32.xlu1 %v1066_v19 }
 0x38f   : > { %2008 = vpow2.f32 %v1064_v18 }
 0x390   : > { %v2005_v20 = vpop.eup %2004 }
 0x391   : > { %v1072_v21 = vsel %vm857_vm2, %v2005_v20, 0.0 }
 0x392   : > { %1073 = vadd.xlane.f32.xlu1 %v1072_v21 }
 0x394   : > { %v2007_v22 = vpop.eup %2006 }
 0x395   : > { %v1069_v23 = vsel %vm857_vm2, %v2007_v22, 0.0 }
 0x396   : > { %1070 = vadd.xlane.f32.xlu0 %v1069_v23 }
 0x39c   : > { %v2009_v24 = vpop.eup %2008 }
 0x39d   : > { %v1075_v26 = vsel %vm857_vm2, %v2009_v24, 0.0 }
 0x39e   : > { %1076 = vadd.xlane.f32.xlu0 %v1075_v26 }
 0x417   : > { %v1068_v27 = vpop.xlane.xlu1 %1067 }
 0x418   : > { %2010 = vrcp.f32 %v1068_v27 }
 0x41b   : > { %v1074_v28 = vpop.xlane.xlu1 %1073 }
 0x41c   : > { %2012 = vrcp.f32 %v1074_v28 }
 0x41f   : > { %v1071_v29 = vpop.xlane.xlu0 %1070 }
 0x420   : > { %2014 = vrcp.f32 %v1071_v29 }
 0x425   : > { %v2011_v31 = vpop.eup %2010 }
 0x426   : > { %v1082_v32 = vmul.f32 %v2011_v31, %v2003_v17 }
 0x427   : > { %v1077_v33 = vpop.xlane.xlu0 %1076 }
 0x428   : > { %2016 = vrcp.f32 %v1077_v33  ;;  %v1086_v34 = vpack.c.bf16 %v1082_v32, %v1082_v32 }
 0x429   : > { %v2013_v35 = vpop.eup %2012 }
 0x42a   : > { %1902 = vmatmul.mubr.msk.bf16.vlgmr.msra.gmra.mxu1 %vm857_vm2, %v1086_v34  ;;  %v1084_v36 = vmul.f32 %v2013_v35, %v2005_v20 }
 0x42b   : > { %1912 = vmatpush3.bf16.msra.mxu1 %v2206_v25  ;;  %1913 = vmatprep.mubr.msk.bf16.mxu1 %vm2031_vm1, %v2030_v5 }
 0x42c   : > { %1923 = vmatprep.subr.bf16.mxu1 %v2030_v5  ;;  %v1088_v41 = vpack.c.bf16 %v1084_v36, %v1084_v36 }
 0x42d   : > { %v2015_v37 = vpop.eup %2014 }
 0x42e   : > { %v1083_v38 = vmul.f32 %v2015_v37, %v2007_v22 }
 0x430   : > { %v1087_v40 = vpack.c.bf16 %v1083_v38, %v1083_v38 }
 0x432   : > { %1908 = vmatmul.mubr.msk.bf16.vlgmr.msra.gmra.mxu0 %vm857_vm2, %v1087_v40  ;;  %1914 = vmatmul.mubr.msk.bf16.vlgmr.msra.gmra.mxu1 %vm857_vm2, %v1088_v41 }
 0x433   : > { %1918 = vmatpush3.bf16.msra.mxu0 %v2213_v30  ;;  %1919 = vmatprep.mubr.msk.bf16.mxu0 %vm2031_vm1, %v2030_v5  ;;  %v1988_v30 = vld [vmem:[%s2364_s4 + $0x8] sm:$0xff]  }
 0x434   : > { %1927 = vmatprep.mubr.msk.bf16.mxu1 %vm2031_vm1, %v2030_v5  ;;  %1931 = vmatprep.subr.bf16.mxu0 %v2030_v5 }
 0x435   : > { %v2017_v25 = vpop.eup %2016  ;;  %1924 = vmatpush3.bf16.msra.mxu1 %v1988_v30  ;;  %v1989_v30 = vld [vmem:[%s2364_s4] sm:$0xff]  }
 0x436   : > { %v1085_v42 = vmul.f32 %v2017_v25, %v2009_v24  ;;  %1925 = vmatprep.subr.bf16.mxu1 %v2030_v5 }
 0x438   : > { %v1089_v43 = vpack.c.bf16 %v1085_v42, %v1085_v42 }
 0x439   : > { %1926 = vmatpush3.bf16.msra.mxu1 %v1989_v30 }
 0x43a   : > { %1920 = vmatmul.mubr.msk.bf16.vlgmr.msra.gmra.mxu0 %vm857_vm2, %v1089_v43  ;;  %1939 = vmatprep.subr.bf16.mxu1 %v2030_v5 }
 0x43b   : > { %1935 = vmatprep.mubr.msk.bf16.mxu0 %vm2031_vm1, %v2030_v5 }
 0x4ea   : > { %v1131_v44 = vpop.f32.mrf.mxu1 }
 0x4eb   : > { %v1275_v50 = vpack.c.bf16 %v1131_v44, %v1131_v44 }
 0x4ec   : > { %v1903_v45 = vpop.f32.mrf.mxu1 }
 0x4ed   : > { %v1282_v58 = vrot.slane %v1275_v50, %v2161_v39 }
 0x4ee   : > { %v1134_v46 = vpop.f32.mrf.mxu1 }
 0x4f0   : > { %v1904_v47 = vpop.f32.mrf.mxu1 }
 0x4f2   : > { %v1177_v48 = vpop.f32.mrf.mxu0  ;;  %v1223_v49 = vpop.f32.mrf.mxu1 }
 0x4f3   : > { %v1283_v51 = vpack.c.bf16 %v1223_v49, %v1223_v49  ;;  %v1309_v62 = vpack.c.bf16 %v1177_v48, %v1177_v48 }
 0x4f4   : > { %v1909_v52 = vpop.f32.mrf.mxu0  ;;  %v1915_v53 = vpop.f32.mrf.mxu1 }
 0x4f5   : > { %v1290_v54 = vrot.slane %v1283_v51, %v2161_v39  ;;  %v1316_v7 = vrot.slane %v1309_v62, %v2161_v39 }
 0x4f6   : > { %v1180_v55 = vpop.f32.mrf.mxu0  ;;  %v1226_v56 = vpop.f32.mrf.mxu1 }
 0x4f7   : > { %v1291_v61 = vcombine.low %v1282_v58, %v1290_v54  ;;  %v1292_v1 = vcombine.high %v1282_v58, %v1290_v54 }
 0x4f8   : > { %v1910_v59 = vpop.f32.mrf.mxu0  ;;  %v1916_v60 = vpop.f32.mrf.mxu1 }
 0x4f9   : > { %v1299_v6 = vrot.slane %v1291_v61, %v2168_v57  ;;  %v1306_v10 = vrot.slane %v1292_v1, %v2168_v57  ;;  %v1812_v1 = vld [vmem:[%s2365_s5] ss:$0 sm:$0xff] }
 0x4fa   : > { %v1269_v63 = vpop.f32.mrf.mxu0 }
 0x4fb   : > { %v1317_v3 = vpack.c.bf16 %v1269_v63, %v1269_v63  ;;  %v1307_v14 = vcombine.high %v1299_v6, %v2045_v2  ;;  %v1308_v17 = vcombine.high %v1306_v10, %v2045_v2  ;;  %v1347_v18 = vshrl.u32 %v1299_v6, 16 }
 0x4fc   : > { %v1921_v4 = vpop.f32.mrf.mxu0  ;;  %v1363_v24 = vshrl.u32 %v1306_v10, 16 }
 0x4fd   : > { %v1324_v8 = vrot.slane %v1317_v3, %v2161_v39  ;;  %v1355_v23 = vshrl.u32 %v1307_v14, 16  ;;  %v1371_v33 = vshrl.u32 %v1308_v17, 16 }
 0x4fe   : > { %v1272_v9 = vpop.f32.mrf.mxu0 }
 0x4ff   : > { %v1325_v11 = vcombine.low %v1316_v7, %v1324_v8  ;;  %v1326_v12 = vcombine.high %v1316_v7, %v1324_v8 }
 0x500   : > { %v1922_v13 = vpop.f32.mrf.mxu0 }
 0x501   : > { %v1333_v15 = vrot.slane %v1325_v11, %v2168_v57  ;;  %v1340_v16 = vrot.slane %v1326_v12, %v2168_v57  ;;  %v1990_v13 = vld [vmem:[%s2368_s8 + $0x8] sm:$0xff]  }
 0x502   : > { %1932 = vmatpush3.bf16.msra.mxu0 %v1990_v13 }
 0x503   : > { %v1341_v19 = vcombine.high %v1333_v15, %v2045_v2  ;;  %v1342_v20 = vcombine.high %v1340_v16, %v2045_v2  ;;  %v1345_v21 = vpack.i.b16 %v1333_v15, %v1299_v6  ;;  %v1348_v22 = vshrl.u32 %v1333_v15, 16  ;;  %1933 = vmatprep.subr.bf16.mxu0 %v2030_v5 }
 0x504   : > { %v1361_v26 = vpack.i.b16 %v1340_v16, %v1306_v10  ;;  %v1364_v27 = vshrl.u32 %v1340_v16, 16 }
 0x505   : > { %v1349_v28 = vpack.i.b16 %v1348_v22, %v1347_v18  ;;  %v1353_v29 = vpack.i.b16 %v1341_v19, %v1307_v14  ;;  %v1356_v31 = vshrl.u32 %v1341_v19, 16  ;;  %v1369_v32 = vpack.i.b16 %v1342_v20, %v1308_v17 }
 0x506   : > { %v1365_v34 = vpack.i.b16 %v1364_v27, %v1363_v24  ;;  %v1372_v35 = vshrl.u32 %v1342_v20, 16  ;;  %v1375_v36 = vcombine.low %v1345_v21, %v1361_v26  ;;  %v1817_v26 = vld [vmem:[%s2367_s7] ss:$0 sm:$0xff] }
 0x507   : > { %v1357_v37 = vpack.i.b16 %v1356_v31, %v1355_v23  ;;  %v1383_v38 = vcombine.low %v1353_v29, %v1369_v32  ;;  %v1816_v23 = vld [vmem:[%s2366_s6] ss:$0 sm:$0xff]  ;;  %v1992_v31 = vld [vmem:[%s2370_s10 + $0x38] sm:$0xff]   ;;  %v1993_v32 = vld [vmem:[%s2370_s10 + $0x30] sm:$0xff]  }
 0x508   : > { %v1373_v40 = vpack.i.b16 %v1372_v35, %v1371_v33  ;;  %v1400_v41 = vcombine.low %v1349_v28, %v1365_v34  ;;  %v1382_v25 = vrot.slane %v1375_v36, %v2161_v39  ;;  %v1994_v33 = vld [vmem:[%s2370_s10 + $0x28] sm:$0xff]   ;;  %v1995_v34 = vld [vmem:[%s2370_s10 + $0x20] sm:$0xff]   ;;  %v1996_v35 = vld [vmem:[%s2370_s10 + $0x18] sm:$0xff]  }
 0x509   : > { %v1390_v42 = vrot.slane %v1383_v38, %v2161_v39  ;;  %v1997_v36 = vld [vmem:[%s2370_s10 + $0x10] sm:$0xff]   ;;  %v1999_v38 = vld [vmem:[%s2370_s10] sm:$0xff]  }
 0x50a   : > { %v1408_v43 = vcombine.low %v1357_v37, %v1373_v40  ;;  %v1407_v45 = vrot.slane %v1400_v41, %v2161_v39  ;;  %v1998_v37 = vld [vmem:[%s2370_s10 + $0x8] sm:$0xff]   ;;  %v1818_v40 = vld [vmem:[%s2369_s9] ss:$0 sm:$0xff] }
 0x50b   : > { %v1391_v44 = vcombine.low %v1382_v25, %v1390_v42 }
 0x50c   : > { %v1415_v46 = vrot.slane %v1408_v43, %v2161_v39 }
 0x50d   : > { %v1398_v47 = vrot.slane %v1391_v44, %v2168_v57 }
 0x50e   : > { %v1416_v48 = vcombine.low %v1407_v45, %v1415_v46 }
 0x50f   : > { %v1428_v50 = vshrl.u32 %v1398_v47, 16  ;;  %v1399_v52 = vcombine.high %v1398_v47, %v2045_v2 }
 0x510   : > { %v1423_v49 = vrot.slane %v1416_v48, %v2168_v57 }
 0x511   : > { %v1434_v39 = vshrl.u32 %v1399_v52, 16 }
 0x512   : > { %v1429_v51 = vshrl.u32 %v1423_v49, 16  ;;  %v1424_v53 = vcombine.high %v1423_v49, %v2045_v2  ;;  %v1427_v54 = vpack.i.b16 %v1423_v49, %v1398_v47 }
 0x514   : > { %v1430_v55 = vpack.i.b16 %v1429_v51, %v1428_v50  ;;  %v1433_v56 = vpack.i.b16 %v1424_v53, %v1399_v52  ;;  %v1435_v58 = vshrl.u32 %v1424_v53, 16  ;;  %v1822_v53 = vld [vmem:[%s2371_s11] ss:$0 sm:$0xff] }
 0x516   : > { %1437 = vrot.lane.b32.xlu1 %v1430_v55, %s2046_s17  ;;  %1439 = vrot.lane.b32.xlu0 %v1433_v56, %s2047_s18  ;;  %v1436_v59 = vpack.i.b16 %v1435_v58, %v1434_v39 }
 0x51a   : > { %1441 = vrot.lane.b32.xlu1 %v1436_v59, %s2048_s19 }
 0x588   : > { %v1438_v60 = vpop.permute.xlu1 %1437  ;;  %v1440_v61 = vpop.permute.xlu0 %1439 }
 0x589   : > { %v1445_v57 = vsel %vm857_vm2, %v1427_v54, %v1438_v60 }
 0x58a   : > { %v1448_v62 = vsel %vm1446_vm4, %v1445_v57, %v1440_v61 }
 0x58c   : > { %v1442_v2 = vpop.permute.xlu1 %1441 }
 0x58d   : > { %v1451_v63 = vsel %vm1449_vm5, %v1448_v62, %v1442_v2 }
 0x58e   : > { %1928 = vmatmul.mubr.msk.bf16.vlgmr.msra.gmra.mxu1 %vm413_vm0, %v1451_v63 }
 0x58f   : > { %1955 = vmatprep.mubr.msk.bf16.mxu1 %vm2031_vm1, %v2030_v5  ;;  %1940 = vmatpush3.bf16.msra.mxu1 %v1992_v31 }
 0x590   : > { %1941 = vmatprep.subr.bf16.mxu1 %v2030_v5 }
 0x593   : > { %1942 = vmatpush3.bf16.msra.mxu1 %v1993_v32 }
 0x594   : > { %1943 = vmatprep.subr.bf16.mxu1 %v2030_v5 }
 0x597   : > { %1944 = vmatpush3.bf16.msra.mxu1 %v1994_v33 }
 0x598   : > { %1945 = vmatprep.subr.bf16.mxu1 %v2030_v5 }
 0x59b   : > { %1946 = vmatpush3.bf16.msra.mxu1 %v1995_v34 }
 0x59c   : > { %1947 = vmatprep.subr.bf16.mxu1 %v2030_v5 }
 0x59f   : > { %1948 = vmatpush3.bf16.msra.mxu1 %v1996_v35 }
 0x5a0   : > { %1949 = vmatprep.subr.bf16.mxu1 %v2030_v5 }
 0x5a3   : > { %1950 = vmatpush3.bf16.msra.mxu1 %v1997_v36 }
 0x5a4   : > { %1951 = vmatprep.subr.bf16.mxu1 %v2030_v5 }
 0x5a7   : > { %1952 = vmatpush3.bf16.msra.mxu1 %v1998_v37 }
 0x5a8   : > { %1953 = vmatprep.subr.bf16.mxu1 %v2030_v5 }
 0x5ab   : > { %1954 = vmatpush3.bf16.msra.mxu1 %v1999_v38 }
 0x64e   : > { %v1511_v3 = vpop.f32.mrf.mxu1 }
 0x64f   : > { %v1512_v4 = vadd.f32 %v1812_v1, %v1511_v3 }
 0x650   : > { %v1929_v6 = vpop.f32.mrf.mxu1 }
 0x651   : > { %v2291_v7 = vadd.f32 %v1512_v4, %v2130_v0  ;;  %v1991_v0 = vld [vmem:[%s2368_s8] sm:$0xff]  }
 0x652   : > { %v1514_v8 = vpop.f32.mrf.mxu1  ;;  %1934 = vmatpush3.bf16.msra.mxu0 %v1991_v0 }
 0x653   : > { %v1520_v9 = vsel %vm413_vm0, %v2291_v7, 0.0  ;;  %v1524_v10 = vmul.f32 %v2291_v7, %v2291_v7 }
 0x654   : > { %1521 = vadd.xlane.f32.xlu1 %v1520_v9  ;;  %v1930_v11 = vpop.f32.mrf.mxu1 }
 0x655   : > { %v1525_v12 = vsel %vm413_vm0, %v1524_v10, 0.0 }
 0x656   : > { %1526 = vadd.xlane.f32.xlu0 %v1525_v12 }
 0x6dd   : > { %v1522_v14 = vpop.xlane.xlu1 %1521 }
 0x6de   : > { %v1523_v15 = vmul.f32 0.03125, %v1522_v14 }
 0x6df   : > { %v1527_v16 = vpop.xlane.xlu0 %1526 }
 0x6e0   : > { %v1529_v17 = vmul.f32 %v1523_v15, %v1523_v15  ;;  %v1528_v18 = vmul.f32 0.03125, %v1527_v16  ;;  %v1531_v21 = vsub.f32 %v2291_v7, %v1523_v15 }
 0x6e2   : > { %v1530_v19 = vsub.f32 %v1528_v18, %v1529_v17 }
 0x6e4   : > { %v1532_v20 = vadd.f32 1e-05, %v1530_v19 }
 0x6e6   : > { %2018 = vrsqrt.f32 %v1532_v20 }
 0x6f3   : > { %v2019_v22 = vpop.eup %2018 }
 0x6f4   : > { %v1534_v24 = vmul.f32 %v2019_v22, %v1531_v21 }
 0x6f6   : > { %v1541_v27 = vmul.f32 %v1816_v23, %v1534_v24 }
 0x6f8   : > { %v1548_v28 = vadd.f32 %v1817_v26, %v1541_v27 }
 0x6fa   : > { %v1549_v29 = vpack.c.bf16 %v1548_v28, %v1548_v28 }
 0x6fc   : > { %1936 = vmatmul.mubr.msk.bf16.vlgmr.msra.gmra.mxu0 %vm413_vm0, %v1549_v29 }
 0x7bc   : > { %v1610_v41 = vpop.f32.mrf.mxu0 }
 0x7bd   : > { %v1611_v25 = vadd.f32 %v1818_v40, %v1610_v41 }
 0x7be   : > { %v1937_v42 = vpop.f32.mrf.mxu0 }
 0x7bf   : > { %v1616_v43 = vmul.f32 %v1611_v25, %v1611_v25 }
 0x7c0   : > { %v1613_v30 = vpop.f32.mrf.mxu0 }
 0x7c1   : > { %v1617_v44 = vmul.f32 %v1616_v43, %v1611_v25 }
 0x7c2   : > { %v1938_v45 = vpop.f32.mrf.mxu0 }
 0x7c3   : > { %v1618_v46 = vmul.f32 0.044715, %v1617_v44 }
 0x7c5   : > { %v1619_v47 = vadd.f32 %v1618_v46, %v1611_v25 }
 0x7c7   : > { %v1620_v48 = vmul.f32 0.7978846, %v1619_v47 }
 0x7c9   : > { %2020 = vtanh.f32 %v1620_v48 }
 0x7d6   : > { %v2021_v49 = vpop.eup %2020 }
 0x7d7   : > { %v1622_v50 = vadd.f32 1.0, %v2021_v49 }
 0x7d9   : > { %v1623_v5 = vmul.f32 0.5, %v1622_v50 }
 0x7db   : > { %v1624_v51 = vmul.f32 %v1623_v5, %v1611_v25 }
 0x7dd   : > { %v1625_v52 = vpack.c.bf16 %v1624_v51, %v1624_v51 }
 0x7df   : > { %1956 = vmatmul.mubr.bf16.vlgmr.msra.gmra.mxu1 %v1625_v52 }
 0x89f   : > { %v1731_v54 = vpop.f32.mrf.mxu1 }
 0x8a0   : > { %v1732_v55 = vadd.f32 %v1822_v53, %v1731_v54 }
 0x8a1   : > { %v1957_v56 = vpop.f32.mrf.mxu1 }
 0x8a2   : > { %v1737_v58 = vadd.f32 %v1732_v55, %v2291_v7 }
 0x8a3   : > { %v1734_v39 = vpop.f32.mrf.mxu1 }
 0x8a4   : > { %1738 = vst.msk [vmem:[%s408_s25] sm:$0xff] %vm413_vm0, %v1737_v58 }
 0x8a5   : > { %v1958_v59 = vpop.f32.mrf.mxu1 }
 0x8a6 PF: > { %s22_s21 = sadd.s32 1, %s2028_s21  }
 0x8a7   : > { %p19_p4 = scmp.ge.s32.totalorder %s22_s21, 4  }
 0x8a9   :  { %21 = sbr.rel (!%p19_p4) target bundleno = 1 (0x1), region = 98 }

// kernel: basic_block_forward.5
= control target key start
LH: loop header
LB: loop body
LE: loop exit
PB: predicated region body
PF: predicated region fallthrough
CT: control target
= control target key end

     0   :  { %9 = vsyncpa [#allocation3], 0  ;;  %s670_s0 = inlined_call_operand.vmem [shape: f32[2,4,64], index: 0, kind: input, shape index: {}]   ;;  %s671_s1 = inlined_call_operand.vmem [shape: f32[1,64], index: 1, kind: input, shape index: {}]   ;;  %s672_s2 = inlined_call_operand.vmem [shape: f32[1,64], index: 2, kind: input, shape index: {}]   ;;  %s673_s3 = inlined_call_operand.vmem [shape: bf16[64,64], index: 3, kind: input, shape index: {}]   ;;  %s674_s4 = inlined_call_operand.hbm [shape: f32[2,4,64], index: 4, kind: output, shape index: {}]  }
   0x1   :  { %11 = vsyncpa [#allocation3 + $0x1], 0  ;;  %s550_s15 = smov 0   ;;  %s552_s16 = smov 0  }
   0x2   :  { %s554_s17 = smov 0   ;;  %s556_s18 = smov 0  }
   0x3 LB: > { %s571_s19 = sadd.s32 4294967295, %s520_s18   ;;  %s379_s20 = sadd.s32 4294967294, %s520_s18   ;;  %s520_s18 = sphi %s556_s18, %s680_s18   ;;  %s516_s17 = sphi %s554_s17, %s679_s17   ;;  %s512_s16 = sphi %s552_s16, %s678_s16   ;;  %s508_s15 = sphi %s550_s15, %s677_s15  }
   0x4   : > { %s575_s21 = sadd.s32 1, %s520_s18   ;;  %s113_s22 = sadd.s32 1, %s516_s17 }
   0x5   : > { %s110_s23 = ssub.s32 %s520_s18, %s575_s21  ;;  %p123_p0 = scmp.ne.s32.totalorder %s516_s17, %s512_s16 }
   0x6   : > { %p111_p1 = scmp.eq.s32.totalorder %s110_s23, 0  ;;  %p124_p2 = scmp.eq.s32.totalorder %s571_s19, 1 }
   0x7   : > { %p129_p3 = scmp.ne.s32.totalorder %s512_s16, %s508_s15  ;;  %p130_p4 = scmp.eq.s32.totalorder %s379_s20, 1 }
   0x8   : > { %s586_s24 = scalar_select %p111_p1, %s516_s17, %s113_s22  }
   0x9   : > { %p588_p5 = por %p124_p2, %p123_p0  ;;  %p592_p6 = por %p130_p4, %p129_p3 }
   0xa   : > { %p382_p7 = scmp.ge.s32.totalorder %s520_s18, 1  ;;  %p164_p8 = scmp.lt.s32.totalorder %s520_s18, 3 }
   0xc   : > { %p165_p9 = pnand %p382_p7, %p164_p8 }
   0xd   : > { %p189_p10 = scmp.lt.s32.totalorder (!%p165_p9), %s571_s19, 1  ;;  %s393_s29 = sshll.u32 (!%p165_p9), %s571_s19, 6 }
   0xe   : > { %168 = sbr.rel (%p165_p9) target bundleno = 404 (0x194), region = 36  ;;  %s628_s8 = scalar_lea.hbm (!%p165_p9), %s674_s4, %s393_s29 }
  0x13   : > { %s190_s27 = scalar_select %p189_p10, %s571_s19, 1  ;;  %vm197_vm0 = vcmask 519168   ;;  %v454_v4 = vld [vmem:[%s673_s3 + $0x18] sm:$0xff]   ;;  %v522_v5 = vmov 0.0   ;;  %vm523_vm1 = vmmov 0   ;;  %v455_v6 = vld [vmem:[%s673_s3 + $0x10] sm:$0xff]  }
  0x14   : > { %401 = vmatprep.subr.bf16.mxu0 %v522_v5  ;;  %409 = vmatprep.mubr.msk.bf16.mxu0 %vm523_vm1, %v522_v5  ;;  %v456_v7 = vld [vmem:[%s673_s3 + $0x8] sm:$0xff]   ;;  %v457_v8 = vld [vmem:[%s673_s3] sm:$0xff]   ;;  %vm261_vm2 = vcmask 523264   ;;  %s524_s19 = smov [#allocation2]  }
  0x15   : > { %s384_s28 = sshll.u32 %s190_s27, 2  ;;  %402 = vmatpush3.bf16.msra.mxu0 %v454_v4  ;;  %v385_v18 = vld [vmem:[%s671_s1] ss:$0 sm:$0xff]  ;;  %s186_s27 = sand.u32 1, %s512_s16  }
  0x16   : > { %s192_s5 = scalar_lea.vmem %s670_s0, %s384_s28  ;;  %403 = vmatprep.subr.bf16.mxu0 %v522_v5  ;;  %v386_v20 = vld [vmem:[%s672_s2] ss:$0 sm:$0xff]  ;;  %s383_s28 = sshll.u32 %s186_s27, 2 }
  0x17   : > { %v194_v0 = vld [vmem:[%s192_s5] sm:$0xf]  ;;  %s188_s30 = scalar_lea.vmem [#allocation2], %s383_s28  ;;  %s307_s9 = scalar_lea.sflag [#allocation3], %s186_s27 }
  0x18   : > { %v198_v1 = vsel %vm197_vm0, %v194_v0, 0.0  ;;  %v203_v2 = vmul.f32 %v194_v0, %v194_v0  ;;  %s320_s5 = sshll.u32 %s188_s30, 4  ;;  %s464_s11 = sshll.u32 %s524_s19, 4  ;;  %s630_s5 = int_to_ptr.vmem [resolvable:$true] %s320_s5  ;;  %s465_s11 = int_to_ptr.vmem [resolvable:$false] %s464_s11 }
  0x19   : > { %199 = vadd.xlane.f32.xlu0 %v198_v1  ;;  %404 = vmatpush3.bf16.msra.mxu0 %v455_v6  ;;  %s460_s10 = scalar_lea.vmem %s630_s5, 64  ;;  %s466_s12 = scalar_lea.vmem %s465_s11, 128 }
  0x1a   : > { %v204_v3 = vsel %vm197_vm0, %v203_v2, 0.0  ;;  %405 = vmatprep.subr.bf16.mxu0 %v522_v5  ;;  %p461_p11 = scmp.ne.s32.totalorder %s630_s5, %s460_s10  ;;  %p467_p0 = scmp.lt.s32.totalorder %s630_s5, %s465_s11 }
  0x1b   : > { %p468_p1 = scmp.lt.s32.totalorder %s466_s12, %s460_s10 }
  0x1c   : > { %p462_p12 = pnand %p461_p11, %p588_p5 }
  0x1d   : > { %205 = vadd.xlane.f32.xlu0 %v204_v3  ;;  %406 = vmatpush3.bf16.msra.mxu0 %v456_v7  ;;  %p469_p2 = por %p468_p1, %p467_p0 }
  0x1e   : > { %407 = vmatprep.subr.bf16.mxu0 %v522_v5  ;;  %p463_p13 = pneg %p462_p12 }
  0x20   : > { %p470_p3 = pnand %p469_p2, %p463_p13 }
  0x21   : > { %408 = vmatpush3.bf16.msra.mxu0 %v457_v8 }
  0xa2   : > { %v200_v9 = vpop.xlane.xlu0 %199 }
  0xa3   : > { %v202_v10 = vmul.f32 0.015625, %v200_v9 }
  0xa5   : > { %v208_v12 = vmul.f32 %v202_v10, %v202_v10  ;;  %v210_v16 = vsub.f32 %v194_v0, %v202_v10 }
  0xa6   : > { %v206_v11 = vpop.xlane.xlu0 %205 }
  0xa7   : > { %v207_v13 = vmul.f32 0.015625, %v206_v11 }
  0xa9   : > { %v209_v14 = vsub.f32 %v207_v13, %v208_v12 }
  0xab   : > { %v211_v15 = vadd.f32 1e-05, %v209_v14 }
  0xad   : > { %458 = vrsqrt.f32 %v211_v15 }
  0xba   : > { %v459_v17 = vpop.eup %458 }
  0xbb   : > { %v213_v19 = vmul.f32 %v459_v17, %v210_v16 }
  0xbd   : > { %v220_v21 = vmul.f32 %v385_v18, %v213_v19 }
  0xbf   : > { %v227_v22 = vadd.f32 %v386_v20, %v220_v21 }
  0xc1   : > { %v228_v23 = vpack.c.bf16 %v227_v22, %v227_v22 }
  0xc3   : > { %410 = vmatmul.mubr.msk.bf16.vlgmr.msra.gmra.mxu0 %vm261_vm2, %v228_v23 }
 0x183   : > { %v299_v24 = vpop.f32.mrf.mxu0 }
 0x184   : > { %305 = vst.msk [vmem:[%s188_s30] sm:$0xf] %vm197_vm0, %v299_v24 }
 0x185   : > { %v411_v25 = vpop.f32.mrf.mxu0 }
 0x186   : > { %473 = shalt.err (!%p470_p3)
}
 0x187   : > { %s474_s13 = scalar_lea.hbm %s628_s8, 64  ;;  %s478_s22 = scalar_lea.hbm %s674_s4, 128 }
 0x188   : > { %p475_p4 = scmp.ne.s32.totalorder %s628_s8, %s474_s13  ;;  %p479_p9 = scmp.lt.s32.totalorder %s628_s8, %s674_s4 }
 0x189   : > { %p480_p10 = scmp.lt.s32.totalorder %s478_s22, %s474_s13 }
 0x18a   : > { %p476_p7 = pnand %p475_p4, %p588_p5 }
 0x18b   : > { %p481_p11 = por %p480_p10, %p479_p9 }
 0x18c   : > { %p477_p8 = pneg %p476_p7 }
 0x18e   : > { %p482_p12 = pnand %p481_p11, %p477_p8 }
 0x190   : > { %485 = shalt.err (!%p482_p12)
}
 0x191   : > { %413 = dma.vmem_to_hbm [thread:$0]  (%p588_p5), %s630_s5, 64, %s628_s8, %s307_s9   ;;  %v302_v26 = vpop.f32.mrf.mxu0 }
 0x193   : > { %v412_v27 = vpop.f32.mrf.mxu0 }
 0x194 PF: > { %p419_p13 = scmp.ge.s32.totalorder %s520_s18, 2  ;;  %s332_s28 = sand.u32 1, %s508_s15  }
 0x195   : > { %s333_s29 = scalar_lea.sflag [#allocation3], %s332_s28 }
 0x196   : > { %p416_p0 = pnand %p419_p13, %p592_p6 }
 0x198   : > { %p417_p1 = pneg %p416_p0 }
 0x19a   : > { %503 = dma.done.wait (%p417_p1), %s333_s29, 64  }
 0x19b   : > { %505 = vsyncadd (%p417_p1), %s333_s29, 4294967232  ;;  %p14_p5 = scmp.ge.s32.totalorder %s575_s21, 4   ;;  %s677_s15 = smov %s512_s16 }
 0x19c   : > { %s678_s16 = smov %s516_s17  ;;  %s679_s17 = smov %s586_s24 }
 0x19d   : > { %s680_s18 = smov %s575_s21  ;;  %16 = sbr.rel (!%p14_p5) target bundleno = 3 (0x3), region = 71 }
 0x1a2   :  { %338 = vsyncpa [#allocation3], 1 }
 0x1a3   :  { %340 = vsyncpa [#allocation3 + $0x1], 1 }

// kernel: basic_block_forward.3
= control target key start
LH: loop header
LB: loop body
LE: loop exit
PB: predicated region body
PF: predicated region fallthrough
CT: control target
= control target key end

     0   :  { %s2114_s21 = smov 0   ;;  %s2360_s0 = inlined_call_operand.vmem [shape: f32[2,8,32], index: 0, kind: input, shape index: {}]   ;;  %s2361_s1 = inlined_call_operand.vmem [shape: f32[1,32], index: 1, kind: input, shape index: {}]   ;;  %s2362_s2 = inlined_call_operand.vmem [shape: f32[1,32], index: 2, kind: input, shape index: {}]   ;;  %s2363_s3 = inlined_call_operand.vmem [shape: bf16[32,96], index: 3, kind: input, shape index: {}]   ;;  %s2364_s4 = inlined_call_operand.vmem [shape: bf16[32,32], index: 4, kind: input, shape index: {}]   ;;  %s2365_s5 = inlined_call_operand.vmem [shape: f32[1,32], index: 5, kind: input, shape index: {}]   ;;  %s2366_s6 = inlined_call_operand.vmem [shape: f32[1,32], index: 6, kind: input, shape index: {}]   ;;  %s2367_s7 = inlined_call_operand.vmem [shape: f32[1,32], index: 7, kind: input, shape index: {}]   ;;  %s2368_s8 = inlined_call_operand.vmem [shape: bf16[32,128], index: 8, kind: input, shape index: {}]   ;;  %s2369_s9 = inlined_call_operand.vmem [shape: f32[1,128], index: 9, kind: input, shape index: {}]   ;;  %s2370_s10 = inlined_call_operand.vmem [shape: bf16[128,32], index: 10, kind: input, shape index: {}]   ;;  %s2371_s11 = inlined_call_operand.vmem [shape: f32[1,32], index: 11, kind: input, shape index: {}]   ;;  %s2372_s12 = inlined_call_operand.vmem [shape: f32[2,8,32], index: 12, kind: output, shape index: {}]  }
   0x1 LB: > { %s1792_s22 = sadd.s32 4294967295, %s2028_s21   ;;  %p1796_p0 = scmp.ge.s32.totalorder %s2028_s21, 1  ;;  %s2028_s21 = sphi %s2114_s21, %s22_s21  }
   0x2   : > { %p361_p1 = scmp.lt.s32.totalorder %s2028_s21, 3 }
   0x4   : > { %p362_p2 = pnand %p1796_p0, %p361_p1 }
   0x5   : > { %p401_p3 = scmp.lt.s32.totalorder (!%p362_p2), %s1792_s22, 1  ;;  %s2032_s17 = smov (!%p362_p2), 104  }
   0x6   : > { %365 = sbr.rel (%p362_p2) target bundleno = 2214 (0x8a6), region = 68  ;;  %s2033_s18 = smov (!%p362_p2), 120  }
   0x7   : > { %s2034_s19 = smov (!%p362_p2), 48   ;;  %s2035_s20 = smov (!%p362_p2), 112  }
   0x8   : > { %s2036_s24 = smov (!%p362_p2), 96   ;;  %s2037_s25 = smov (!%p362_p2), 88  }
   0x9   : > { %s2039_s27 = smov (!%p362_p2), 72   ;;  %s2040_s28 = smov (!%p362_p2), 64  }
   0xa   : > { %s2041_s29 = smov (!%p362_p2), 56   ;;  %s2042_s30 = smov (!%p362_p2), 40  }
   0xb   : > { %s2374_s22 = smov (!%p401_p3, %s1792_s22), 1  ;;  %vm413_vm0 = vcmask 261120   ;;  %v1986_v4 = vld [vmem:[%s2363_s3 + $0x8] sm:$0xff]   ;;  %v2030_v5 = vmov 0.0   ;;  %vm2031_vm1 = vmmov 0   ;;  %v1987_v6 = vld [vmem:[%s2363_s3] sm:$0xff]   ;;  %v539_v33 = vlaneseq }
   0xc   : > { %s1797_s23 = sshll.u32 %s2374_s22, 3  ;;  %1867 = vmatprep.subr.bf16.mxu0 %v2030_v5  ;;  %1871 = vmatprep.mubr.msk.bf16.mxu0 %vm2031_vm1, %v2030_v5  ;;  %v1799_v16 = vld [vmem:[%s2361_s1] ss:$0 sm:$0xff]  ;;  %v2043_v31 = vmov 1983009808   ;;  %vm857_vm2 = vcmask 64512  }
   0xd   : > { %s404_s26 = scalar_lea.vmem %s2360_s0, %s1797_s23  ;;  %1868 = vmatpush3.bf16.msra.mxu0 %v1986_v4  ;;  %1887 = vmatprep.subr.bf16.mxu1 %v2030_v5  ;;  %v1800_v18 = vld [vmem:[%s2362_s2] ss:$0 sm:$0xff]  ;;  %v537_v32 = vunpack.c.l.s4 %v2043_v31  ;;  %v540_v37 = vshrl.u32 %v539_v33, 7  ;;  %v2044_v40 = vmov 1934713408   ;;  %vm1093_vm3 = vcmask 1043456  }
   0xe   : > { %v2130_v0 = vld [vmem:[%s404_s26] sm:$0xff]  ;;  %1869 = vmatprep.subr.bf16.mxu0 %v2030_v5  ;;  %1889 = vmatprep.mubr.msk.bf16.mxu1 %vm2031_vm1, %v2030_v5  ;;  %s2038_s26 = smov 80   ;;  %v570_v41 = vunpack.c.l.s4 %v2044_v40  ;;  %vm1446_vm4 = vcmask 130048   ;;  %vm1449_vm5 = vcmask 195584  }
   0xf   : > { %v414_v1 = vsel %vm413_vm0, %v2130_v0, 0.0  ;;  %v419_v2 = vmul.f32 %v2130_v0, %v2130_v0  ;;  %v538_v36 = vunpack.c.0.s8 %v537_v32 }
  0x10   : > { %415 = vadd.xlane.f32.xlu0 %v414_v1  ;;  %v571_v49 = vunpack.c.0.s8 %v570_v41 }
  0x11   : > { %v420_v3 = vsel %vm413_vm0, %v419_v2, 0.0  ;;  %1870 = vmatpush3.bf16.msra.mxu0 %v1987_v6  ;;  %v2161_v39 = vsub.s32 %v538_v36, %v540_v37 }
  0x12   : > { %1875 = vmatprep.subr.bf16.mxu0 %v2030_v5  ;;  %v2168_v57 = vsub.s32 %v571_v49, %v540_v37 }
  0x14   : > { %421 = vadd.xlane.f32.xlu0 %v420_v3 }
  0x99   : > { %v416_v7 = vpop.xlane.xlu0 %415 }
  0x9a   : > { %v418_v8 = vmul.f32 0.03125, %v416_v7 }
  0x9c   : > { %v424_v10 = vmul.f32 %v418_v8, %v418_v8  ;;  %v426_v14 = vsub.f32 %v2130_v0, %v418_v8 }
  0x9d   : > { %v422_v9 = vpop.xlane.xlu0 %421 }
  0x9e   : > { %v423_v11 = vmul.f32 0.03125, %v422_v9 }
  0xa0   : > { %v425_v12 = vsub.f32 %v423_v11, %v424_v10 }
  0xa2   : > { %v427_v13 = vadd.f32 1e-05, %v425_v12 }
  0xa4   : > { %2000 = vrsqrt.f32 %v427_v13 }
  0xb1   : > { %v2001_v15 = vpop.eup %2000 }
  0xb2   : > { %v429_v17 = vmul.f32 %v2001_v15, %v426_v14 }
  0xb4   : > { %v436_v19 = vmul.f32 %v1799_v16, %v429_v17 }
  0xb6   : > { %v443_v20 = vadd.f32 %v1800_v18, %v436_v19 }
  0xb8   : > { %v444_v21 = vpack.c.bf16 %v443_v20, %v443_v20 }
  0xba   : > { %1872 = vmatmul.mubr.msk.bf16.vlgmr.msra.gmra.mxu0 %vm413_vm0, %v444_v21 }
  0xbb   : > { %1877 = vmatprep.mubr.msk.bf16.mxu0 %vm2031_vm1, %v2030_v5 }
 0x17a   : > { %v498_v22 = vpop.f32.mrf.mxu0 }
 0x17b   : > { %v504_v23 = vpack.c.bf16 %v498_v22, %v498_v22 }
 0x17c   : > { %v1873_v24 = vpop.f32.mrf.mxu0 }
 0x17d   : > { %512 = vrot.lane.b32.xlu0 %v504_v23, %s2032_s17  ;;  %506 = vrot.lane.b32.xlu1 %v504_v23, %s2033_s18  ;;  %s2046_s17 = smov 8   ;;  %s2047_s18 = smov 16  }
 0x17e   : > { %v501_v25 = vpop.f32.mrf.mxu0 }
 0x180   : > { %v1874_v26 = vpop.f32.mrf.mxu0 }
 0x181   : > { %531 = vrot.lane.b32.xlu0 %v504_v23, %s2034_s19  ;;  %509 = vrot.lane.b32.xlu1 %v504_v23, %s2035_s20  ;;  %s2048_s19 = smov 24  }
 0x185   : > { %515 = vrot.lane.b32.xlu1 %v504_v23, %s2036_s24 }
 0x189   : > { %518 = vrot.lane.b32.xlu1 %v504_v23, %s2037_s25  ;;  %s408_s25 = scalar_lea.vmem %s2372_s12, %s1797_s23 }
 0x18d   : > { %521 = vrot.lane.b32.xlu1 %v504_v23, %s2038_s26 }
 0x191   : > { %524 = vrot.lane.b32.xlu1 %v504_v23, %s2039_s27 }
 0x195   : > { %527 = vrot.lane.b32.xlu1 %v504_v23, %s2040_s28 }
 0x199   : > { %529 = vrot.lane.b32.xlu1 %v504_v23, %s2041_s29 }
 0x19d   : > { %533 = vrot.lane.b32.xlu1 %v504_v23, %s2042_s30 }
 0x1ef   : > { %v507_v27 = vpop.permute.xlu1 %506  ;;  %v513_v35 = vpop.permute.xlu0 %512 }
 0x1f3   : > { %v510_v28 = vpop.permute.xlu1 %509  ;;  %v532_v43 = vpop.permute.xlu0 %531 }
 0x1f4   : > { %v566_v48 = vrot.slane %v532_v43, %v2161_v39 }
 0x1f7   : > { %v516_v29 = vpop.permute.xlu1 %515 }
 0x1f8   : > { %v535_v45 = vcombine.low %v504_v23, %v516_v29 }
 0x1fa   : > { %v542_v53 = vrot.slane %v535_v45, %v2161_v39 }
 0x1fb   : > { %v519_v30 = vpop.permute.xlu1 %518 }
 0x1fc   : > { %v603_v51 = vcombine.low %v507_v27, %v519_v30 }
 0x1fe   : > { %v610_v60 = vrot.slane %v603_v51, %v2161_v39 }
 0x1ff   : > { %v522_v34 = vpop.permute.xlu1 %521 }
 0x200   : > { %v543_v42 = vcombine.low %v510_v28, %v522_v34 }
 0x202   : > { %v550_v50 = vrot.slane %v543_v42, %v2161_v39 }
 0x203   : > { %v525_v38 = vpop.permute.xlu1 %524 }
 0x204   : > { %v611_v47 = vcombine.low %v513_v35, %v525_v38  ;;  %v567_v58 = vcombine.low %v542_v53, %v550_v50  ;;  %v568_v59 = vcombine.high %v542_v53, %v550_v50 }
 0x206   : > { %v618_v56 = vrot.slane %v611_v47, %v2161_v39  ;;  %v575_v6 = vrot.slane %v567_v58, %v2168_v57  ;;  %v582_v7 = vrot.slane %v568_v59, %v2168_v57 }
 0x207   : > { %v528_v44 = vpop.permute.xlu1 %527 }
 0x208   : > { %v558_v46 = vrot.slane %v528_v44, %v2161_v39  ;;  %v635_v1 = vcombine.low %v610_v60, %v618_v56  ;;  %v636_v2 = vcombine.high %v610_v60, %v618_v56 }
 0x20a   : > { %v583_v54 = vcombine.low %v558_v46, %v566_v48  ;;  %v584_v55 = vcombine.high %v558_v46, %v566_v48  ;;  %v643_v14 = vrot.slane %v635_v1, %v2168_v57  ;;  %v650_v15 = vrot.slane %v636_v2, %v2168_v57 }
 0x20b   : > { %v530_v52 = vpop.permute.xlu1 %529  ;;  %v2045_v2 = vmov 0  }
 0x20c   : > { %v591_v62 = vrot.slane %v583_v54, %v2168_v57  ;;  %v598_v63 = vrot.slane %v584_v55, %v2168_v57  ;;  %v626_v3 = vrot.slane %v530_v52, %v2161_v39 }
 0x20e   : > { %v599_v10 = vcombine.low %v575_v6, %v591_v62  ;;  %v600_v11 = vcombine.high %v575_v6, %v591_v62  ;;  %v601_v12 = vcombine.low %v582_v7, %v598_v63  ;;  %v602_v13 = vcombine.high %v582_v7, %v598_v63 }
 0x20f   : > { %v534_v61 = vpop.permute.xlu1 %533 }
 0x210   : > { %v634_v4 = vrot.slane %v534_v61, %v2161_v39  ;;  %v675_v22 = vshrl.u32 %v599_v10, 16  ;;  %v683_v23 = vshrl.u32 %v600_v11, 16  ;;  %v691_v24 = vshrl.u32 %v601_v12, 16 }
 0x211   : > { %v699_v25 = vshrl.u32 %v602_v13, 16 }
 0x212   : > { %v651_v8 = vcombine.low %v626_v3, %v634_v4  ;;  %v652_v9 = vcombine.high %v626_v3, %v634_v4 }
 0x214   : > { %v659_v16 = vrot.slane %v651_v8, %v2168_v57  ;;  %v666_v17 = vrot.slane %v652_v9, %v2168_v57 }
 0x216   : > { %v667_v18 = vcombine.low %v643_v14, %v659_v16  ;;  %v668_v19 = vcombine.high %v643_v14, %v659_v16  ;;  %v669_v20 = vcombine.low %v650_v15, %v666_v17  ;;  %v670_v21 = vcombine.high %v650_v15, %v666_v17 }
 0x218   : > { %v673_v26 = vpack.i.b16 %v667_v18, %v599_v10  ;;  %v676_v27 = vshrl.u32 %v667_v18, 16  ;;  %v681_v28 = vpack.i.b16 %v668_v19, %v600_v11  ;;  %v684_v29 = vshrl.u32 %v668_v19, 16 }
 0x219   : > { %v689_v30 = vpack.i.b16 %v669_v20, %v601_v12  ;;  %v692_v31 = vshrl.u32 %v669_v20, 16  ;;  %v697_v32 = vpack.i.b16 %v670_v21, %v602_v13  ;;  %v700_v33 = vshrl.u32 %v670_v21, 16 }
 0x21a   : > { %v677_v34 = vpack.i.b16 %v676_v27, %v675_v22  ;;  %v685_v35 = vpack.i.b16 %v684_v29, %v683_v23 }
 0x21b   : > { %v693_v36 = vpack.i.b16 %v692_v31, %v691_v24  ;;  %v701_v37 = vpack.i.b16 %v700_v33, %v699_v25  ;;  %v703_v38 = vcombine.low %v673_v26, %v689_v30  ;;  %v704_v40 = vcombine.high %v673_v26, %v689_v30 }
 0x21c   : > { %v719_v41 = vcombine.low %v681_v28, %v697_v32  ;;  %v720_v42 = vcombine.high %v681_v28, %v697_v32 }
 0x21d   : > { %v711_v43 = vrot.slane %v703_v38, %v2161_v39  ;;  %v762_v44 = vcombine.low %v677_v34, %v693_v36  ;;  %v763_v45 = vcombine.high %v677_v34, %v693_v36  ;;  %v778_v47 = vcombine.low %v685_v35, %v701_v37 }
 0x21e   : > { %v727_v46 = vrot.slane %v719_v41, %v2161_v39  ;;  %v779_v48 = vcombine.high %v685_v35, %v701_v37  ;;  %v718_v49 = vrot.slane %v704_v40, %v2161_v39  ;;  %v734_v50 = vrot.slane %v720_v42, %v2161_v39 }
 0x21f   : > { %v770_v51 = vrot.slane %v762_v44, %v2161_v39  ;;  %v777_v52 = vrot.slane %v763_v45, %v2161_v39  ;;  %v786_v54 = vrot.slane %v778_v47, %v2161_v39 }
 0x220   : > { %v736_v53 = vcombine.high %v711_v43, %v727_v46  ;;  %v793_v55 = vrot.slane %v779_v48, %v2161_v39  ;;  %v751_v59 = vcombine.low %v718_v49, %v734_v50  ;;  %v735_v63 = vcombine.low %v711_v43, %v727_v46 }
 0x221   : > { %v795_v58 = vcombine.high %v770_v51, %v786_v54  ;;  %v794_v61 = vcombine.low %v770_v51, %v786_v54 }
 0x222   : > { %v750_v56 = vrot.slane %v736_v53, %v2168_v57  ;;  %v810_v60 = vcombine.low %v777_v52, %v793_v55  ;;  %v758_v6 = vrot.slane %v751_v59, %v2168_v57  ;;  %v743_v13 = vrot.slane %v735_v63, %v2168_v57 }
 0x223   : > { %v809_v62 = vrot.slane %v795_v58, %v2168_v57  ;;  %v802_v10 = vrot.slane %v794_v61, %v2168_v57 }
 0x224   : > { %v760_v3 = vcombine.high %v750_v56, %v2045_v2  ;;  %v817_v7 = vrot.slane %v810_v60, %v2168_v57  ;;  %v836_v14 = vshrl.u32 %v750_v56, 16  ;;  %v761_v15 = vcombine.high %v758_v6, %v2045_v2 }
 0x225   : > { %v835_v1 = vpack.i.b16 %v809_v62, %v750_v56  ;;  %v819_v4 = vcombine.high %v809_v62, %v2045_v2  ;;  %v837_v11 = vshrl.u32 %v809_v62, 16  ;;  %v818_v18 = vcombine.high %v802_v10, %v2045_v2 }
 0x226   : > { %v820_v16 = vcombine.high %v817_v7, %v2045_v2  ;;  %v854_v20 = vshrl.u32 %v761_v15, 16  ;;  %v823_v22 = vpack.i.b16 %v802_v10, %v743_v13  ;;  %v759_v23 = vcombine.high %v743_v13, %v2045_v2 }
 0x227   : > { %v862_v8 = vsel %vm857_vm2, %v835_v1, 0  ;;  %v841_v9 = vpack.i.b16 %v819_v4, %v760_v3  ;;  %v838_v17 = vpack.i.b16 %v837_v11, %v836_v14  ;;  %v847_v24 = vpack.i.b16 %v817_v7, %v758_v6 }
 0x228   : > { %1876 = vmatpush3.bf16.xpose.msra.mxu0 %v862_v8  ;;  %v853_v19 = vpack.i.b16 %v820_v16, %v761_v15  ;;  %v855_v21 = vshrl.u32 %v820_v16, 16  ;;  %v843_v27 = vshrl.u32 %v819_v4, 16  ;;  %v829_v29 = vpack.i.b16 %v818_v18, %v759_v23 }
 0x229   : > { %v954_v12 = vsel %vm857_vm2, %v841_v9, 0  ;;  %1881 = vmatprep.subr.bf16.mxu0 %v2030_v5  ;;  %v908_v28 = vsel %vm857_vm2, %v838_v17, 0  ;;  %v842_v31 = vshrl.u32 %v760_v3, 16  ;;  %v1095_v32 = vsel %vm1093_vm3, %v847_v24, 0 }
 0x22a   : > { %1888 = vmatpush3.bf16.xpose.msra.mxu1 %v954_v12  ;;  %v2206_v25 = vsel %vm1093_vm3, %v853_v19, 0  ;;  %v856_v26 = vpack.i.b16 %v855_v21, %v854_v20  ;;  %v825_v33 = vshrl.u32 %v802_v10, 16  ;;  %v824_v34 = vshrl.u32 %v743_v13, 16 }
 0x22b   : > { %1899 = vmatprep.subr.bf16.mxu1 %v2030_v5  ;;  %v844_v35 = vpack.i.b16 %v843_v27, %v842_v31  ;;  %v849_v38 = vshrl.u32 %v817_v7, 16  ;;  %v831_v40 = vshrl.u32 %v818_v18, 16  ;;  %v848_v41 = vshrl.u32 %v758_v6, 16 }
 0x22c   : > { %v2213_v30 = vsel %vm1093_vm3, %v856_v26, 0  ;;  %v826_v36 = vpack.i.b16 %v825_v33, %v824_v34  ;;  %v830_v42 = vshrl.u32 %v759_v23, 16 }
 0x22d   : > { %v1000_v37 = vsel %vm857_vm2, %v844_v35, 0  ;;  %v850_v43 = vpack.i.b16 %v849_v38, %v848_v41 }
 0x22e   : > { %v832_v44 = vpack.i.b16 %v831_v40, %v830_v42 }
 0x22f   : > { %1878 = vmatmul.mubr.msk.bf16.vlgmr.msra.gmra.mxu0 %vm857_vm2, %v823_v22  ;;  %v1141_v45 = vsel %vm1093_vm3, %v850_v43, 0 }
 0x230   : > { %1882 = vmatpush3.bf16.xpose.msra.mxu0 %v908_v28  ;;  %1883 = vmatprep.mubr.msk.bf16.mxu0 %vm2031_vm1, %v2030_v5 }
 0x231   : > { %1890 = vmatmul.mubr.msk.bf16.vlgmr.msra.gmra.mxu1 %vm857_vm2, %v829_v29  ;;  %1893 = vmatprep.subr.bf16.mxu0 %v2030_v5 }
 0x232   : > { %1900 = vmatpush3.bf16.msra.mxu1 %v1095_v32  ;;  %1901 = vmatprep.mubr.msk.bf16.mxu1 %vm2031_vm1, %v2030_v5 }
 0x233   : > { %1911 = vmatprep.subr.bf16.mxu1 %v2030_v5 }
 0x237   : > { %1884 = vmatmul.mubr.msk.bf16.vlgmr.msra.gmra.mxu0 %vm857_vm2, %v826_v36 }
 0x238   : > { %1894 = vmatpush3.bf16.xpose.msra.mxu0 %v1000_v37  ;;  %1895 = vmatprep.mubr.msk.bf16.mxu0 %vm2031_vm1, %v2030_v5 }
 0x239   : > { %1905 = vmatprep.subr.bf16.mxu0 %v2030_v5 }
 0x23f   : > { %1896 = vmatmul.mubr.msk.bf16.vlgmr.msra.gmra.mxu0 %vm857_vm2, %v832_v44 }
 0x240   : > { %1906 = vmatpush3.bf16.msra.mxu0 %v1141_v45  ;;  %1907 = vmatprep.mubr.msk.bf16.mxu0 %vm2031_vm1, %v2030_v5 }
 0x241   : > { %1917 = vmatprep.subr.bf16.mxu0 %v2030_v5 }
 0x2ef   : > { %v898_v46 = vpop.f32.mrf.mxu0 }
 0x2f0   : > { %v1042_v47 = vsel %vm857_vm2, %v898_v46, -inf }
 0x2f1   : > { %v990_v48 = vpop.f32.mrf.mxu1  ;;  %1043 = vmax.xlane.f32.xlu0 %v1042_v47  ;;  %v1879_v49 = vpop.f32.mrf.mxu0 }
 0x2f2   : > { %v1048_v52 = vsel %vm857_vm2, %v990_v48, -inf }
 0x2f3   : > { %v901_v50 = vpop.f32.mrf.mxu0  ;;  %v1891_v51 = vpop.f32.mrf.mxu1 }
 0x2f5   : > { %v993_v53 = vpop.f32.mrf.mxu1  ;;  %1049 = vmax.xlane.f32.xlu0 %v1048_v52  ;;  %v1880_v54 = vpop.f32.mrf.mxu0 }
 0x2f7   : > { %v944_v55 = vpop.f32.mrf.mxu0  ;;  %v1892_v56 = vpop.f32.mrf.mxu1 }
 0x2f8   : > { %v1045_v58 = vsel %vm857_vm2, %v944_v55, -inf }
 0x2f9   : > { %1046 = vmax.xlane.f32.xlu1 %v1045_v58  ;;  %v1885_v59 = vpop.f32.mrf.mxu0 }
 0x2fb   : > { %v947_v60 = vpop.f32.mrf.mxu0 }
 0x2fd   : > { %v1886_v61 = vpop.f32.mrf.mxu0 }
 0x2ff   : > { %v1036_v62 = vpop.f32.mrf.mxu0 }
 0x300   : > { %v1051_v63 = vsel %vm857_vm2, %v1036_v62, -inf }
 0x301   : > { %1052 = vmax.xlane.f32.xlu0 %v1051_v63  ;;  %v1897_v1 = vpop.f32.mrf.mxu0 }
 0x303   : > { %v1039_v3 = vpop.f32.mrf.mxu0 }
 0x305   : > { %v1898_v4 = vpop.f32.mrf.mxu0 }
 0x37a   : > { %v1044_v6 = vpop.xlane.xlu0 %1043 }
 0x37b   : > { %v1054_v7 = vsub.f32 %v898_v46, %v1044_v6 }
 0x37d   : > { %v1058_v8 = vmul.f32 1.442695, %v1054_v7 }
 0x37e   : > { %v1050_v9 = vpop.xlane.xlu0 %1049 }
 0x37f   : > { %2002 = vpow2.f32 %v1058_v8  ;;  %v1056_v10 = vsub.f32 %v990_v48, %v1050_v9 }
 0x381   : > { %v1062_v11 = vmul.f32 1.442695, %v1056_v10 }
 0x382   : > { %v1047_v12 = vpop.xlane.xlu1 %1046 }
 0x383   : > { %2004 = vpow2.f32 %v1062_v11  ;;  %v1055_v13 = vsub.f32 %v944_v55, %v1047_v12 }
 0x385   : > { %v1060_v14 = vmul.f32 1.442695, %v1055_v13 }
 0x387   : > { %2006 = vpow2.f32 %v1060_v14 }
 0x38a   : > { %v1053_v15 = vpop.xlane.xlu0 %1052 }
 0x38b   : > { %v1057_v16 = vsub.f32 %v1036_v62, %v1053_v15 }
 0x38c   : > { %v2003_v17 = vpop.eup %2002 }
 0x38d   : > { %v1064_v18 = vmul.f32 1.442695, %v1057_v16  ;;  %v1066_v19 = vsel %vm857_vm2, %v2003_v17, 0.0 }
 0x38e   : > { %1067 = vadd.xlane.f32.xlu1 %v1066_v19 }
 0x38f   : > { %2008 = vpow2.f32 %v1064_v18 }
 0x390   : > { %v2005_v20 = vpop.eup %2004 }
 0x391   : > { %v1072_v21 = vsel %vm857_vm2, %v2005_v20, 0.0 }
 0x392   : > { %1073 = vadd.xlane.f32.xlu1 %v1072_v21 }
 0x394   : > { %v2007_v22 = vpop.eup %2006 }
 0x395   : > { %v1069_v23 = vsel %vm857_vm2, %v2007_v22, 0.0 }
 0x396   : > { %1070 = vadd.xlane.f32.xlu0 %v1069_v23 }
 0x39c   : > { %v2009_v24 = vpop.eup %2008 }
 0x39d   : > { %v1075_v26 = vsel %vm857_vm2, %v2009_v24, 0.0 }
 0x39e   : > { %1076 = vadd.xlane.f32.xlu0 %v1075_v26 }
 0x417   : > { %v1068_v27 = vpop.xlane.xlu1 %1067 }
 0x418   : > { %2010 = vrcp.f32 %v1068_v27 }
 0x41b   : > { %v1074_v28 = vpop.xlane.xlu1 %1073 }
 0x41c   : > { %2012 = vrcp.f32 %v1074_v28 }
 0x41f   : > { %v1071_v29 = vpop.xlane.xlu0 %1070 }
 0x420   : > { %2014 = vrcp.f32 %v1071_v29 }
 0x425   : > { %v2011_v31 = vpop.eup %2010 }
 0x426   : > { %v1082_v32 = vmul.f32 %v2011_v31, %v2003_v17 }
 0x427   : > { %v1077_v33 = vpop.xlane.xlu0 %1076 }
 0x428   : > { %2016 = vrcp.f32 %v1077_v33  ;;  %v1086_v34 = vpack.c.bf16 %v1082_v32, %v1082_v32 }
 0x429   : > { %v2013_v35 = vpop.eup %2012 }
 0x42a   : > { %1902 = vmatmul.mubr.msk.bf16.vlgmr.msra.gmra.mxu1 %vm857_vm2, %v1086_v34  ;;  %v1084_v36 = vmul.f32 %v2013_v35, %v2005_v20 }
 0x42b   : > { %1912 = vmatpush3.bf16.msra.mxu1 %v2206_v25  ;;  %1913 = vmatprep.mubr.msk.bf16.mxu1 %vm2031_vm1, %v2030_v5 }
 0x42c   : > { %1923 = vmatprep.subr.bf16.mxu1 %v2030_v5  ;;  %v1088_v41 = vpack.c.bf16 %v1084_v36, %v1084_v36 }
 0x42d   : > { %v2015_v37 = vpop.eup %2014 }
 0x42e   : > { %v1083_v38 = vmul.f32 %v2015_v37, %v2007_v22 }
 0x430   : > { %v1087_v40 = vpack.c.bf16 %v1083_v38, %v1083_v38 }
 0x432   : > { %1908 = vmatmul.mubr.msk.bf16.vlgmr.msra.gmra.mxu0 %vm857_vm2, %v1087_v40  ;;  %1914 = vmatmul.mubr.msk.bf16.vlgmr.msra.gmra.mxu1 %vm857_vm2, %v1088_v41 }
 0x433   : > { %1918 = vmatpush3.bf16.msra.mxu0 %v2213_v30  ;;  %1919 = vmatprep.mubr.msk.bf16.mxu0 %vm2031_vm1, %v2030_v5  ;;  %v1988_v30 = vld [vmem:[%s2364_s4 + $0x8] sm:$0xff]  }
 0x434   : > { %1927 = vmatprep.mubr.msk.bf16.mxu1 %vm2031_vm1, %v2030_v5  ;;  %1931 = vmatprep.subr.bf16.mxu0 %v2030_v5 }
 0x435   : > { %v2017_v25 = vpop.eup %2016  ;;  %1924 = vmatpush3.bf16.msra.mxu1 %v1988_v30  ;;  %v1989_v30 = vld [vmem:[%s2364_s4] sm:$0xff]  }
 0x436   : > { %v1085_v42 = vmul.f32 %v2017_v25, %v2009_v24  ;;  %1925 = vmatprep.subr.bf16.mxu1 %v2030_v5 }
 0x438   : > { %v1089_v43 = vpack.c.bf16 %v1085_v42, %v1085_v42 }
 0x439   : > { %1926 = vmatpush3.bf16.msra.mxu1 %v1989_v30 }
 0x43a   : > { %1920 = vmatmul.mubr.msk.bf16.vlgmr.msra.gmra.mxu0 %vm857_vm2, %v1089_v43  ;;  %1939 = vmatprep.subr.bf16.mxu1 %v2030_v5 }
 0x43b   : > { %1935 = vmatprep.mubr.msk.bf16.mxu0 %vm2031_vm1, %v2030_v5 }
 0x4ea   : > { %v1131_v44 = vpop.f32.mrf.mxu1 }
 0x4eb   : > { %v1275_v50 = vpack.c.bf16 %v1131_v44, %v1131_v44 }
 0x4ec   : > { %v1903_v45 = vpop.f32.mrf.mxu1 }
 0x4ed   : > { %v1282_v58 = vrot.slane %v1275_v50, %v2161_v39 }
 0x4ee   : > { %v1134_v46 = vpop.f32.mrf.mxu1 }
 0x4f0   : > { %v1904_v47 = vpop.f32.mrf.mxu1 }
 0x4f2   : > { %v1177_v48 = vpop.f32.mrf.mxu0  ;;  %v1223_v49 = vpop.f32.mrf.mxu1 }
 0x4f3   : > { %v1283_v51 = vpack.c.bf16 %v1223_v49, %v1223_v49  ;;  %v1309_v62 = vpack.c.bf16 %v1177_v48, %v1177_v48 }
 0x4f4   : > { %v1909_v52 = vpop.f32.mrf.mxu0  ;;  %v1915_v53 = vpop.f32.mrf.mxu1 }
 0x4f5   : > { %v1290_v54 = vrot.slane %v1283_v51, %v2161_v39  ;;  %v1316_v7 = vrot.slane %v1309_v62, %v2161_v39 }
 0x4f6   : > { %v1180_v55 = vpop.f32.mrf.mxu0  ;;  %v1226_v56 = vpop.f32.mrf.mxu1 }
 0x4f7   : > { %v1291_v61 = vcombine.low %v1282_v58, %v1290_v54  ;;  %v1292_v1 = vcombine.high %v1282_v58, %v1290_v54 }
 0x4f8   : > { %v1910_v59 = vpop.f32.mrf.mxu0  ;;  %v1916_v60 = vpop.f32.mrf.mxu1 }
 0x4f9   : > { %v1299_v6 = vrot.slane %v1291_v61, %v2168_v57  ;;  %v1306_v10 = vrot.slane %v1292_v1, %v2168_v57  ;;  %v1812_v1 = vld [vmem:[%s2365_s5] ss:$0 sm:$0xff] }
 0x4fa   : > { %v1269_v63 = vpop.f32.mrf.mxu0 }
 0x4fb   : > { %v1317_v3 = vpack.c.bf16 %v1269_v63, %v1269_v63  ;;  %v1307_v14 = vcombine.high %v1299_v6, %v2045_v2  ;;  %v1308_v17 = vcombine.high %v1306_v10, %v2045_v2  ;;  %v1347_v18 = vshrl.u32 %v1299_v6, 16 }
 0x4fc   : > { %v1921_v4 = vpop.f32.mrf.mxu0  ;;  %v1363_v24 = vshrl.u32 %v1306_v10, 16 }
 0x4fd   : > { %v1324_v8 = vrot.slane %v1317_v3, %v2161_v39  ;;  %v1355_v23 = vshrl.u32 %v1307_v14, 16  ;;  %v1371_v33 = vshrl.u32 %v1308_v17, 16 }
 0x4fe   : > { %v1272_v9 = vpop.f32.mrf.mxu0 }
 0x4ff   : > { %v1325_v11 = vcombine.low %v1316_v7, %v1324_v8  ;;  %v1326_v12 = vcombine.high %v1316_v7, %v1324_v8 }
 0x500   : > { %v1922_v13 = vpop.f32.mrf.mxu0 }
 0x501   : > { %v1333_v15 = vrot.slane %v1325_v11, %v2168_v57  ;;  %v1340_v16 = vrot.slane %v1326_v12, %v2168_v57  ;;  %v1990_v13 = vld [vmem:[%s2368_s8 + $0x8] sm:$0xff]  }
 0x502   : > { %1932 = vmatpush3.bf16.msra.mxu0 %v1990_v13 }
 0x503   : > { %v1341_v19 = vcombine.high %v1333_v15, %v2045_v2  ;;  %v1342_v20 = vcombine.high %v1340_v16, %v2045_v2  ;;  %v1345_v21 = vpack.i.b16 %v1333_v15, %v1299_v6  ;;  %v1348_v22 = vshrl.u32 %v1333_v15, 16  ;;  %1933 = vmatprep.subr.bf16.mxu0 %v2030_v5 }
 0x504   : > { %v1361_v26 = vpack.i.b16 %v1340_v16, %v1306_v10  ;;  %v1364_v27 = vshrl.u32 %v1340_v16, 16 }
 0x505   : > { %v1349_v28 = vpack.i.b16 %v1348_v22, %v1347_v18  ;;  %v1353_v29 = vpack.i.b16 %v1341_v19, %v1307_v14  ;;  %v1356_v31 = vshrl.u32 %v1341_v19, 16  ;;  %v1369_v32 = vpack.i.b16 %v1342_v20, %v1308_v17 }
 0x506   : > { %v1365_v34 = vpack.i.b16 %v1364_v27, %v1363_v24  ;;  %v1372_v35 = vshrl.u32 %v1342_v20, 16  ;;  %v1375_v36 = vcombine.low %v1345_v21, %v1361_v26  ;;  %v1817_v26 = vld [vmem:[%s2367_s7] ss:$0 sm:$0xff] }
 0x507   : > { %v1357_v37 = vpack.i.b16 %v1356_v31, %v1355_v23  ;;  %v1383_v38 = vcombine.low %v1353_v29, %v1369_v32  ;;  %v1816_v23 = vld [vmem:[%s2366_s6] ss:$0 sm:$0xff]  ;;  %v1992_v31 = vld [vmem:[%s2370_s10 + $0x38] sm:$0xff]   ;;  %v1993_v32 = vld [vmem:[%s2370_s10 + $0x30] sm:$0xff]  }
 0x508   : > { %v1373_v40 = vpack.i.b16 %v1372_v35, %v1371_v33  ;;  %v1400_v41 = vcombine.low %v1349_v28, %v1365_v34  ;;  %v1382_v25 = vrot.slane %v1375_v36, %v2161_v39  ;;  %v1994_v33 = vld [vmem:[%s2370_s10 + $0x28] sm:$0xff]   ;;  %v1995_v34 = vld [vmem:[%s2370_s10 + $0x20] sm:$0xff]   ;;  %v1996_v35 = vld [vmem:[%s2370_s10 + $0x18] sm:$0xff]  }
 0x509   : > { %v1390_v42 = vrot.slane %v1383_v38, %v2161_v39  ;;  %v1997_v36 = vld [vmem:[%s2370_s10 + $0x10] sm:$0xff]   ;;  %v1999_v38 = vld [vmem:[%s2370_s10] sm:$0xff]  }
 0x50a   : > { %v1408_v43 = vcombine.low %v1357_v37, %v1373_v40  ;;  %v1407_v45 = vrot.slane %v1400_v41, %v2161_v39  ;;  %v1998_v37 = vld [vmem:[%s2370_s10 + $0x8] sm:$0xff]   ;;  %v1818_v40 = vld [vmem:[%s2369_s9] ss:$0 sm:$0xff] }
 0x50b   : > { %v1391_v44 = vcombine.low %v1382_v25, %v1390_v42 }
 0x50c   : > { %v1415_v46 = vrot.slane %v1408_v43, %v2161_v39 }
 0x50d   : > { %v1398_v47 = vrot.slane %v1391_v44, %v2168_v57 }
 0x50e   : > { %v1416_v48 = vcombine.low %v1407_v45, %v1415_v46 }
 0x50f   : > { %v1428_v50 = vshrl.u32 %v1398_v47, 16  ;;  %v1399_v52 = vcombine.high %v1398_v47, %v2045_v2 }
 0x510   : > { %v1423_v49 = vrot.slane %v1416_v48, %v2168_v57 }
 0x511   : > { %v1434_v39 = vshrl.u32 %v1399_v52, 16 }
 0x512   : > { %v1429_v51 = vshrl.u32 %v1423_v49, 16  ;;  %v1424_v53 = vcombine.high %v1423_v49, %v2045_v2  ;;  %v1427_v54 = vpack.i.b16 %v1423_v49, %v1398_v47 }
 0x514   : > { %v1430_v55 = vpack.i.b16 %v1429_v51, %v1428_v50  ;;  %v1433_v56 = vpack.i.b16 %v1424_v53, %v1399_v52  ;;  %v1435_v58 = vshrl.u32 %v1424_v53, 16  ;;  %v1822_v53 = vld [vmem:[%s2371_s11] ss:$0 sm:$0xff] }
 0x516   : > { %1437 = vrot.lane.b32.xlu1 %v1430_v55, %s2046_s17  ;;  %1439 = vrot.lane.b32.xlu0 %v1433_v56, %s2047_s18  ;;  %v1436_v59 = vpack.i.b16 %v1435_v58, %v1434_v39 }
 0x51a   : > { %1441 = vrot.lane.b32.xlu1 %v1436_v59, %s2048_s19 }
 0x588   : > { %v1438_v60 = vpop.permute.xlu1 %1437  ;;  %v1440_v61 = vpop.permute.xlu0 %1439 }
 0x589   : > { %v1445_v57 = vsel %vm857_vm2, %v1427_v54, %v1438_v60 }
 0x58a   : > { %v1448_v62 = vsel %vm1446_vm4, %v1445_v57, %v1440_v61 }
 0x58c   : > { %v1442_v2 = vpop.permute.xlu1 %1441 }
 0x58d   : > { %v1451_v63 = vsel %vm1449_vm5, %v1448_v62, %v1442_v2 }
 0x58e   : > { %1928 = vmatmul.mubr.msk.bf16.vlgmr.msra.gmra.mxu1 %vm413_vm0, %v1451_v63 }
 0x58f   : > { %1955 = vmatprep.mubr.msk.bf16.mxu1 %vm2031_vm1, %v2030_v5  ;;  %1940 = vmatpush3.bf16.msra.mxu1 %v1992_v31 }
 0x590   : > { %1941 = vmatprep.subr.bf16.mxu1 %v2030_v5 }
 0x593   : > { %1942 = vmatpush3.bf16.msra.mxu1 %v1993_v32 }
 0x594   : > { %1943 = vmatprep.subr.bf16.mxu1 %v2030_v5 }
 0x597   : > { %1944 = vmatpush3.bf16.msra.mxu1 %v1994_v33 }
 0x598   : > { %1945 = vmatprep.subr.bf16.mxu1 %v2030_v5 }
 0x59b   : > { %1946 = vmatpush3.bf16.msra.mxu1 %v1995_v34 }
 0x59c   : > { %1947 = vmatprep.subr.bf16.mxu1 %v2030_v5 }
 0x59f   : > { %1948 = vmatpush3.bf16.msra.mxu1 %v1996_v35 }
 0x5a0   : > { %1949 = vmatprep.subr.bf16.mxu1 %v2030_v5 }
 0x5a3   : > { %1950 = vmatpush3.bf16.msra.mxu1 %v1997_v36 }
 0x5a4   : > { %1951 = vmatprep.subr.bf16.mxu1 %v2030_v5 }
 0x5a7   : > { %1952 = vmatpush3.bf16.msra.mxu1 %v1998_v37 }
 0x5a8   : > { %1953 = vmatprep.subr.bf16.mxu1 %v2030_v5 }
 0x5ab   : > { %1954 = vmatpush3.bf16.msra.mxu1 %v1999_v38 }
 0x64e   : > { %v1511_v3 = vpop.f32.mrf.mxu1 }
 0x64f   : > { %v1512_v4 = vadd.f32 %v1812_v1, %v1511_v3 }
 0x650   : > { %v1929_v6 = vpop.f32.mrf.mxu1 }
 0x651   : > { %v2291_v7 = vadd.f32 %v1512_v4, %v2130_v0  ;;  %v1991_v0 = vld [vmem:[%s2368_s8] sm:$0xff]  }
 0x652   : > { %v1514_v8 = vpop.f32.mrf.mxu1  ;;  %1934 = vmatpush3.bf16.msra.mxu0 %v1991_v0 }
 0x653   : > { %v1520_v9 = vsel %vm413_vm0, %v2291_v7, 0.0  ;;  %v1524_v10 = vmul.f32 %v2291_v7, %v2291_v7 }
 0x654   : > { %1521 = vadd.xlane.f32.xlu1 %v1520_v9  ;;  %v1930_v11 = vpop.f32.mrf.mxu1 }
 0x655   : > { %v1525_v12 = vsel %vm413_vm0, %v1524_v10, 0.0 }
 0x656   : > { %1526 = vadd.xlane.f32.xlu0 %v1525_v12 }
 0x6dd   : > { %v1522_v14 = vpop.xlane.xlu1 %1521 }
 0x6de   : > { %v1523_v15 = vmul.f32 0.03125, %v1522_v14 }
 0x6df   : > { %v1527_v16 = vpop.xlane.xlu0 %1526 }
 0x6e0   : > { %v1529_v17 = vmul.f32 %v1523_v15, %v1523_v15  ;;  %v1528_v18 = vmul.f32 0.03125, %v1527_v16  ;;  %v1531_v21 = vsub.f32 %v2291_v7, %v1523_v15 }
 0x6e2   : > { %v1530_v19 = vsub.f32 %v1528_v18, %v1529_v17 }
 0x6e4   : > { %v1532_v20 = vadd.f32 1e-05, %v1530_v19 }
 0x6e6   : > { %2018 = vrsqrt.f32 %v1532_v20 }
 0x6f3   : > { %v2019_v22 = vpop.eup %2018 }
 0x6f4   : > { %v1534_v24 = vmul.f32 %v2019_v22, %v1531_v21 }
 0x6f6   : > { %v1541_v27 = vmul.f32 %v1816_v23, %v1534_v24 }
 0x6f8   : > { %v1548_v28 = vadd.f32 %v1817_v26, %v1541_v27 }
 0x6fa   : > { %v1549_v29 = vpack.c.bf16 %v1548_v28, %v1548_v28 }
 0x6fc   : > { %1936 = vmatmul.mubr.msk.bf16.vlgmr.msra.gmra.mxu0 %vm413_vm0, %v1549_v29 }
 0x7bc   : > { %v1610_v41 = vpop.f32.mrf.mxu0 }
 0x7bd   : > { %v1611_v25 = vadd.f32 %v1818_v40, %v1610_v41 }
 0x7be   : > { %v1937_v42 = vpop.f32.mrf.mxu0 }
 0x7bf   : > { %v1616_v43 = vmul.f32 %v1611_v25, %v1611_v25 }
 0x7c0   : > { %v1613_v30 = vpop.f32.mrf.mxu0 }
 0x7c1   : > { %v1617_v44 = vmul.f32 %v1616_v43, %v1611_v25 }
 0x7c2   : > { %v1938_v45 = vpop.f32.mrf.mxu0 }
 0x7c3   : > { %v1618_v46 = vmul.f32 0.044715, %v1617_v44 }
 0x7c5   : > { %v1619_v47 = vadd.f32 %v1618_v46, %v1611_v25 }
 0x7c7   : > { %v1620_v48 = vmul.f32 0.7978846, %v1619_v47 }
 0x7c9   : > { %2020 = vtanh.f32 %v1620_v48 }
 0x7d6   : > { %v2021_v49 = vpop.eup %2020 }
 0x7d7   : > { %v1622_v50 = vadd.f32 1.0, %v2021_v49 }
 0x7d9   : > { %v1623_v5 = vmul.f32 0.5, %v1622_v50 }
 0x7db   : > { %v1624_v51 = vmul.f32 %v1623_v5, %v1611_v25 }
 0x7dd   : > { %v1625_v52 = vpack.c.bf16 %v1624_v51, %v1624_v51 }
 0x7df   : > { %1956 = vmatmul.mubr.bf16.vlgmr.msra.gmra.mxu1 %v1625_v52 }
 0x89f   : > { %v1731_v54 = vpop.f32.mrf.mxu1 }
 0x8a0   : > { %v1732_v55 = vadd.f32 %v1822_v53, %v1731_v54 }
 0x8a1   : > { %v1957_v56 = vpop.f32.mrf.mxu1 }
 0x8a2   : > { %v1737_v58 = vadd.f32 %v1732_v55, %v2291_v7 }
 0x8a3   : > { %v1734_v39 = vpop.f32.mrf.mxu1 }
 0x8a4   : > { %1738 = vst.msk [vmem:[%s408_s25] sm:$0xff] %vm413_vm0, %v1737_v58 }
 0x8a5   : > { %v1958_v59 = vpop.f32.mrf.mxu1 }
 0x8a6 PF: > { %s22_s21 = sadd.s32 1, %s2028_s21  }
 0x8a7   : > { %p19_p4 = scmp.ge.s32.totalorder %s22_s21, 4  }
 0x8a9   :  { %21 = sbr.rel (!%p19_p4) target bundleno = 1 (0x1), region = 98 }

// kernel: basic_block_forward.5
= control target key start
LH: loop header
LB: loop body
LE: loop exit
PB: predicated region body
PF: predicated region fallthrough
CT: control target
= control target key end

     0   :  { %9 = vsyncpa [#allocation3], 0  ;;  %s670_s0 = inlined_call_operand.vmem [shape: f32[2,4,64], index: 0, kind: input, shape index: {}]   ;;  %s671_s1 = inlined_call_operand.vmem [shape: f32[1,64], index: 1, kind: input, shape index: {}]   ;;  %s672_s2 = inlined_call_operand.vmem [shape: f32[1,64], index: 2, kind: input, shape index: {}]   ;;  %s673_s3 = inlined_call_operand.vmem [shape: bf16[64,64], index: 3, kind: input, shape index: {}]   ;;  %s674_s4 = inlined_call_operand.hbm [shape: f32[2,4,64], index: 4, kind: output, shape index: {}]  }
   0x1   :  { %11 = vsyncpa [#allocation3 + $0x1], 0  ;;  %s550_s15 = smov 0   ;;  %s552_s16 = smov 0  }
   0x2   :  { %s554_s17 = smov 0   ;;  %s556_s18 = smov 0  }
   0x3 LB: > { %s571_s19 = sadd.s32 4294967295, %s520_s18   ;;  %s379_s20 = sadd.s32 4294967294, %s520_s18   ;;  %s520_s18 = sphi %s556_s18, %s680_s18   ;;  %s516_s17 = sphi %s554_s17, %s679_s17   ;;  %s512_s16 = sphi %s552_s16, %s678_s16   ;;  %s508_s15 = sphi %s550_s15, %s677_s15  }
   0x4   : > { %s575_s21 = sadd.s32 1, %s520_s18   ;;  %s113_s22 = sadd.s32 1, %s516_s17 }
   0x5   : > { %s110_s23 = ssub.s32 %s520_s18, %s575_s21  ;;  %p123_p0 = scmp.ne.s32.totalorder %s516_s17, %s512_s16 }
   0x6   : > { %p111_p1 = scmp.eq.s32.totalorder %s110_s23, 0  ;;  %p124_p2 = scmp.eq.s32.totalorder %s571_s19, 1 }
   0x7   : > { %p129_p3 = scmp.ne.s32.totalorder %s512_s16, %s508_s15  ;;  %p130_p4 = scmp.eq.s32.totalorder %s379_s20, 1 }
   0x8   : > { %s586_s24 = scalar_select %p111_p1, %s516_s17, %s113_s22  }
   0x9   : > { %p588_p5 = por %p124_p2, %p123_p0  ;;  %p592_p6 = por %p130_p4, %p129_p3 }
   0xa   : > { %p382_p7 = scmp.ge.s32.totalorder %s520_s18, 1  ;;  %p164_p8 = scmp.lt.s32.totalorder %s520_s18, 3 }
   0xc   : > { %p165_p9 = pnand %p382_p7, %p164_p8 }
   0xd   : > { %p189_p10 = scmp.lt.s32.totalorder (!%p165_p9), %s571_s19, 1  ;;  %s393_s29 = sshll.u32 (!%p165_p9), %s571_s19, 6 }
   0xe   : > { %168 = sbr.rel (%p165_p9) target bundleno = 404 (0x194), region = 36  ;;  %s628_s8 = scalar_lea.hbm (!%p165_p9), %s674_s4, %s393_s29 }
  0x13   : > { %s190_s27 = scalar_select %p189_p10, %s571_s19, 1  ;;  %vm197_vm0 = vcmask 519168   ;;  %v454_v4 = vld [vmem:[%s673_s3 + $0x18] sm:$0xff]   ;;  %v522_v5 = vmov 0.0   ;;  %vm523_vm1 = vmmov 0   ;;  %v455_v6 = vld [vmem:[%s673_s3 + $0x10] sm:$0xff]  }
  0x14   : > { %401 = vmatprep.subr.bf16.mxu0 %v522_v5  ;;  %409 = vmatprep.mubr.msk.bf16.mxu0 %vm523_vm1, %v522_v5  ;;  %v456_v7 = vld [vmem:[%s673_s3 + $0x8] sm:$0xff]   ;;  %v457_v8 = vld [vmem:[%s673_s3] sm:$0xff]   ;;  %vm261_vm2 = vcmask 523264   ;;  %s524_s19 = smov [#allocation2]  }
  0x15   : > { %s384_s28 = sshll.u32 %s190_s27, 2  ;;  %402 = vmatpush3.bf16.msra.mxu0 %v454_v4  ;;  %v385_v18 = vld [vmem:[%s671_s1] ss:$0 sm:$0xff]  ;;  %s186_s27 = sand.u32 1, %s512_s16  }
  0x16   : > { %s192_s5 = scalar_lea.vmem %s670_s0, %s384_s28  ;;  %403 = vmatprep.subr.bf16.mxu0 %v522_v5  ;;  %v386_v20 = vld [vmem:[%s672_s2] ss:$0 sm:$0xff]  ;;  %s383_s28 = sshll.u32 %s186_s27, 2 }
  0x17   : > { %v194_v0 = vld [vmem:[%s192_s5] sm:$0xf]  ;;  %s188_s30 = scalar_lea.vmem [#allocation2], %s383_s28  ;;  %s307_s9 = scalar_lea.sflag [#allocation3], %s186_s27 }
  0x18   : > { %v198_v1 = vsel %vm197_vm0, %v194_v0, 0.0  ;;  %v203_v2 = vmul.f32 %v194_v0, %v194_v0  ;;  %s320_s5 = sshll.u32 %s188_s30, 4  ;;  %s464_s11 = sshll.u32 %s524_s19, 4  ;;  %s630_s5 = int_to_ptr.vmem [resolvable:$true] %s320_s5  ;;  %s465_s11 = int_to_ptr.vmem [resolvable:$false] %s464_s11 }
  0x19   : > { %199 = vadd.xlane.f32.xlu0 %v198_v1  ;;  %404 = vmatpush3.bf16.msra.mxu0 %v455_v6  ;;  %s460_s10 = scalar_lea.vmem %s630_s5, 64  ;;  %s466_s12 = scalar_lea.vmem %s465_s11, 128 }
  0x1a   : > { %v204_v3 = vsel %vm197_vm0, %v203_v2, 0.0  ;;  %405 = vmatprep.subr.bf16.mxu0 %v522_v5  ;;  %p461_p11 = scmp.ne.s32.totalorder %s630_s5, %s460_s10  ;;  %p467_p0 = scmp.lt.s32.totalorder %s630_s5, %s465_s11 }
  0x1b   : > { %p468_p1 = scmp.lt.s32.totalorder %s466_s12, %s460_s10 }
  0x1c   : > { %p462_p12 = pnand %p461_p11, %p588_p5 }
  0x1d   : > { %205 = vadd.xlane.f32.xlu0 %v204_v3  ;;  %406 = vmatpush3.bf16.msra.mxu0 %v456_v7  ;;  %p469_p2 = por %p468_p1, %p467_p0 }
  0x1e   : > { %407 = vmatprep.subr.bf16.mxu0 %v522_v5  ;;  %p463_p13 = pneg %p462_p12 }
  0x20   : > { %p470_p3 = pnand %p469_p2, %p463_p13 }
  0x21   : > { %408 = vmatpush3.bf16.msra.mxu0 %v457_v8 }
  0xa2   : > { %v200_v9 = vpop.xlane.xlu0 %199 }
  0xa3   : > { %v202_v10 = vmul.f32 0.015625, %v200_v9 }
  0xa5   : > { %v208_v12 = vmul.f32 %v202_v10, %v202_v10  ;;  %v210_v16 = vsub.f32 %v194_v0, %v202_v10 }
  0xa6   : > { %v206_v11 = vpop.xlane.xlu0 %205 }
  0xa7   : > { %v207_v13 = vmul.f32 0.015625, %v206_v11 }
  0xa9   : > { %v209_v14 = vsub.f32 %v207_v13, %v208_v12 }
  0xab   : > { %v211_v15 = vadd.f32 1e-05, %v209_v14 }
  0xad   : > { %458 = vrsqrt.f32 %v211_v15 }
  0xba   : > { %v459_v17 = vpop.eup %458 }
  0xbb   : > { %v213_v19 = vmul.f32 %v459_v17, %v210_v16 }
  0xbd   : > { %v220_v21 = vmul.f32 %v385_v18, %v213_v19 }
  0xbf   : > { %v227_v22 = vadd.f32 %v386_v20, %v220_v21 }
  0xc1   : > { %v228_v23 = vpack.c.bf16 %v227_v22, %v227_v22 }
  0xc3   : > { %410 = vmatmul.mubr.msk.bf16.vlgmr.msra.gmra.mxu0 %vm261_vm2, %v228_v23 }
 0x183   : > { %v299_v24 = vpop.f32.mrf.mxu0 }
 0x184   : > { %305 = vst.msk [vmem:[%s188_s30] sm:$0xf] %vm197_vm0, %v299_v24 }
 0x185   : > { %v411_v25 = vpop.f32.mrf.mxu0 }
 0x186   : > { %473 = shalt.err (!%p470_p3)
}
 0x187   : > { %s474_s13 = scalar_lea.hbm %s628_s8, 64  ;;  %s478_s22 = scalar_lea.hbm %s674_s4, 128 }
 0x188   : > { %p475_p4 = scmp.ne.s32.totalorder %s628_s8, %s474_s13  ;;  %p479_p9 = scmp.lt.s32.totalorder %s628_s8, %s674_s4 }
 0x189   : > { %p480_p10 = scmp.lt.s32.totalorder %s478_s22, %s474_s13 }
 0x18a   : > { %p476_p7 = pnand %p475_p4, %p588_p5 }
 0x18b   : > { %p481_p11 = por %p480_p10, %p479_p9 }
 0x18c   : > { %p477_p8 = pneg %p476_p7 }
 0x18e   : > { %p482_p12 = pnand %p481_p11, %p477_p8 }
 0x190   : > { %485 = shalt.err (!%p482_p12)
}
 0x191   : > { %413 = dma.vmem_to_hbm [thread:$0]  (%p588_p5), %s630_s5, 64, %s628_s8, %s307_s9   ;;  %v302_v26 = vpop.f32.mrf.mxu0 }
 0x193   : > { %v412_v27 = vpop.f32.mrf.mxu0 }
 0x194 PF: > { %p419_p13 = scmp.ge.s32.totalorder %s520_s18, 2  ;;  %s332_s28 = sand.u32 1, %s508_s15  }
 0x195   : > { %s333_s29 = scalar_lea.sflag [#allocation3], %s332_s28 }
 0x196   : > { %p416_p0 = pnand %p419_p13, %p592_p6 }
 0x198   : > { %p417_p1 = pneg %p416_p0 }
 0x19a   : > { %503 = dma.done.wait (%p417_p1), %s333_s29, 64  }
 0x19b   : > { %505 = vsyncadd (%p417_p1), %s333_s29, 4294967232  ;;  %p14_p5 = scmp.ge.s32.totalorder %s575_s21, 4   ;;  %s677_s15 = smov %s512_s16 }
 0x19c   : > { %s678_s16 = smov %s516_s17  ;;  %s679_s17 = smov %s586_s24 }
 0x19d   : > { %s680_s18 = smov %s575_s21  ;;  %16 = sbr.rel (!%p14_p5) target bundleno = 3 (0x3), region = 71 }
 0x1a2   :  { %338 = vsyncpa [#allocation3], 1 }
 0x1a3   :  { %340 = vsyncpa [#allocation3 + $0x1], 1 }

// kernel: basic_block_forward.3
= control target key start
LH: loop header
LB: loop body
LE: loop exit
PB: predicated region body
PF: predicated region fallthrough
CT: control target
= control target key end

     0   :  { %s1609_s21 = smov 0   ;;  %s1816_s0 = inlined_call_operand.vmem [shape: f32[2,8,32], index: 0, kind: input, shape index: {}]   ;;  %s1817_s1 = inlined_call_operand.vmem [shape: f32[1,32], index: 1, kind: input, shape index: {}]   ;;  %s1818_s2 = inlined_call_operand.vmem [shape: f32[1,32], index: 2, kind: input, shape index: {}]   ;;  %s1819_s3 = inlined_call_operand.vmem [shape: bf16[32,96], index: 3, kind: input, shape index: {}]   ;;  %s1820_s4 = inlined_call_operand.vmem [shape: bf16[32,32], index: 4, kind: input, shape index: {}]   ;;  %s1821_s5 = inlined_call_operand.vmem [shape: f32[1,32], index: 5, kind: input, shape index: {}]   ;;  %s1822_s6 = inlined_call_operand.vmem [shape: f32[1,32], index: 6, kind: input, shape index: {}]   ;;  %s1823_s7 = inlined_call_operand.vmem [shape: f32[1,32], index: 7, kind: input, shape index: {}]   ;;  %s1824_s8 = inlined_call_operand.vmem [shape: bf16[32,128], index: 8, kind: input, shape index: {}]   ;;  %s1825_s9 = inlined_call_operand.vmem [shape: f32[1,128], index: 9, kind: input, shape index: {}]   ;;  %s1826_s10 = inlined_call_operand.vmem [shape: bf16[128,32], index: 10, kind: input, shape index: {}]   ;;  %s1827_s11 = inlined_call_operand.vmem [shape: f32[1,32], index: 11, kind: input, shape index: {}]   ;;  %s1828_s12 = inlined_call_operand.vmem [shape: f32[2,8,32], index: 12, kind: output, shape index: {}]  }
   0x1 LB: > { %s1305_s22 = sadd.s32 4294967295, %s1532_s21   ;;  %p1309_p0 = scmp.ge.s32.totalorder %s1532_s21, 1  ;;  %s1532_s21 = sphi %s1609_s21, %s22_s21  }
   0x2   : > { %p361_p1 = scmp.lt.s32.totalorder %s1532_s21, 3 }
   0x4   : > { %p362_p2 = pnand %p1309_p0, %p361_p1 }
   0x5   : > { %p401_p3 = scmp.lt.s32.totalorder (!%p362_p2), %s1305_s22, 1  ;;  %s1536_s17 = smov (!%p362_p2), 104  }
   0x6   : > { %365 = sbr.rel (%p362_p2) target bundleno = 2237 (0x8bd), region = 68  ;;  %s1537_s18 = smov (!%p362_p2), 120  }
   0x7   : > { %s1538_s19 = smov (!%p362_p2), 112   ;;  %s1539_s20 = smov (!%p362_p2), 96  }
   0x8   : > { %s1540_s24 = smov (!%p362_p2), 64   ;;  %s1541_s29 = smov (!%p362_p2), 8  }
   0x9   : > { %s1542_s30 = smov (!%p362_p2), 16   ;;  %s1543_s13 = smov (!%p362_p2), 24  }
   0xb   : > { %s1830_s22 = smov (!%p401_p3, %s1305_s22), 1  ;;  %vm413_vm0 = vcmask 261120   ;;  %v1490_v4 = vld [vmem:[%s1819_s3 + $0x8] sm:$0xff]   ;;  %v1534_v5 = vmov 0.0   ;;  %vm1535_vm1 = vmmov 0   ;;  %v1491_v6 = vld [vmem:[%s1819_s3] sm:$0xff]  }
   0xc   : > { %s1310_s23 = sshll.u32 %s1830_s22, 3  ;;  %1380 = vmatprep.subr.bf16.mxu0 %v1534_v5  ;;  %1384 = vmatprep.mubr.msk.bf16.mxu0 %vm1535_vm1, %v1534_v5  ;;  %v1312_v16 = vld [vmem:[%s1817_s1] ss:$0 sm:$0xff]  ;;  %vm514_vm2 = vcmask 64512   ;;  %vm758_vm3 = vcmask 1043456   ;;  %vm959_vm4 = vcmask 130048  }
   0xd   : > { %s404_s26 = scalar_lea.vmem %s1816_s0, %s1310_s23  ;;  %1381 = vmatpush3.bf16.msra.mxu0 %v1490_v4  ;;  %1400 = vmatprep.subr.bf16.mxu1 %v1534_v5  ;;  %v1313_v18 = vld [vmem:[%s1818_s2] ss:$0 sm:$0xff]  ;;  %vm961_vm5 = vcmask 195584   ;;  %s408_s16 = scalar_lea.vmem %s1828_s12, %s1310_s23 }
   0xe   : > { %v1625_v0 = vld [vmem:[%s404_s26] sm:$0xff]  ;;  %1382 = vmatprep.subr.bf16.mxu0 %v1534_v5  ;;  %1402 = vmatprep.mubr.msk.bf16.mxu1 %vm1535_vm1, %v1534_v5 }
   0xf   : > { %v414_v1 = vsel %vm413_vm0, %v1625_v0, 0.0  ;;  %v419_v2 = vmul.f32 %v1625_v0, %v1625_v0 }
  0x10   : > { %415 = vadd.xlane.f32.xlu0 %v414_v1 }
  0x11   : > { %v420_v3 = vsel %vm413_vm0, %v419_v2, 0.0  ;;  %1383 = vmatpush3.bf16.msra.mxu0 %v1491_v6 }
  0x12   : > { %1388 = vmatprep.subr.bf16.mxu0 %v1534_v5 }
  0x14   : > { %421 = vadd.xlane.f32.xlu0 %v420_v3 }
  0x99   : > { %v416_v7 = vpop.xlane.xlu0 %415 }
  0x9a   : > { %v418_v8 = vmul.f32 0.03125, %v416_v7 }
  0x9c   : > { %v424_v10 = vmul.f32 %v418_v8, %v418_v8  ;;  %v426_v14 = vsub.f32 %v1625_v0, %v418_v8 }
  0x9d   : > { %v422_v9 = vpop.xlane.xlu0 %421 }
  0x9e   : > { %v423_v11 = vmul.f32 0.03125, %v422_v9 }
  0xa0   : > { %v425_v12 = vsub.f32 %v423_v11, %v424_v10 }
  0xa2   : > { %v427_v13 = vadd.f32 1e-05, %v425_v12 }
  0xa4   : > { %1504 = vrsqrt.f32 %v427_v13 }
  0xb1   : > { %v1505_v15 = vpop.eup %1504 }
  0xb2   : > { %v429_v17 = vmul.f32 %v1505_v15, %v426_v14 }
  0xb4   : > { %v436_v19 = vmul.f32 %v1312_v16, %v429_v17 }
  0xb6   : > { %v443_v20 = vadd.f32 %v1313_v18, %v436_v19 }
  0xb8   : > { %v444_v21 = vpack.c.bf16 %v443_v20, %v443_v20 }
  0xba   : > { %1385 = vmatmul.mubr.msk.bf16.vlgmr.msra.gmra.mxu0 %vm413_vm0, %v444_v21 }
  0xbb   : > { %1390 = vmatprep.mubr.msk.bf16.mxu0 %vm1535_vm1, %v1534_v5 }
 0x17a   : > { %v498_v22 = vpop.f32.mrf.mxu0 }
 0x17b   : > { %v1656_v23 = vpack.c.bf16 %v498_v22, %v498_v22 }
 0x17c   : > { %v1386_v24 = vpop.f32.mrf.mxu0 }
 0x17d   : > { %510 = vrot.lane.b32.xlu0 %v1656_v23, %s1536_s17  ;;  %506 = vrot.lane.b32.xlu1 %v1656_v23, %s1537_s18 }
 0x17e   : > { %v501_v25 = vpop.f32.mrf.mxu0 }
 0x180   : > { %v1387_v26 = vpop.f32.mrf.mxu0 }
 0x181   : > { %508 = vrot.lane.b32.xlu1 %v1656_v23, %s1538_s19 }
 0x185   : > { %512 = vrot.lane.b32.xlu1 %v1656_v23, %s1539_s20 }
 0x1ef   : > { %v1662_v27 = vpop.permute.xlu1 %506  ;;  %v1668_v29 = vpop.permute.xlu0 %510 }
 0x1f0   : > { %561 = vrot.lane.b32.xlu1 %v1662_v27, %s1539_s20 }
 0x1f3   : > { %v1665_v28 = vpop.permute.xlu1 %508 }
 0x1f4   : > { %609 = vrot.lane.b32.xlu1 %v1665_v28, %s1539_s20 }
 0x1f7   : > { %v513_v30 = vpop.permute.xlu1 %512 }
 0x1f8   : > { %v519_v31 = vsel %vm514_vm2, %v513_v30, 0  ;;  %657 = vrot.lane.b32.xlu1 %v1668_v29, %s1539_s20 }
 0x1f9   : > { %1389 = vmatpush3.bf16.xpose.msra.mxu0 %v519_v31 }
 0x1fa   : > { %1394 = vmatprep.subr.bf16.mxu0 %v1534_v5 }
 0x200   : > { %1391 = vmatmul.mubr.msk.bf16.vlgmr.msra.gmra.mxu0 %vm514_vm2, %v1656_v23 }
 0x201   : > { %1396 = vmatprep.mubr.msk.bf16.mxu0 %vm1535_vm1, %v1534_v5 }
 0x262   : > { %v562_v32 = vpop.permute.xlu1 %561 }
 0x263   : > { %v567_v33 = vsel %vm514_vm2, %v562_v32, 0 }
 0x264   : > { %1395 = vmatpush3.bf16.xpose.msra.mxu0 %v567_v33 }
 0x265   : > { %1406 = vmatprep.subr.bf16.mxu0 %v1534_v5 }
 0x266   : > { %v610_v34 = vpop.permute.xlu1 %609 }
 0x267   : > { %v615_v35 = vsel %vm514_vm2, %v610_v34, 0 }
 0x268   : > { %1401 = vmatpush3.bf16.xpose.msra.mxu1 %v615_v35 }
 0x269   : > { %1412 = vmatprep.subr.bf16.mxu1 %v1534_v5 }
 0x26a   : > { %v658_v36 = vpop.permute.xlu1 %657 }
 0x26b   : > { %v663_v37 = vsel %vm514_vm2, %v658_v36, 0  ;;  %1397 = vmatmul.mubr.msk.bf16.vlgmr.msra.gmra.mxu0 %vm514_vm2, %v1662_v27 }
 0x26c   : > { %1407 = vmatpush3.bf16.xpose.msra.mxu0 %v663_v37  ;;  %1408 = vmatprep.mubr.msk.bf16.mxu0 %vm1535_vm1, %v1534_v5 }
 0x26d   : > { %1418 = vmatprep.subr.bf16.mxu0 %v1534_v5 }
 0x26f   : > { %1403 = vmatmul.mubr.msk.bf16.vlgmr.msra.gmra.mxu1 %vm514_vm2, %v1665_v28 }
 0x270   : > { %1414 = vmatprep.mubr.msk.bf16.mxu1 %vm1535_vm1, %v1534_v5 }
 0x273   : > { %1409 = vmatmul.mubr.msk.bf16.vlgmr.msra.gmra.mxu0 %vm514_vm2, %v1668_v29 }
 0x274   : > { %1420 = vmatprep.mubr.msk.bf16.mxu0 %vm1535_vm1, %v1534_v5 }
 0x2c0   : > { %v555_v38 = vpop.f32.mrf.mxu0 }
 0x2c1   : > { %v705_v39 = vsel %vm514_vm2, %v555_v38, -inf }
 0x2c2   : > { %706 = vmax.xlane.f32.xlu1 %v705_v39  ;;  %v1392_v40 = vpop.f32.mrf.mxu0 }
 0x2c4   : > { %v558_v41 = vpop.f32.mrf.mxu0 }
 0x2c6   : > { %v1393_v42 = vpop.f32.mrf.mxu0 }
 0x32b   : > { %v603_v43 = vpop.f32.mrf.mxu0 }
 0x32c   : > { %v708_v44 = vsel %vm514_vm2, %v603_v43, -inf }
 0x32d   : > { %709 = vmax.xlane.f32.xlu0 %v708_v44  ;;  %v1398_v45 = vpop.f32.mrf.mxu0  ;;  %v1492_v44 = vld [vmem:[%s1820_s4 + $0x8] sm:$0xff]  }
 0x32e   : > { %v1493_v45 = vld [vmem:[%s1820_s4] sm:$0xff]  }
 0x32f   : > { %v606_v46 = vpop.f32.mrf.mxu0  ;;  %v651_v47 = vpop.f32.mrf.mxu1 }
 0x330   : > { %v711_v48 = vsel %vm514_vm2, %v651_v47, -inf }
 0x331   : > { %v1404_v49 = vpop.f32.mrf.mxu1  ;;  %712 = vmax.xlane.f32.xlu1 %v711_v48  ;;  %v1399_v50 = vpop.f32.mrf.mxu0 }
 0x333   : > { %v654_v51 = vpop.f32.mrf.mxu1  ;;  %v699_v52 = vpop.f32.mrf.mxu0 }
 0x334   : > { %v714_v53 = vsel %vm514_vm2, %v699_v52, -inf }
 0x335   : > { %v1405_v54 = vpop.f32.mrf.mxu1  ;;  %715 = vmax.xlane.f32.xlu0 %v714_v53  ;;  %v1410_v55 = vpop.f32.mrf.mxu0 }
 0x337   : > { %v702_v56 = vpop.f32.mrf.mxu0 }
 0x339   : > { %v1411_v57 = vpop.f32.mrf.mxu0 }
 0x342   : > { %753 = vrot.lane.b32.xlu1 %v1656_v23, %s1540_s24 }
 0x34b   : > { %v707_v58 = vpop.xlane.xlu1 %706 }
 0x34c   : > { %v717_v59 = vsub.f32 %v555_v38, %v707_v58 }
 0x34e   : > { %v721_v60 = vmul.f32 1.442695, %v717_v59 }
 0x350   : > { %1506 = vpow2.f32 %v721_v60 }
 0x35d   : > { %v1507_v61 = vpop.eup %1506 }
 0x35e   : > { %v729_v62 = vsel %vm514_vm2, %v1507_v61, 0.0 }
 0x366   : > { %730 = vadd.xlane.f32.xlu1 %v729_v62 }
 0x3b6   : > { %v710_v63 = vpop.xlane.xlu0 %709 }
 0x3b7   : > { %v718_v1 = vsub.f32 %v603_v43, %v710_v63 }
 0x3b9   : > { %v723_v2 = vmul.f32 1.442695, %v718_v1 }
 0x3ba   : > { %v713_v3 = vpop.xlane.xlu1 %712 }
 0x3bb   : > { %1508 = vpow2.f32 %v723_v2  ;;  %v719_v4 = vsub.f32 %v651_v47, %v713_v3  ;;  %v1325_v2 = vld [vmem:[%s1821_s5] ss:$0 sm:$0xff] }
 0x3bd   : > { %v725_v6 = vmul.f32 1.442695, %v719_v4 }
 0x3be   : > { %v754_v7 = vpop.permute.xlu1 %753  ;;  %v716_v8 = vpop.xlane.xlu0 %715 }
 0x3bf   : > { %1510 = vpow2.f32 %v725_v6  ;;  %v760_v9 = vsel %vm758_vm3, %v754_v7, 0  ;;  %v720_v10 = vsub.f32 %v699_v52, %v716_v8 }
 0x3c0   : > { %1413 = vmatpush3.bf16.msra.mxu1 %v760_v9 }
 0x3c1   : > { %v727_v11 = vmul.f32 1.442695, %v720_v10  ;;  %1424 = vmatprep.subr.bf16.mxu1 %v1534_v5 }
 0x3c3   : > { %1512 = vpow2.f32 %v727_v11 }
 0x3c8   : > { %v1509_v12 = vpop.eup %1508 }
 0x3c9   : > { %v732_v13 = vsel %vm514_vm2, %v1509_v12, 0.0 }
 0x3ca   : > { %733 = vadd.xlane.f32.xlu0 %v732_v13  ;;  %v1494_v13 = vld [vmem:[%s1824_s8 + $0x8] sm:$0xff]  }
 0x3cc   : > { %v1511_v14 = vpop.eup %1510 }
 0x3cd   : > { %v735_v15 = vsel %vm514_vm2, %v1511_v14, 0.0 }
 0x3ce   : > { %736 = vadd.xlane.f32.xlu1 %v735_v15 }
 0x3d0   : > { %v1513_v16 = vpop.eup %1512 }
 0x3d1   : > { %v738_v17 = vsel %vm514_vm2, %v1513_v16, 0.0 }
 0x3d2   : > { %739 = vadd.xlane.f32.xlu0 %v738_v17 }
 0x3df   : > { %850 = vrot.lane.b32.xlu1 %v1665_v28, %s1540_s24 }
 0x3e3   : > { %898 = vrot.lane.b32.xlu1 %v1668_v29, %s1540_s24 }
 0x3e8   : > { %802 = vrot.lane.b32.xlu0 %v1662_v27, %s1540_s24 }
 0x3ef   : > { %v731_v18 = vpop.xlane.xlu1 %730 }
 0x3f0   : > { %1514 = vrcp.f32 %v731_v18 }
 0x3fd   : > { %v1515_v19 = vpop.eup %1514 }
 0x3fe   : > { %v745_v20 = vmul.f32 %v1515_v19, %v1507_v61 }
 0x400   : > { %v749_v21 = vpack.c.bf16 %v745_v20, %v745_v20 }
 0x402   : > { %1415 = vmatmul.mubr.msk.bf16.vlgmr.msra.gmra.mxu1 %vm514_vm2, %v749_v21 }
 0x403   : > { %1426 = vmatprep.mubr.msk.bf16.mxu1 %vm1535_vm1, %v1534_v5 }
 0x453   : > { %v734_v22 = vpop.xlane.xlu0 %733 }
 0x454   : > { %1516 = vrcp.f32 %v734_v22 }
 0x457   : > { %v737_v23 = vpop.xlane.xlu1 %736 }
 0x458   : > { %1518 = vrcp.f32 %v737_v23  ;;  %v1329_v23 = vld [vmem:[%s1822_s6] ss:$0 sm:$0xff] }
 0x45b   : > { %v851_v24 = vpop.permute.xlu1 %850  ;;  %v740_v25 = vpop.xlane.xlu0 %739 }
 0x45c   : > { %v856_v26 = vsel %vm758_vm3, %v851_v24, 0  ;;  %1520 = vrcp.f32 %v740_v25  ;;  %v1330_v25 = vld [vmem:[%s1823_s7] ss:$0 sm:$0xff] }
 0x45d   : > { %1425 = vmatpush3.bf16.msra.mxu1 %v856_v26 }
 0x45e   : > { %1436 = vmatprep.subr.bf16.mxu1 %v1534_v5 }
 0x45f   : > { %v803_v27 = vpop.permute.xlu0 %802  ;;  %v899_v31 = vpop.permute.xlu1 %898 }
 0x460   : > { %v808_v28 = vsel %vm758_vm3, %v803_v27, 0  ;;  %v904_v34 = vsel %vm758_vm3, %v899_v31, 0  ;;  %v1498_v31 = vld [vmem:[%s1826_s10 + $0x28] sm:$0xff]  }
 0x461   : > { %v1517_v29 = vpop.eup %1516  ;;  %1419 = vmatpush3.bf16.msra.mxu0 %v808_v28 }
 0x462   : > { %1430 = vmatprep.subr.bf16.mxu0 %v1534_v5  ;;  %v746_v30 = vmul.f32 %v1517_v29, %v1509_v12  ;;  %v1496_v29 = vld [vmem:[%s1826_s10 + $0x38] sm:$0xff]  }
 0x464   : > { %v750_v32 = vpack.c.bf16 %v746_v30, %v746_v30  ;;  %v1497_v30 = vld [vmem:[%s1826_s10 + $0x30] sm:$0xff]  }
 0x465   : > { %v1519_v33 = vpop.eup %1518 }
 0x466   : > { %1421 = vmatmul.mubr.msk.bf16.vlgmr.msra.gmra.mxu0 %vm514_vm2, %v750_v32  ;;  %v747_v35 = vmul.f32 %v1519_v33, %v1511_v14  ;;  %v1499_v32 = vld [vmem:[%s1826_s10 + $0x20] sm:$0xff]   ;;  %v1500_v33 = vld [vmem:[%s1826_s10 + $0x18] sm:$0xff]  }
 0x467   : > { %1431 = vmatpush3.bf16.msra.mxu0 %v904_v34  ;;  %1432 = vmatprep.mubr.msk.bf16.mxu0 %vm1535_vm1, %v1534_v5  ;;  %v1501_v34 = vld [vmem:[%s1826_s10 + $0x10] sm:$0xff]  }
 0x468   : > { %v751_v36 = vpack.c.bf16 %v747_v35, %v747_v35  ;;  %1444 = vmatprep.subr.bf16.mxu0 %v1534_v5  ;;  %v1502_v35 = vld [vmem:[%s1826_s10 + $0x8] sm:$0xff]  }
 0x469   : > { %v1521_v37 = vpop.eup %1520 }
 0x46a   : > { %1427 = vmatmul.mubr.msk.bf16.vlgmr.msra.gmra.mxu1 %vm514_vm2, %v751_v36  ;;  %v748_v38 = vmul.f32 %v1521_v37, %v1513_v16  ;;  %v1503_v36 = vld [vmem:[%s1826_s10] sm:$0xff]  }
 0x46b   : > { %1440 = vmatprep.mubr.msk.bf16.mxu1 %vm1535_vm1, %v1534_v5  ;;  %1437 = vmatpush3.bf16.msra.mxu1 %v1492_v44  ;;  %v1331_v37 = vld [vmem:[%s1825_s9] ss:$0 sm:$0xff] }
 0x46c   : > { %v752_v39 = vpack.c.bf16 %v748_v38, %v748_v38  ;;  %1438 = vmatprep.subr.bf16.mxu1 %v1534_v5 }
 0x46e   : > { %1433 = vmatmul.mubr.msk.bf16.vlgmr.msra.gmra.mxu0 %vm514_vm2, %v752_v39 }
 0x46f   : > { %1448 = vmatprep.mubr.msk.bf16.mxu0 %vm1535_vm1, %v1534_v5  ;;  %1439 = vmatpush3.bf16.msra.mxu1 %v1493_v45 }
 0x470   : > { %1452 = vmatprep.subr.bf16.mxu1 %v1534_v5  ;;  %1445 = vmatpush3.bf16.msra.mxu0 %v1494_v13 }
 0x471   : > { %1446 = vmatprep.subr.bf16.mxu0 %v1534_v5 }
 0x4c2   : > { %v796_v40 = vpop.f32.mrf.mxu1 }
 0x4c4   : > { %v1416_v41 = vpop.f32.mrf.mxu1 }
 0x4c6   : > { %v799_v42 = vpop.f32.mrf.mxu1 }
 0x4c8   : > { %v1417_v43 = vpop.f32.mrf.mxu1 }
 0x526   : > { %v844_v46 = vpop.f32.mrf.mxu0 }
 0x527   : > { %947 = vrot.lane.b32.xlu0 %v844_v46, %s1541_s29 }
 0x528   : > { %v1422_v47 = vpop.f32.mrf.mxu0 }
 0x52a   : > { %v847_v48 = vpop.f32.mrf.mxu0  ;;  %v892_v49 = vpop.f32.mrf.mxu1 }
 0x52b   : > { %951 = vrot.lane.b32.xlu1 %v892_v49, %s1542_s30 }
 0x52c   : > { %v1423_v50 = vpop.f32.mrf.mxu0  ;;  %v1428_v51 = vpop.f32.mrf.mxu1 }
 0x52e   : > { %v895_v52 = vpop.f32.mrf.mxu1  ;;  %v940_v53 = vpop.f32.mrf.mxu0 }
 0x52f   : > { %955 = vrot.lane.b32.xlu0 %v940_v53, %s1543_s13  ;;  %v1335_v52 = vld [vmem:[%s1827_s11] ss:$0 sm:$0xff] }
 0x530   : > { %v1429_v54 = vpop.f32.mrf.mxu1  ;;  %v1434_v55 = vpop.f32.mrf.mxu0 }
 0x532   : > { %v943_v56 = vpop.f32.mrf.mxu0 }
 0x534   : > { %v1435_v57 = vpop.f32.mrf.mxu0 }
 0x599   : > { %v948_v58 = vpop.permute.xlu0 %947 }
 0x59a   : > { %v958_v60 = vsel %vm514_vm2, %v796_v40, %v948_v58 }
 0x59d   : > { %v952_v59 = vpop.permute.xlu1 %951 }
 0x59e   : > { %v960_v61 = vsel %vm959_vm4, %v958_v60, %v952_v59 }
 0x5a1   : > { %v956_v62 = vpop.permute.xlu0 %955 }
 0x5a2   : > { %v962_v63 = vsel %vm961_vm5, %v960_v61, %v956_v62 }
 0x5a3   : > { %v963_v1 = vpack.c.bf16 %v962_v63, %v962_v63 }
 0x5a5   : > { %1441 = vmatmul.mubr.msk.bf16.vlgmr.msra.gmra.mxu1 %vm413_vm0, %v963_v1 }
 0x5a6   : > { %1468 = vmatprep.mubr.msk.bf16.mxu1 %vm1535_vm1, %v1534_v5  ;;  %1453 = vmatpush3.bf16.msra.mxu1 %v1496_v29 }
 0x5a7   : > { %1454 = vmatprep.subr.bf16.mxu1 %v1534_v5 }
 0x5aa   : > { %1455 = vmatpush3.bf16.msra.mxu1 %v1497_v30 }
 0x5ab   : > { %1456 = vmatprep.subr.bf16.mxu1 %v1534_v5 }
 0x5ae   : > { %1457 = vmatpush3.bf16.msra.mxu1 %v1498_v31 }
 0x5af   : > { %1458 = vmatprep.subr.bf16.mxu1 %v1534_v5 }
 0x5b2   : > { %1459 = vmatpush3.bf16.msra.mxu1 %v1499_v32 }
 0x5b3   : > { %1460 = vmatprep.subr.bf16.mxu1 %v1534_v5 }
 0x5b6   : > { %1461 = vmatpush3.bf16.msra.mxu1 %v1500_v33 }
 0x5b7   : > { %1462 = vmatprep.subr.bf16.mxu1 %v1534_v5 }
 0x5ba   : > { %1463 = vmatpush3.bf16.msra.mxu1 %v1501_v34 }
 0x5bb   : > { %1464 = vmatprep.subr.bf16.mxu1 %v1534_v5 }
 0x5be   : > { %1465 = vmatpush3.bf16.msra.mxu1 %v1502_v35 }
 0x5bf   : > { %1466 = vmatprep.subr.bf16.mxu1 %v1534_v5 }
 0x5c2   : > { %1467 = vmatpush3.bf16.msra.mxu1 %v1503_v36 }
 0x665   : > { %v1024_v3 = vpop.f32.mrf.mxu1 }
 0x666   : > { %v1025_v4 = vadd.f32 %v1325_v2, %v1024_v3 }
 0x667   : > { %v1442_v6 = vpop.f32.mrf.mxu1 }
 0x668   : > { %v1747_v7 = vadd.f32 %v1025_v4, %v1625_v0  ;;  %v1495_v0 = vld [vmem:[%s1824_s8] sm:$0xff]  }
 0x669   : > { %v1027_v8 = vpop.f32.mrf.mxu1  ;;  %1447 = vmatpush3.bf16.msra.mxu0 %v1495_v0 }
 0x66a   : > { %v1033_v9 = vsel %vm413_vm0, %v1747_v7, 0.0  ;;  %v1037_v10 = vmul.f32 %v1747_v7, %v1747_v7 }
 0x66b   : > { %1034 = vadd.xlane.f32.xlu1 %v1033_v9  ;;  %v1443_v11 = vpop.f32.mrf.mxu1 }
 0x66c   : > { %v1038_v12 = vsel %vm413_vm0, %v1037_v10, 0.0 }
 0x66d   : > { %1039 = vadd.xlane.f32.xlu0 %v1038_v12 }
 0x6f4   : > { %v1035_v14 = vpop.xlane.xlu1 %1034 }
 0x6f5   : > { %v1036_v15 = vmul.f32 0.03125, %v1035_v14 }
 0x6f6   : > { %v1040_v16 = vpop.xlane.xlu0 %1039 }
 0x6f7   : > { %v1042_v17 = vmul.f32 %v1036_v15, %v1036_v15  ;;  %v1041_v18 = vmul.f32 0.03125, %v1040_v16  ;;  %v1044_v21 = vsub.f32 %v1747_v7, %v1036_v15 }
 0x6f9   : > { %v1043_v19 = vsub.f32 %v1041_v18, %v1042_v17 }
 0x6fb   : > { %v1045_v20 = vadd.f32 1e-05, %v1043_v19 }
 0x6fd   : > { %1522 = vrsqrt.f32 %v1045_v20 }
 0x70a   : > { %v1523_v22 = vpop.eup %1522 }
 0x70b   : > { %v1047_v24 = vmul.f32 %v1523_v22, %v1044_v21 }
 0x70d   : > { %v1054_v26 = vmul.f32 %v1329_v23, %v1047_v24 }
 0x70f   : > { %v1061_v27 = vadd.f32 %v1330_v25, %v1054_v26 }
 0x711   : > { %v1062_v28 = vpack.c.bf16 %v1061_v27, %v1061_v27 }
 0x713   : > { %1449 = vmatmul.mubr.msk.bf16.vlgmr.msra.gmra.mxu0 %vm413_vm0, %v1062_v28 }
 0x7d3   : > { %v1123_v38 = vpop.f32.mrf.mxu0 }
 0x7d4   : > { %v1124_v39 = vadd.f32 %v1331_v37, %v1123_v38 }
 0x7d5   : > { %v1450_v40 = vpop.f32.mrf.mxu0 }
 0x7d6   : > { %v1129_v41 = vmul.f32 %v1124_v39, %v1124_v39 }
 0x7d7   : > { %v1126_v42 = vpop.f32.mrf.mxu0 }
 0x7d8   : > { %v1130_v43 = vmul.f32 %v1129_v41, %v1124_v39 }
 0x7d9   : > { %v1451_v44 = vpop.f32.mrf.mxu0 }
 0x7da   : > { %v1131_v45 = vmul.f32 0.044715, %v1130_v43 }
 0x7dc   : > { %v1132_v46 = vadd.f32 %v1131_v45, %v1124_v39 }
 0x7de   : > { %v1133_v47 = vmul.f32 0.7978846, %v1132_v46 }
 0x7e0   : > { %1524 = vtanh.f32 %v1133_v47 }
 0x7ed   : > { %v1525_v48 = vpop.eup %1524 }
 0x7ee   : > { %v1135_v49 = vadd.f32 1.0, %v1525_v48 }
 0x7f0   : > { %v1136_v5 = vmul.f32 0.5, %v1135_v49 }
 0x7f2   : > { %v1137_v50 = vmul.f32 %v1136_v5, %v1124_v39 }
 0x7f4   : > { %v1138_v51 = vpack.c.bf16 %v1137_v50, %v1137_v50 }
 0x7f6   : > { %1469 = vmatmul.mubr.bf16.vlgmr.msra.gmra.mxu1 %v1138_v51 }
 0x8b6   : > { %v1244_v53 = vpop.f32.mrf.mxu1 }
 0x8b7   : > { %v1245_v54 = vadd.f32 %v1335_v52, %v1244_v53 }
 0x8b8   : > { %v1470_v55 = vpop.f32.mrf.mxu1 }
 0x8b9   : > { %v1250_v56 = vadd.f32 %v1245_v54, %v1747_v7 }
 0x8ba   : > { %v1247_v57 = vpop.f32.mrf.mxu1 }
 0x8bb   : > { %1251 = vst.msk [vmem:[%s408_s16] sm:$0xff] %vm413_vm0, %v1250_v56 }
 0x8bc   : > { %v1471_v58 = vpop.f32.mrf.mxu1 }
 0x8bd PF: > { %s22_s21 = sadd.s32 1, %s1532_s21  }
 0x8be   : > { %p19_p4 = scmp.ge.s32.totalorder %s22_s21, 4  }
 0x8c0   :  { %21 = sbr.rel (!%p19_p4) target bundleno = 1 (0x1), region = 98 }

// kernel: basic_block_forward.5
= control target key start
LH: loop header
LB: loop body
LE: loop exit
PB: predicated region body
PF: predicated region fallthrough
CT: control target
= control target key end

     0   :  { %9 = vsyncpa [#allocation3], 0  ;;  %s670_s0 = inlined_call_operand.vmem [shape: f32[2,4,64], index: 0, kind: input, shape index: {}]   ;;  %s671_s1 = inlined_call_operand.vmem [shape: f32[1,64], index: 1, kind: input, shape index: {}]   ;;  %s672_s2 = inlined_call_operand.vmem [shape: f32[1,64], index: 2, kind: input, shape index: {}]   ;;  %s673_s3 = inlined_call_operand.vmem [shape: bf16[64,64], index: 3, kind: input, shape index: {}]   ;;  %s674_s4 = inlined_call_operand.hbm [shape: f32[2,4,64], index: 4, kind: output, shape index: {}]  }
   0x1   :  { %11 = vsyncpa [#allocation3 + $0x1], 0  ;;  %s550_s15 = smov 0   ;;  %s552_s16 = smov 0  }
   0x2   :  { %s554_s17 = smov 0   ;;  %s556_s18 = smov 0  }
   0x3 LB: > { %s571_s19 = sadd.s32 4294967295, %s520_s18   ;;  %s379_s20 = sadd.s32 4294967294, %s520_s18   ;;  %s520_s18 = sphi %s556_s18, %s680_s18   ;;  %s516_s17 = sphi %s554_s17, %s679_s17   ;;  %s512_s16 = sphi %s552_s16, %s678_s16   ;;  %s508_s15 = sphi %s550_s15, %s677_s15  }
   0x4   : > { %s575_s21 = sadd.s32 1, %s520_s18   ;;  %s113_s22 = sadd.s32 1, %s516_s17 }
   0x5   : > { %s110_s23 = ssub.s32 %s520_s18, %s575_s21  ;;  %p123_p0 = scmp.ne.s32.totalorder %s516_s17, %s512_s16 }
   0x6   : > { %p111_p1 = scmp.eq.s32.totalorder %s110_s23, 0  ;;  %p124_p2 = scmp.eq.s32.totalorder %s571_s19, 1 }
   0x7   : > { %p129_p3 = scmp.ne.s32.totalorder %s512_s16, %s508_s15  ;;  %p130_p4 = scmp.eq.s32.totalorder %s379_s20, 1 }
   0x8   : > { %s586_s24 = scalar_select %p111_p1, %s516_s17, %s113_s22  }
   0x9   : > { %p588_p5 = por %p124_p2, %p123_p0  ;;  %p592_p6 = por %p130_p4, %p129_p3 }
   0xa   : > { %p382_p7 = scmp.ge.s32.totalorder %s520_s18, 1  ;;  %p164_p8 = scmp.lt.s32.totalorder %s520_s18, 3 }
   0xc   : > { %p165_p9 = pnand %p382_p7, %p164_p8 }
   0xd   : > { %p189_p10 = scmp.lt.s32.totalorder (!%p165_p9), %s571_s19, 1  ;;  %s393_s29 = sshll.u32 (!%p165_p9), %s571_s19, 6 }
   0xe   : > { %168 = sbr.rel (%p165_p9) target bundleno = 404 (0x194), region = 36  ;;  %s628_s8 = scalar_lea.hbm (!%p165_p9), %s674_s4, %s393_s29 }
  0x13   : > { %s190_s27 = scalar_select %p189_p10, %s571_s19, 1  ;;  %vm197_vm0 = vcmask 519168   ;;  %v454_v4 = vld [vmem:[%s673_s3 + $0x18] sm:$0xff]   ;;  %v522_v5 = vmov 0.0   ;;  %vm523_vm1 = vmmov 0   ;;  %v455_v6 = vld [vmem:[%s673_s3 + $0x10] sm:$0xff]  }
  0x14   : > { %401 = vmatprep.subr.bf16.mxu0 %v522_v5  ;;  %409 = vmatprep.mubr.msk.bf16.mxu0 %vm523_vm1, %v522_v5  ;;  %v456_v7 = vld [vmem:[%s673_s3 + $0x8] sm:$0xff]   ;;  %v457_v8 = vld [vmem:[%s673_s3] sm:$0xff]   ;;  %vm261_vm2 = vcmask 523264   ;;  %s524_s19 = smov [#allocation2]  }
  0x15   : > { %s384_s28 = sshll.u32 %s190_s27, 2  ;;  %402 = vmatpush3.bf16.msra.mxu0 %v454_v4  ;;  %v385_v18 = vld [vmem:[%s671_s1] ss:$0 sm:$0xff]  ;;  %s186_s27 = sand.u32 1, %s512_s16  }
  0x16   : > { %s192_s5 = scalar_lea.vmem %s670_s0, %s384_s28  ;;  %403 = vmatprep.subr.bf16.mxu0 %v522_v5  ;;  %v386_v20 = vld [vmem:[%s672_s2] ss:$0 sm:$0xff]  ;;  %s383_s28 = sshll.u32 %s186_s27, 2 }
  0x17   : > { %v194_v0 = vld [vmem:[%s192_s5] sm:$0xf]  ;;  %s188_s30 = scalar_lea.vmem [#allocation2], %s383_s28  ;;  %s307_s9 = scalar_lea.sflag [#allocation3], %s186_s27 }
  0x18   : > { %v198_v1 = vsel %vm197_vm0, %v194_v0, 0.0  ;;  %v203_v2 = vmul.f32 %v194_v0, %v194_v0  ;;  %s320_s5 = sshll.u32 %s188_s30, 4  ;;  %s464_s11 = sshll.u32 %s524_s19, 4  ;;  %s630_s5 = int_to_ptr.vmem [resolvable:$true] %s320_s5  ;;  %s465_s11 = int_to_ptr.vmem [resolvable:$false] %s464_s11 }
  0x19   : > { %199 = vadd.xlane.f32.xlu0 %v198_v1  ;;  %404 = vmatpush3.bf16.msra.mxu0 %v455_v6  ;;  %s460_s10 = scalar_lea.vmem %s630_s5, 64  ;;  %s466_s12 = scalar_lea.vmem %s465_s11, 128 }
  0x1a   : > { %v204_v3 = vsel %vm197_vm0, %v203_v2, 0.0  ;;  %405 = vmatprep.subr.bf16.mxu0 %v522_v5  ;;  %p461_p11 = scmp.ne.s32.totalorder %s630_s5, %s460_s10  ;;  %p467_p0 = scmp.lt.s32.totalorder %s630_s5, %s465_s11 }
  0x1b   : > { %p468_p1 = scmp.lt.s32.totalorder %s466_s12, %s460_s10 }
  0x1c   : > { %p462_p12 = pnand %p461_p11, %p588_p5 }
  0x1d   : > { %205 = vadd.xlane.f32.xlu0 %v204_v3  ;;  %406 = vmatpush3.bf16.msra.mxu0 %v456_v7  ;;  %p469_p2 = por %p468_p1, %p467_p0 }
  0x1e   : > { %407 = vmatprep.subr.bf16.mxu0 %v522_v5  ;;  %p463_p13 = pneg %p462_p12 }
  0x20   : > { %p470_p3 = pnand %p469_p2, %p463_p13 }
  0x21   : > { %408 = vmatpush3.bf16.msra.mxu0 %v457_v8 }
  0xa2   : > { %v200_v9 = vpop.xlane.xlu0 %199 }
  0xa3   : > { %v202_v10 = vmul.f32 0.015625, %v200_v9 }
  0xa5   : > { %v208_v12 = vmul.f32 %v202_v10, %v202_v10  ;;  %v210_v16 = vsub.f32 %v194_v0, %v202_v10 }
  0xa6   : > { %v206_v11 = vpop.xlane.xlu0 %205 }
  0xa7   : > { %v207_v13 = vmul.f32 0.015625, %v206_v11 }
  0xa9   : > { %v209_v14 = vsub.f32 %v207_v13, %v208_v12 }
  0xab   : > { %v211_v15 = vadd.f32 1e-05, %v209_v14 }
  0xad   : > { %458 = vrsqrt.f32 %v211_v15 }
  0xba   : > { %v459_v17 = vpop.eup %458 }
  0xbb   : > { %v213_v19 = vmul.f32 %v459_v17, %v210_v16 }
  0xbd   : > { %v220_v21 = vmul.f32 %v385_v18, %v213_v19 }
  0xbf   : > { %v227_v22 = vadd.f32 %v386_v20, %v220_v21 }
  0xc1   : > { %v228_v23 = vpack.c.bf16 %v227_v22, %v227_v22 }
  0xc3   : > { %410 = vmatmul.mubr.msk.bf16.vlgmr.msra.gmra.mxu0 %vm261_vm2, %v228_v23 }
 0x183   : > { %v299_v24 = vpop.f32.mrf.mxu0 }
 0x184   : > { %305 = vst.msk [vmem:[%s188_s30] sm:$0xf] %vm197_vm0, %v299_v24 }
 0x185   : > { %v411_v25 = vpop.f32.mrf.mxu0 }
 0x186   : > { %473 = shalt.err (!%p470_p3)
}
 0x187   : > { %s474_s13 = scalar_lea.hbm %s628_s8, 64  ;;  %s478_s22 = scalar_lea.hbm %s674_s4, 128 }
 0x188   : > { %p475_p4 = scmp.ne.s32.totalorder %s628_s8, %s474_s13  ;;  %p479_p9 = scmp.lt.s32.totalorder %s628_s8, %s674_s4 }
 0x189   : > { %p480_p10 = scmp.lt.s32.totalorder %s478_s22, %s474_s13 }
 0x18a   : > { %p476_p7 = pnand %p475_p4, %p588_p5 }
 0x18b   : > { %p481_p11 = por %p480_p10, %p479_p9 }
 0x18c   : > { %p477_p8 = pneg %p476_p7 }
 0x18e   : > { %p482_p12 = pnand %p481_p11, %p477_p8 }
 0x190   : > { %485 = shalt.err (!%p482_p12)
}
 0x191   : > { %413 = dma.vmem_to_hbm [thread:$0]  (%p588_p5), %s630_s5, 64, %s628_s8, %s307_s9   ;;  %v302_v26 = vpop.f32.mrf.mxu0 }
 0x193   : > { %v412_v27 = vpop.f32.mrf.mxu0 }
 0x194 PF: > { %p419_p13 = scmp.ge.s32.totalorder %s520_s18, 2  ;;  %s332_s28 = sand.u32 1, %s508_s15  }
 0x195   : > { %s333_s29 = scalar_lea.sflag [#allocation3], %s332_s28 }
 0x196   : > { %p416_p0 = pnand %p419_p13, %p592_p6 }
 0x198   : > { %p417_p1 = pneg %p416_p0 }
 0x19a   : > { %503 = dma.done.wait (%p417_p1), %s333_s29, 64  }
 0x19b   : > { %505 = vsyncadd (%p417_p1), %s333_s29, 4294967232  ;;  %p14_p5 = scmp.ge.s32.totalorder %s575_s21, 4   ;;  %s677_s15 = smov %s512_s16 }
 0x19c   : > { %s678_s16 = smov %s516_s17  ;;  %s679_s17 = smov %s586_s24 }
 0x19d   : > { %s680_s18 = smov %s575_s21  ;;  %16 = sbr.rel (!%p14_p5) target bundleno = 3 (0x3), region = 71 }
 0x1a2   :  { %338 = vsyncpa [#allocation3], 1 }
 0x1a3   :  { %340 = vsyncpa [#allocation3 + $0x1], 1 }

// kernel: basic_block_forward.3
= control target key start
LH: loop header
LB: loop body
LE: loop exit
PB: predicated region body
PF: predicated region fallthrough
CT: control target
= control target key end

     0   :  { %s1609_s21 = smov 0   ;;  %s1816_s0 = inlined_call_operand.vmem [shape: f32[2,8,32], index: 0, kind: input, shape index: {}]   ;;  %s1817_s1 = inlined_call_operand.vmem [shape: f32[1,32], index: 1, kind: input, shape index: {}]   ;;  %s1818_s2 = inlined_call_operand.vmem [shape: f32[1,32], index: 2, kind: input, shape index: {}]   ;;  %s1819_s3 = inlined_call_operand.vmem [shape: bf16[32,96], index: 3, kind: input, shape index: {}]   ;;  %s1820_s4 = inlined_call_operand.vmem [shape: bf16[32,32], index: 4, kind: input, shape index: {}]   ;;  %s1821_s5 = inlined_call_operand.vmem [shape: f32[1,32], index: 5, kind: input, shape index: {}]   ;;  %s1822_s6 = inlined_call_operand.vmem [shape: f32[1,32], index: 6, kind: input, shape index: {}]   ;;  %s1823_s7 = inlined_call_operand.vmem [shape: f32[1,32], index: 7, kind: input, shape index: {}]   ;;  %s1824_s8 = inlined_call_operand.vmem [shape: bf16[32,128], index: 8, kind: input, shape index: {}]   ;;  %s1825_s9 = inlined_call_operand.vmem [shape: f32[1,128], index: 9, kind: input, shape index: {}]   ;;  %s1826_s10 = inlined_call_operand.vmem [shape: bf16[128,32], index: 10, kind: input, shape index: {}]   ;;  %s1827_s11 = inlined_call_operand.vmem [shape: f32[1,32], index: 11, kind: input, shape index: {}]   ;;  %s1828_s12 = inlined_call_operand.vmem [shape: f32[2,8,32], index: 12, kind: output, shape index: {}]  }
   0x1 LB: > { %s1305_s22 = sadd.s32 4294967295, %s1532_s21   ;;  %p1309_p0 = scmp.ge.s32.totalorder %s1532_s21, 1  ;;  %s1532_s21 = sphi %s1609_s21, %s22_s21  }
   0x2   : > { %p361_p1 = scmp.lt.s32.totalorder %s1532_s21, 3 }
   0x4   : > { %p362_p2 = pnand %p1309_p0, %p361_p1 }
   0x5   : > { %p401_p3 = scmp.lt.s32.totalorder (!%p362_p2), %s1305_s22, 1  ;;  %s1536_s17 = smov (!%p362_p2), 104  }
   0x6   : > { %365 = sbr.rel (%p362_p2) target bundleno = 2237 (0x8bd), region = 68  ;;  %s1537_s18 = smov (!%p362_p2), 120  }
   0x7   : > { %s1538_s19 = smov (!%p362_p2), 112   ;;  %s1539_s20 = smov (!%p362_p2), 96  }
   0x8   : > { %s1540_s24 = smov (!%p362_p2), 64   ;;  %s1541_s29 = smov (!%p362_p2), 8  }
   0x9   : > { %s1542_s30 = smov (!%p362_p2), 16   ;;  %s1543_s13 = smov (!%p362_p2), 24  }
   0xb   : > { %s1830_s22 = smov (!%p401_p3, %s1305_s22), 1  ;;  %vm413_vm0 = vcmask 261120   ;;  %v1490_v4 = vld [vmem:[%s1819_s3 + $0x8] sm:$0xff]   ;;  %v1534_v5 = vmov 0.0   ;;  %vm1535_vm1 = vmmov 0   ;;  %v1491_v6 = vld [vmem:[%s1819_s3] sm:$0xff]  }
   0xc   : > { %s1310_s23 = sshll.u32 %s1830_s22, 3  ;;  %1380 = vmatprep.subr.bf16.mxu0 %v1534_v5  ;;  %1384 = vmatprep.mubr.msk.bf16.mxu0 %vm1535_vm1, %v1534_v5  ;;  %v1312_v16 = vld [vmem:[%s1817_s1] ss:$0 sm:$0xff]  ;;  %vm514_vm2 = vcmask 64512   ;;  %vm758_vm3 = vcmask 1043456   ;;  %vm959_vm4 = vcmask 130048  }
   0xd   : > { %s404_s26 = scalar_lea.vmem %s1816_s0, %s1310_s23  ;;  %1381 = vmatpush3.bf16.msra.mxu0 %v1490_v4  ;;  %1400 = vmatprep.subr.bf16.mxu1 %v1534_v5  ;;  %v1313_v18 = vld [vmem:[%s1818_s2] ss:$0 sm:$0xff]  ;;  %vm961_vm5 = vcmask 195584   ;;  %s408_s16 = scalar_lea.vmem %s1828_s12, %s1310_s23 }
   0xe   : > { %v1625_v0 = vld [vmem:[%s404_s26] sm:$0xff]  ;;  %1382 = vmatprep.subr.bf16.mxu0 %v1534_v5  ;;  %1402 = vmatprep.mubr.msk.bf16.mxu1 %vm1535_vm1, %v1534_v5 }
   0xf   : > { %v414_v1 = vsel %vm413_vm0, %v1625_v0, 0.0  ;;  %v419_v2 = vmul.f32 %v1625_v0, %v1625_v0 }
  0x10   : > { %415 = vadd.xlane.f32.xlu0 %v414_v1 }
  0x11   : > { %v420_v3 = vsel %vm413_vm0, %v419_v2, 0.0  ;;  %1383 = vmatpush3.bf16.msra.mxu0 %v1491_v6 }
  0x12   : > { %1388 = vmatprep.subr.bf16.mxu0 %v1534_v5 }
  0x14   : > { %421 = vadd.xlane.f32.xlu0 %v420_v3 }
  0x99   : > { %v416_v7 = vpop.xlane.xlu0 %415 }
  0x9a   : > { %v418_v8 = vmul.f32 0.03125, %v416_v7 }
  0x9c   : > { %v424_v10 = vmul.f32 %v418_v8, %v418_v8  ;;  %v426_v14 = vsub.f32 %v1625_v0, %v418_v8 }
  0x9d   : > { %v422_v9 = vpop.xlane.xlu0 %421 }
  0x9e   : > { %v423_v11 = vmul.f32 0.03125, %v422_v9 }
  0xa0   : > { %v425_v12 = vsub.f32 %v423_v11, %v424_v10 }
  0xa2   : > { %v427_v13 = vadd.f32 1e-05, %v425_v12 }
  0xa4   : > { %1504 = vrsqrt.f32 %v427_v13 }
  0xb1   : > { %v1505_v15 = vpop.eup %1504 }
  0xb2   : > { %v429_v17 = vmul.f32 %v1505_v15, %v426_v14 }
  0xb4   : > { %v436_v19 = vmul.f32 %v1312_v16, %v429_v17 }
  0xb6   : > { %v443_v20 = vadd.f32 %v1313_v18, %v436_v19 }
  0xb8   : > { %v444_v21 = vpack.c.bf16 %v443_v20, %v443_v20 }
  0xba   : > { %1385 = vmatmul.mubr.msk.bf16.vlgmr.msra.gmra.mxu0 %vm413_vm0, %v444_v21 }
  0xbb   : > { %1390 = vmatprep.mubr.msk.bf16.mxu0 %vm1535_vm1, %v1534_v5 }
 0x17a   : > { %v498_v22 = vpop.f32.mrf.mxu0 }
 0x17b   : > { %v1656_v23 = vpack.c.bf16 %v498_v22, %v498_v22 }
 0x17c   : > { %v1386_v24 = vpop.f32.mrf.mxu0 }
 0x17d   : > { %510 = vrot.lane.b32.xlu0 %v1656_v23, %s1536_s17  ;;  %506 = vrot.lane.b32.xlu1 %v1656_v23, %s1537_s18 }
 0x17e   : > { %v501_v25 = vpop.f32.mrf.mxu0 }
 0x180   : > { %v1387_v26 = vpop.f32.mrf.mxu0 }
 0x181   : > { %508 = vrot.lane.b32.xlu1 %v1656_v23, %s1538_s19 }
 0x185   : > { %512 = vrot.lane.b32.xlu1 %v1656_v23, %s1539_s20 }
 0x1ef   : > { %v1662_v27 = vpop.permute.xlu1 %506  ;;  %v1668_v29 = vpop.permute.xlu0 %510 }
 0x1f0   : > { %561 = vrot.lane.b32.xlu1 %v1662_v27, %s1539_s20 }
 0x1f3   : > { %v1665_v28 = vpop.permute.xlu1 %508 }
 0x1f4   : > { %609 = vrot.lane.b32.xlu1 %v1665_v28, %s1539_s20 }
 0x1f7   : > { %v513_v30 = vpop.permute.xlu1 %512 }
 0x1f8   : > { %v519_v31 = vsel %vm514_vm2, %v513_v30, 0  ;;  %657 = vrot.lane.b32.xlu1 %v1668_v29, %s1539_s20 }
 0x1f9   : > { %1389 = vmatpush3.bf16.xpose.msra.mxu0 %v519_v31 }
 0x1fa   : > { %1394 = vmatprep.subr.bf16.mxu0 %v1534_v5 }
 0x200   : > { %1391 = vmatmul.mubr.msk.bf16.vlgmr.msra.gmra.mxu0 %vm514_vm2, %v1656_v23 }
 0x201   : > { %1396 = vmatprep.mubr.msk.bf16.mxu0 %vm1535_vm1, %v1534_v5 }
 0x262   : > { %v562_v32 = vpop.permute.xlu1 %561 }
 0x263   : > { %v567_v33 = vsel %vm514_vm2, %v562_v32, 0 }
 0x264   : > { %1395 = vmatpush3.bf16.xpose.msra.mxu0 %v567_v33 }
 0x265   : > { %1406 = vmatprep.subr.bf16.mxu0 %v1534_v5 }
 0x266   : > { %v610_v34 = vpop.permute.xlu1 %609 }
 0x267   : > { %v615_v35 = vsel %vm514_vm2, %v610_v34, 0 }
 0x268   : > { %1401 = vmatpush3.bf16.xpose.msra.mxu1 %v615_v35 }
 0x269   : > { %1412 = vmatprep.subr.bf16.mxu1 %v1534_v5 }
 0x26a   : > { %v658_v36 = vpop.permute.xlu1 %657 }
 0x26b   : > { %v663_v37 = vsel %vm514_vm2, %v658_v36, 0  ;;  %1397 = vmatmul.mubr.msk.bf16.vlgmr.msra.gmra.mxu0 %vm514_vm2, %v1662_v27 }
 0x26c   : > { %1407 = vmatpush3.bf16.xpose.msra.mxu0 %v663_v37  ;;  %1408 = vmatprep.mubr.msk.bf16.mxu0 %vm1535_vm1, %v1534_v5 }
 0x26d   : > { %1418 = vmatprep.subr.bf16.mxu0 %v1534_v5 }
 0x26f   : > { %1403 = vmatmul.mubr.msk.bf16.vlgmr.msra.gmra.mxu1 %vm514_vm2, %v1665_v28 }
 0x270   : > { %1414 = vmatprep.mubr.msk.bf16.mxu1 %vm1535_vm1, %v1534_v5 }
 0x273   : > { %1409 = vmatmul.mubr.msk.bf16.vlgmr.msra.gmra.mxu0 %vm514_vm2, %v1668_v29 }
 0x274   : > { %1420 = vmatprep.mubr.msk.bf16.mxu0 %vm1535_vm1, %v1534_v5 }
 0x2c0   : > { %v555_v38 = vpop.f32.mrf.mxu0 }
 0x2c1   : > { %v705_v39 = vsel %vm514_vm2, %v555_v38, -inf }
 0x2c2   : > { %706 = vmax.xlane.f32.xlu1 %v705_v39  ;;  %v1392_v40 = vpop.f32.mrf.mxu0 }
 0x2c4   : > { %v558_v41 = vpop.f32.mrf.mxu0 }
 0x2c6   : > { %v1393_v42 = vpop.f32.mrf.mxu0 }
 0x32b   : > { %v603_v43 = vpop.f32.mrf.mxu0 }
 0x32c   : > { %v708_v44 = vsel %vm514_vm2, %v603_v43, -inf }
 0x32d   : > { %709 = vmax.xlane.f32.xlu0 %v708_v44  ;;  %v1398_v45 = vpop.f32.mrf.mxu0  ;;  %v1492_v44 = vld [vmem:[%s1820_s4 + $0x8] sm:$0xff]  }
 0x32e   : > { %v1493_v45 = vld [vmem:[%s1820_s4] sm:$0xff]  }
 0x32f   : > { %v606_v46 = vpop.f32.mrf.mxu0  ;;  %v651_v47 = vpop.f32.mrf.mxu1 }
 0x330   : > { %v711_v48 = vsel %vm514_vm2, %v651_v47, -inf }
 0x331   : > { %v1404_v49 = vpop.f32.mrf.mxu1  ;;  %712 = vmax.xlane.f32.xlu1 %v711_v48  ;;  %v1399_v50 = vpop.f32.mrf.mxu0 }
 0x333   : > { %v654_v51 = vpop.f32.mrf.mxu1  ;;  %v699_v52 = vpop.f32.mrf.mxu0 }
 0x334   : > { %v714_v53 = vsel %vm514_vm2, %v699_v52, -inf }
 0x335   : > { %v1405_v54 = vpop.f32.mrf.mxu1  ;;  %715 = vmax.xlane.f32.xlu0 %v714_v53  ;;  %v1410_v55 = vpop.f32.mrf.mxu0 }
 0x337   : > { %v702_v56 = vpop.f32.mrf.mxu0 }
 0x339   : > { %v1411_v57 = vpop.f32.mrf.mxu0 }
 0x342   : > { %753 = vrot.lane.b32.xlu1 %v1656_v23, %s1540_s24 }
 0x34b   : > { %v707_v58 = vpop.xlane.xlu1 %706 }
 0x34c   : > { %v717_v59 = vsub.f32 %v555_v38, %v707_v58 }
 0x34e   : > { %v721_v60 = vmul.f32 1.442695, %v717_v59 }
 0x350   : > { %1506 = vpow2.f32 %v721_v60 }
 0x35d   : > { %v1507_v61 = vpop.eup %1506 }
 0x35e   : > { %v729_v62 = vsel %vm514_vm2, %v1507_v61, 0.0 }
 0x366   : > { %730 = vadd.xlane.f32.xlu1 %v729_v62 }
 0x3b6   : > { %v710_v63 = vpop.xlane.xlu0 %709 }
 0x3b7   : > { %v718_v1 = vsub.f32 %v603_v43, %v710_v63 }
 0x3b9   : > { %v723_v2 = vmul.f32 1.442695, %v718_v1 }
 0x3ba   : > { %v713_v3 = vpop.xlane.xlu1 %712 }
 0x3bb   : > { %1508 = vpow2.f32 %v723_v2  ;;  %v719_v4 = vsub.f32 %v651_v47, %v713_v3  ;;  %v1325_v2 = vld [vmem:[%s1821_s5] ss:$0 sm:$0xff] }
 0x3bd   : > { %v725_v6 = vmul.f32 1.442695, %v719_v4 }
 0x3be   : > { %v754_v7 = vpop.permute.xlu1 %753  ;;  %v716_v8 = vpop.xlane.xlu0 %715 }
 0x3bf   : > { %1510 = vpow2.f32 %v725_v6  ;;  %v760_v9 = vsel %vm758_vm3, %v754_v7, 0  ;;  %v720_v10 = vsub.f32 %v699_v52, %v716_v8 }
 0x3c0   : > { %1413 = vmatpush3.bf16.msra.mxu1 %v760_v9 }
 0x3c1   : > { %v727_v11 = vmul.f32 1.442695, %v720_v10  ;;  %1424 = vmatprep.subr.bf16.mxu1 %v1534_v5 }
 0x3c3   : > { %1512 = vpow2.f32 %v727_v11 }
 0x3c8   : > { %v1509_v12 = vpop.eup %1508 }
 0x3c9   : > { %v732_v13 = vsel %vm514_vm2, %v1509_v12, 0.0 }
 0x3ca   : > { %733 = vadd.xlane.f32.xlu0 %v732_v13  ;;  %v1494_v13 = vld [vmem:[%s1824_s8 + $0x8] sm:$0xff]  }
 0x3cc   : > { %v1511_v14 = vpop.eup %1510 }
 0x3cd   : > { %v735_v15 = vsel %vm514_vm2, %v1511_v14, 0.0 }
 0x3ce   : > { %736 = vadd.xlane.f32.xlu1 %v735_v15 }
 0x3d0   : > { %v1513_v16 = vpop.eup %1512 }
 0x3d1   : > { %v738_v17 = vsel %vm514_vm2, %v1513_v16, 0.0 }
 0x3d2   : > { %739 = vadd.xlane.f32.xlu0 %v738_v17 }
 0x3df   : > { %850 = vrot.lane.b32.xlu1 %v1665_v28, %s1540_s24 }
 0x3e3   : > { %898 = vrot.lane.b32.xlu1 %v1668_v29, %s1540_s24 }
 0x3e8   : > { %802 = vrot.lane.b32.xlu0 %v1662_v27, %s1540_s24 }
 0x3ef   : > { %v731_v18 = vpop.xlane.xlu1 %730 }
 0x3f0   : > { %1514 = vrcp.f32 %v731_v18 }
 0x3fd   : > { %v1515_v19 = vpop.eup %1514 }
 0x3fe   : > { %v745_v20 = vmul.f32 %v1515_v19, %v1507_v61 }
 0x400   : > { %v749_v21 = vpack.c.bf16 %v745_v20, %v745_v20 }
 0x402   : > { %1415 = vmatmul.mubr.msk.bf16.vlgmr.msra.gmra.mxu1 %vm514_vm2, %v749_v21 }
 0x403   : > { %1426 = vmatprep.mubr.msk.bf16.mxu1 %vm1535_vm1, %v1534_v5 }
 0x453   : > { %v734_v22 = vpop.xlane.xlu0 %733 }
 0x454   : > { %1516 = vrcp.f32 %v734_v22 }
 0x457   : > { %v737_v23 = vpop.xlane.xlu1 %736 }
 0x458   : > { %1518 = vrcp.f32 %v737_v23  ;;  %v1329_v23 = vld [vmem:[%s1822_s6] ss:$0 sm:$0xff] }
 0x45b   : > { %v851_v24 = vpop.permute.xlu1 %850  ;;  %v740_v25 = vpop.xlane.xlu0 %739 }
 0x45c   : > { %v856_v26 = vsel %vm758_vm3, %v851_v24, 0  ;;  %1520 = vrcp.f32 %v740_v25  ;;  %v1330_v25 = vld [vmem:[%s1823_s7] ss:$0 sm:$0xff] }
 0x45d   : > { %1425 = vmatpush3.bf16.msra.mxu1 %v856_v26 }
 0x45e   : > { %1436 = vmatprep.subr.bf16.mxu1 %v1534_v5 }
 0x45f   : > { %v803_v27 = vpop.permute.xlu0 %802  ;;  %v899_v31 = vpop.permute.xlu1 %898 }
 0x460   : > { %v808_v28 = vsel %vm758_vm3, %v803_v27, 0  ;;  %v904_v34 = vsel %vm758_vm3, %v899_v31, 0  ;;  %v1498_v31 = vld [vmem:[%s1826_s10 + $0x28] sm:$0xff]  }
 0x461   : > { %v1517_v29 = vpop.eup %1516  ;;  %1419 = vmatpush3.bf16.msra.mxu0 %v808_v28 }
 0x462   : > { %1430 = vmatprep.subr.bf16.mxu0 %v1534_v5  ;;  %v746_v30 = vmul.f32 %v1517_v29, %v1509_v12  ;;  %v1496_v29 = vld [vmem:[%s1826_s10 + $0x38] sm:$0xff]  }
 0x464   : > { %v750_v32 = vpack.c.bf16 %v746_v30, %v746_v30  ;;  %v1497_v30 = vld [vmem:[%s1826_s10 + $0x30] sm:$0xff]  }
 0x465   : > { %v1519_v33 = vpop.eup %1518 }
 0x466   : > { %1421 = vmatmul.mubr.msk.bf16.vlgmr.msra.gmra.mxu0 %vm514_vm2, %v750_v32  ;;  %v747_v35 = vmul.f32 %v1519_v33, %v1511_v14  ;;  %v1499_v32 = vld [vmem:[%s1826_s10 + $0x20] sm:$0xff]   ;;  %v1500_v33 = vld [vmem:[%s1826_s10 + $0x18] sm:$0xff]  }
 0x467   : > { %1431 = vmatpush3.bf16.msra.mxu0 %v904_v34  ;;  %1432 = vmatprep.mubr.msk.bf16.mxu0 %vm1535_vm1, %v1534_v5  ;;  %v1501_v34 = vld [vmem:[%s1826_s10 + $0x10] sm:$0xff]  }
 0x468   : > { %v751_v36 = vpack.c.bf16 %v747_v35, %v747_v35  ;;  %1444 = vmatprep.subr.bf16.mxu0 %v1534_v5  ;;  %v1502_v35 = vld [vmem:[%s1826_s10 + $0x8] sm:$0xff]  }
 0x469   : > { %v1521_v37 = vpop.eup %1520 }
 0x46a   : > { %1427 = vmatmul.mubr.msk.bf16.vlgmr.msra.gmra.mxu1 %vm514_vm2, %v751_v36  ;;  %v748_v38 = vmul.f32 %v1521_v37, %v1513_v16  ;;  %v1503_v36 = vld [vmem:[%s1826_s10] sm:$0xff]  }
 0x46b   : > { %1440 = vmatprep.mubr.msk.bf16.mxu1 %vm1535_vm1, %v1534_v5  ;;  %1437 = vmatpush3.bf16.msra.mxu1 %v1492_v44  ;;  %v1331_v37 = vld [vmem:[%s1825_s9] ss:$0 sm:$0xff] }
 0x46c   : > { %v752_v39 = vpack.c.bf16 %v748_v38, %v748_v38  ;;  %1438 = vmatprep.subr.bf16.mxu1 %v1534_v5 }
 0x46e   : > { %1433 = vmatmul.mubr.msk.bf16.vlgmr.msra.gmra.mxu0 %vm514_vm2, %v752_v39 }
 0x46f   : > { %1448 = vmatprep.mubr.msk.bf16.mxu0 %vm1535_vm1, %v1534_v5  ;;  %1439 = vmatpush3.bf16.msra.mxu1 %v1493_v45 }
 0x470   : > { %1452 = vmatprep.subr.bf16.mxu1 %v1534_v5  ;;  %1445 = vmatpush3.bf16.msra.mxu0 %v1494_v13 }
 0x471   : > { %1446 = vmatprep.subr.bf16.mxu0 %v1534_v5 }
 0x4c2   : > { %v796_v40 = vpop.f32.mrf.mxu1 }
 0x4c4   : > { %v1416_v41 = vpop.f32.mrf.mxu1 }
 0x4c6   : > { %v799_v42 = vpop.f32.mrf.mxu1 }
 0x4c8   : > { %v1417_v43 = vpop.f32.mrf.mxu1 }
 0x526   : > { %v844_v46 = vpop.f32.mrf.mxu0 }
 0x527   : > { %947 = vrot.lane.b32.xlu0 %v844_v46, %s1541_s29 }
 0x528   : > { %v1422_v47 = vpop.f32.mrf.mxu0 }
 0x52a   : > { %v847_v48 = vpop.f32.mrf.mxu0  ;;  %v892_v49 = vpop.f32.mrf.mxu1 }
 0x52b   : > { %951 = vrot.lane.b32.xlu1 %v892_v49, %s1542_s30 }
 0x52c   : > { %v1423_v50 = vpop.f32.mrf.mxu0  ;;  %v1428_v51 = vpop.f32.mrf.mxu1 }
 0x52e   : > { %v895_v52 = vpop.f32.mrf.mxu1  ;;  %v940_v53 = vpop.f32.mrf.mxu0 }
 0x52f   : > { %955 = vrot.lane.b32.xlu0 %v940_v53, %s1543_s13  ;;  %v1335_v52 = vld [vmem:[%s1827_s11] ss:$0 sm:$0xff] }
 0x530   : > { %v1429_v54 = vpop.f32.mrf.mxu1  ;;  %v1434_v55 = vpop.f32.mrf.mxu0 }
 0x532   : > { %v943_v56 = vpop.f32.mrf.mxu0 }
 0x534   : > { %v1435_v57 = vpop.f32.mrf.mxu0 }
 0x599   : > { %v948_v58 = vpop.permute.xlu0 %947 }
 0x59a   : > { %v958_v60 = vsel %vm514_vm2, %v796_v40, %v948_v58 }
 0x59d   : > { %v952_v59 = vpop.permute.xlu1 %951 }
 0x59e   : > { %v960_v61 = vsel %vm959_vm4, %v958_v60, %v952_v59 }
 0x5a1   : > { %v956_v62 = vpop.permute.xlu0 %955 }
 0x5a2   : > { %v962_v63 = vsel %vm961_vm5, %v960_v61, %v956_v62 }
 0x5a3   : > { %v963_v1 = vpack.c.bf16 %v962_v63, %v962_v63 }
 0x5a5   : > { %1441 = vmatmul.mubr.msk.bf16.vlgmr.msra.gmra.mxu1 %vm413_vm0, %v963_v1 }
 0x5a6   : > { %1468 = vmatprep.mubr.msk.bf16.mxu1 %vm1535_vm1, %v1534_v5  ;;  %1453 = vmatpush3.bf16.msra.mxu1 %v1496_v29 }
 0x5a7   : > { %1454 = vmatprep.subr.bf16.mxu1 %v1534_v5 }
 0x5aa   : > { %1455 = vmatpush3.bf16.msra.mxu1 %v1497_v30 }
 0x5ab   : > { %1456 = vmatprep.subr.bf16.mxu1 %v1534_v5 }
 0x5ae   : > { %1457 = vmatpush3.bf16.msra.mxu1 %v1498_v31 }
 0x5af   : > { %1458 = vmatprep.subr.bf16.mxu1 %v1534_v5 }
 0x5b2   : > { %1459 = vmatpush3.bf16.msra.mxu1 %v1499_v32 }
 0x5b3   : > { %1460 = vmatprep.subr.bf16.mxu1 %v1534_v5 }
 0x5b6   : > { %1461 = vmatpush3.bf16.msra.mxu1 %v1500_v33 }
 0x5b7   : > { %1462 = vmatprep.subr.bf16.mxu1 %v1534_v5 }
 0x5ba   : > { %1463 = vmatpush3.bf16.msra.mxu1 %v1501_v34 }
 0x5bb   : > { %1464 = vmatprep.subr.bf16.mxu1 %v1534_v5 }
 0x5be   : > { %1465 = vmatpush3.bf16.msra.mxu1 %v1502_v35 }
 0x5bf   : > { %1466 = vmatprep.subr.bf16.mxu1 %v1534_v5 }
 0x5c2   : > { %1467 = vmatpush3.bf16.msra.mxu1 %v1503_v36 }
 0x665   : > { %v1024_v3 = vpop.f32.mrf.mxu1 }
 0x666   : > { %v1025_v4 = vadd.f32 %v1325_v2, %v1024_v3 }
 0x667   : > { %v1442_v6 = vpop.f32.mrf.mxu1 }
 0x668   : > { %v1747_v7 = vadd.f32 %v1025_v4, %v1625_v0  ;;  %v1495_v0 = vld [vmem:[%s1824_s8] sm:$0xff]  }
 0x669   : > { %v1027_v8 = vpop.f32.mrf.mxu1  ;;  %1447 = vmatpush3.bf16.msra.mxu0 %v1495_v0 }
 0x66a   : > { %v1033_v9 = vsel %vm413_vm0, %v1747_v7, 0.0  ;;  %v1037_v10 = vmul.f32 %v1747_v7, %v1747_v7 }
 0x66b   : > { %1034 = vadd.xlane.f32.xlu1 %v1033_v9  ;;  %v1443_v11 = vpop.f32.mrf.mxu1 }
 0x66c   : > { %v1038_v12 = vsel %vm413_vm0, %v1037_v10, 0.0 }
 0x66d   : > { %1039 = vadd.xlane.f32.xlu0 %v1038_v12 }
 0x6f4   : > { %v1035_v14 = vpop.xlane.xlu1 %1034 }
 0x6f5   : > { %v1036_v15 = vmul.f32 0.03125, %v1035_v14 }
 0x6f6   : > { %v1040_v16 = vpop.xlane.xlu0 %1039 }
 0x6f7   : > { %v1042_v17 = vmul.f32 %v1036_v15, %v1036_v15  ;;  %v1041_v18 = vmul.f32 0.03125, %v1040_v16  ;;  %v1044_v21 = vsub.f32 %v1747_v7, %v1036_v15 }
 0x6f9   : > { %v1043_v19 = vsub.f32 %v1041_v18, %v1042_v17 }
 0x6fb   : > { %v1045_v20 = vadd.f32 1e-05, %v1043_v19 }
 0x6fd   : > { %1522 = vrsqrt.f32 %v1045_v20 }
 0x70a   : > { %v1523_v22 = vpop.eup %1522 }
 0x70b   : > { %v1047_v24 = vmul.f32 %v1523_v22, %v1044_v21 }
 0x70d   : > { %v1054_v26 = vmul.f32 %v1329_v23, %v1047_v24 }
 0x70f   : > { %v1061_v27 = vadd.f32 %v1330_v25, %v1054_v26 }
 0x711   : > { %v1062_v28 = vpack.c.bf16 %v1061_v27, %v1061_v27 }
 0x713   : > { %1449 = vmatmul.mubr.msk.bf16.vlgmr.msra.gmra.mxu0 %vm413_vm0, %v1062_v28 }
 0x7d3   : > { %v1123_v38 = vpop.f32.mrf.mxu0 }
 0x7d4   : > { %v1124_v39 = vadd.f32 %v1331_v37, %v1123_v38 }
 0x7d5   : > { %v1450_v40 = vpop.f32.mrf.mxu0 }
 0x7d6   : > { %v1129_v41 = vmul.f32 %v1124_v39, %v1124_v39 }
 0x7d7   : > { %v1126_v42 = vpop.f32.mrf.mxu0 }
 0x7d8   : > { %v1130_v43 = vmul.f32 %v1129_v41, %v1124_v39 }
 0x7d9   : > { %v1451_v44 = vpop.f32.mrf.mxu0 }
 0x7da   : > { %v1131_v45 = vmul.f32 0.044715, %v1130_v43 }
 0x7dc   : > { %v1132_v46 = vadd.f32 %v1131_v45, %v1124_v39 }
 0x7de   : > { %v1133_v47 = vmul.f32 0.7978846, %v1132_v46 }
 0x7e0   : > { %1524 = vtanh.f32 %v1133_v47 }
 0x7ed   : > { %v1525_v48 = vpop.eup %1524 }
 0x7ee   : > { %v1135_v49 = vadd.f32 1.0, %v1525_v48 }
 0x7f0   : > { %v1136_v5 = vmul.f32 0.5, %v1135_v49 }
 0x7f2   : > { %v1137_v50 = vmul.f32 %v1136_v5, %v1124_v39 }
 0x7f4   : > { %v1138_v51 = vpack.c.bf16 %v1137_v50, %v1137_v50 }
 0x7f6   : > { %1469 = vmatmul.mubr.bf16.vlgmr.msra.gmra.mxu1 %v1138_v51 }
 0x8b6   : > { %v1244_v53 = vpop.f32.mrf.mxu1 }
 0x8b7   : > { %v1245_v54 = vadd.f32 %v1335_v52, %v1244_v53 }
 0x8b8   : > { %v1470_v55 = vpop.f32.mrf.mxu1 }
 0x8b9   : > { %v1250_v56 = vadd.f32 %v1245_v54, %v1747_v7 }
 0x8ba   : > { %v1247_v57 = vpop.f32.mrf.mxu1 }
 0x8bb   : > { %1251 = vst.msk [vmem:[%s408_s16] sm:$0xff] %vm413_vm0, %v1250_v56 }
 0x8bc   : > { %v1471_v58 = vpop.f32.mrf.mxu1 }
 0x8bd PF: > { %s22_s21 = sadd.s32 1, %s1532_s21  }
 0x8be   : > { %p19_p4 = scmp.ge.s32.totalorder %s22_s21, 4  }
 0x8c0   :  { %21 = sbr.rel (!%p19_p4) target bundleno = 1 (0x1), region = 98 }

</bundles_post_ra>
